<compile_context>
chip_gen: v7x
topology: tpu7x:2x2x1
jax: 0.10.0
libtpu: 0.0.40
codegen_flags: <defaults>
</compile_context>

<pallas_src>
import jax
import jax.numpy as jnp
from jax import lax
from jax.experimental import pallas as pl
from jax.experimental.pallas import tpu as pltpu

EPS = 1e-5


# ----------------------------- packing utilities ------------------------------

class _RowPack:
    """Packs (rows, cols<=lanes) f32 matrices into one (N, lanes) array, zero padded."""

    def __init__(self, lanes, dtype):
        self.lanes = lanes
        self.dtype = dtype
        self.chunks = []
        self.layout = {}      # name -> (row_offset, n_rows)   (Python ints, static)
        self.n = 0

    def add(self, name, arr):
        arr = jnp.asarray(arr, jnp.float32)
        r, c = arr.shape
        pad = jnp.zeros((r, self.lanes), jnp.float32)
        self.chunks.append(pad.at[:, :c].set(arr))
        self.layout[name] = (self.n, r)
        self.n += r

    def finalize(self):
        return jnp.concatenate(self.chunks, axis=0).astype(self.dtype)


# ----------------------------- in-kernel helpers -------------------------------

def _layernorm(x, g, b):
    mu = jnp.mean(x, axis=-1, keepdims=True)
    xc = x - mu
    var = jnp.mean(xc * xc, axis=-1, keepdims=True)
    return xc * lax.rsqrt(var + EPS) * g + b


# --------------------------------- fused kernel --------------------------------

def make_kernel(B, T, Cin, L128, LV):
    """Builds the whole-model kernel closed over static shapes and pack layouts."""
    f32 = jnp.float32
    bf16 = jnp.bfloat16

    def kernel(x_ref, wp128_ref, wp512_ref, vec_ref, vec512_ref, o_ref):
        def get128(name):
            off, r = L128[name]
            return wp128_ref[off:off + r, :]          # bf16 slice

        def getv(name):
            off, r = LV[name]
            return vec_ref[off:off + r, :]            # f32 (1,128) row

        x = x_ref[...]                                # (B*T, Cin) f32

        # ---------------- Inception block 1 (1x1 convs folded into taps) --------
        pieces = []
        for b in range(B):
            seg = x[b * T:(b + 1) * T, :]                             # (T, Cin)
            ones = jnp.ones((T, 1), f32)
            xi = jnp.concatenate([seg, ones], axis=-1)                # (T, Cin+1)
            zp = jnp.zeros((2, Cin + 1), f32)
            xp5 = jnp.concatenate([zp, xi, zp], axis=0)               # (T+4, Cin+1)
            neg = jnp.full((1, Cin), -1e30, f32)
            xpm = jnp.concatenate([neg, seg, neg], axis=0)            # (T+2, Cin)
            mp = jnp.maximum(jnp.maximum(xpm[0:T], xpm[1:T + 1]), xpm[2:T + 2])
            cols = ([seg]
                    + [xp5[k + 1:k + 1 + T, :] for k in range(3)]     # k=3 taps (+indicator)
                    + [xp5[k:k + T, :] for k in range(5)]             # k=5 taps (+indicator)
                    + [mp])
            pieces.append(jnp.concatenate(cols, axis=-1))             # (T, 98)
        big1 = jnp.concatenate(pieces, axis=0)                        # (B*T, 98)
        x1 = jnp.maximum(
            jnp.dot(big1.astype(bf16), get128('Wbig1'),
                    preferred_element_type=f32) + getv('ball1'), 0.0)  # (B*T, 128)

        # ---------------- Inception block 2 -------------------------------------
        h = jnp.dot(x1.astype(bf16), get128('wA2'),
                    preferred_element_type=f32) + getv('bA2')          # (B*T, 128) cols>=64 zero
        h2 = h[:, 0:32]
        h3 = h[:, 32:64]
        pieces = []
        for b in range(B):
            sl = slice(b * T, (b + 1) * T)
            xs, h2s, h3s = x1[sl], h2[sl], h3[sl]
            z1 = jnp.zeros((1, 32), f32)
            h2p = jnp.concatenate([z1, h2s, z1], axis=0)              # (T+2, 32)
            z2 = jnp.zeros((2, 32), f32)
            h3p = jnp.concatenate([z2, h3s, z2], axis=0)              # (T+4, 32)
            neg = jnp.full((1, 128), -1e30, f32)
            xpm = jnp.concatenate([neg, xs, neg], axis=0)
            mp = jnp.maximum(jnp.maximum(xpm[0:T], xpm[1:T + 1]), xpm[2:T + 2])
            cols = ([xs]
                    + [h2p[k:k + T, :] for k in range(3)]
                    + [h3p[k:k + T, :] for k in range(5)]
                    + [mp])
            pieces.append(jnp.concatenate(cols, axis=-1))             # (T, 512)
        big2 = jnp.concatenate(pieces, axis=0)                        # (B*T, 512)
        x2 = jnp.maximum(
            jnp.dot(big2.astype(bf16), get128('Wbig2'),
                    preferred_element_type=f32) + getv('ball2'), 0.0)  # (B*T, 128)

        # ---------------- Transformer blocks ------------------------------------
        def transformer(xin, t):
            # CoordinateAttention
            s = jnp.mean(xin, axis=-1, keepdims=True)                             # (B*T, 1)
            s1 = jnp.maximum(s * getv(f'ws1_{t}') + getv(f'bs1_{t}'), 0.0)        # (B*T,128) cols>=16 zero
            a_seq = jax.nn.sigmoid(
                jnp.dot(s1.astype(bf16), get128(f'ws2_{t}'),
                        preferred_element_type=f32) + getv(f'bs2_{t}'))           # (B*T,128)
            fmean = jnp.concatenate(
                [jnp.mean(xin[b * T:(b + 1) * T, :], axis=0, keepdims=True)
                 for b in range(B)], axis=0)                                      # (B,128)
            f1 = jnp.maximum(
                jnp.dot(fmean.astype(bf16), get128(f'wf1_{t}'),
                        preferred_element_type=f32) + getv(f'bf1_{t}'), 0.0)      # (B,128) cols>=16 zero
            a_feat = jax.nn.sigmoid(
                jnp.sum(f1 * getv(f'wf2t_{t}'), axis=-1, keepdims=True)
                + getv(f'bf2_{t}')[:, 0:1])                                       # (B,1)
            a_feat_bt = jnp.concatenate(
                [jnp.broadcast_to(a_feat[b:b + 1, :], (T, 1)) for b in range(B)],
                axis=0)                                                           # (B*T,1)
            attn = jax.nn.sigmoid(a_seq + a_feat_bt)      # double sigmoid, as in reference
            h1 = _layernorm(xin + xin * attn, getv(f'g1_{t}'), getv(f'be1_{t}'))
            # FFN
            wq1 = wp512_ref[(t - 1) * 128:t * 128, :]                             # (128,512) bf16
            bq1 = vec512_ref[t - 1:t, :]                                          # (1,512) f32
            hh = jnp.maximum(
                jnp.dot(h1.astype(bf16), wq1, preferred_element_type=f32) + bq1, 0.0)
            ffn = jnp.dot(hh.astype(bf16), get128(f'wq2_{t}'),
                          preferred_element_type=f32) + getv(f'bq2_{t}')
            return _layernorm(h1 + ffn, getv(f'g2_{t}'), getv(f'be2_{t}'))

        x3 = transformer(x2, 1)
        x4 = transformer(x3, 2)

        # ---------------- Classifier --------------------------------------------
        pooled = jnp.concatenate(
            [jnp.mean(x4[b * T:(b + 1) * T, :], axis=0, keepdims=True)
             for b in range(B)], axis=0)                                          # (B,128)
        c1 = jnp.maximum(
            jnp.dot(pooled.astype(bf16), get128('cw1'),
                    preferred_element_type=f32) + getv('cb1'), 0.0)               # (B,128) cols>=64 zero
        c2 = jnp.maximum(
            jnp.dot(c1.astype(bf16), get128('cw2'),
                    preferred_element_type=f32) + getv('cb2'), 0.0)               # (B,128) cols>=32 zero
        logit = jnp.sum(c2 * getv('cw3t'), axis=-1, keepdims=True) + getv('cb3')[:, 0:1]
        o_ref[...] = jax.nn.sigmoid(logit)                                        # (B,1)

    return kernel


# ----------------------------------- wrapper ------------------------------------

def build_forward(B, T, Cin, L128, LV):
    BT = B * T
    kernel = make_kernel(B, T, Cin, L128, LV)

    def forward(x, wp128, wp512, vecs, vecs512):
        x2d = x.reshape(BT, Cin)
        return pl.pallas_call(
            kernel,
            out_shape=jax.ShapeDtypeStruct((B, 1), jnp.float32),
            grid=(1,),
            in_specs=[
                pl.BlockSpec((BT, Cin), lambda i: (0, 0)),
                pl.BlockSpec(wp128.shape, lambda i: (0, 0)),
                pl.BlockSpec(wp512.shape, lambda i: (0, 0)),
                pl.BlockSpec(vecs.shape, lambda i: (0, 0)),
                pl.BlockSpec(vecs512.shape, lambda i: (0, 0)),
            ],
            out_specs=pl.BlockSpec((B, 1), lambda i: (0, 0)),
            compiler_params=pltpu.CompilerParams(
                dimension_semantics=("arbitrary",)),
        )(x2d, wp128, wp512, vecs, vecs512)

    return jax.jit(forward)


# ------------------------------ parameter init ----------------------------------

def init_raw_params(key):
    keys = iter(jax.random.split(key, 64))

    def uni(shape, fan):
        b = 1.0 / float(fan) ** 0.5
        return jax.random.uniform(next(keys), shape, jnp.float32, -b, b)

    def conv(cin, cout, k):
        return uni((k, cin, cout), cin * k), uni((1, cout), cin * k)

    def lin(cin, cout):
        return uni((cin, cout), cin), uni((1, cout), cin)

    def inception(cin):
        w1, c1 = conv(cin, 32, 1)
        w2a, b2a = conv(cin, 32, 1)
        w2b, c2b = conv(32, 32, 3)
        w3a, b3a = conv(cin, 32, 1)
        w3b, c3b = conv(32, 32, 5)
        w4, c4 = conv(cin, 32, 1)
        return dict(w1=w1, c1=c1, w2a=w2a, b2a=b2a, w2b=w2b, c2b=c2b,
                    w3a=w3a, b3a=b3a, w3b=w3b, c3b=c3b, w4=w4, c4=c4)

    def transformer(c=128, red=8):
        mid = c // red
        ws1, bs1 = lin(1, mid)
        ws2, bs2 = lin(mid, c)
        wf1, bf1 = lin(c, mid)
        wf2, bf2 = lin(mid, 1)
        wq1, bq1 = lin(c, 4 * c)
        wq2, bq2 = lin(4 * c, c)
        return dict(ws1=ws1, bs1=bs1, ws2=ws2, bs2=bs2, wf1=wf1, bf1=bf1,
                    wf2=wf2, bf2=bf2, wq1=wq1, bq1=bq1, wq2=wq2, bq2=bq2,
                    g1=jnp.ones((1, c), jnp.float32), be1=jnp.zeros((1, c), jnp.float32),
                    g2=jnp.ones((1, c), jnp.float32), be2=jnp.zeros((1, c), jnp.float32))

    def classifier():
        w1, b1 = lin(128, 64)
        w2, b2 = lin(64, 32)
        w3, b3 = lin(32, 1)
        return dict(w1=w1, b1=b1, w2=w2, b2=b2, w3=w3, b3=b3)

    return dict(inc1=inception(9), inc2=inception(128),
                tr1=transformer(), tr2=transformer(), cls=classifier())


def pack_params(raw):
    def pad_cols(w, lo):
        r, c = w.shape
        out = jnp.zeros((r, 128), jnp.float32)
        return out.at[:, lo:lo + c].set(w)

    i1, i2, cl = raw['inc1'], raw['inc2'], raw['cls']

    # Inception block 1: fold 1x1 convs into the k=3 / k=5 taps; per-tap indicator
    # column carries the inner bias (exactly reproduces zero-padded conv boundaries).
    rows = [pad_cols(i1['w1'][0], 0)]                                   # branch1 -> cols 0:32
    for k in range(3):                                                  # branch2 -> cols 32:64
        rows.append(pad_cols(jnp.concatenate(
            [i1['w2a'][0] @ i1['w2b'][k], i1['b2a'] @ i1['w2b'][k]], axis=0), 32))
    for k in range(5):                                                  # branch3 -> cols 64:96
        rows.append(pad_cols(jnp.concatenate(
            [i1['w3a'][0] @ i1['w3b'][k], i1['b3a'] @ i1['w3b'][k]], axis=0), 64))
    rows.append(pad_cols(i1['w4'][0], 96))                              # branch4 -> cols 96:128
    Wbig1 = jnp.concatenate(rows, axis=0)                               # (98, 128)
    ball1 = jnp.concatenate([i1['c1'], i1['c2b'], i1['c3b'], i1['c4']], axis=-1)

    # Inception block 2: keep the fused 1x1 (wA2), one stacked branch weight.
    wA2 = jnp.concatenate([i2['w2a'][0], i2['w3a'][0]], axis=-1)        # (128, 64)
    bA2 = jnp.concatenate([i2['b2a'], i2['b3a']], axis=-1)              # (1, 64)
    Wbig2 = jnp.concatenate([
        pad_cols(i2['w1'][0], 0),
        pad_cols(i2['w2b'].reshape(3 * 32, 32), 32),
        pad_cols(i2['w3b'].reshape(5 * 32, 32), 64),
        pad_cols(i2['w4'][0], 96)], axis=0)                             # (512, 128)
    ball2 = jnp.concatenate([i2['c1'], i2['c2b'], i2['c3b'], i2['c4']], axis=-1)

    # bf16 matmul-weight pack (128 lanes); segment starts are multiples of 16 rows.
    m = _RowPack(128, jnp.bfloat16)
    m.add('Wbig2', Wbig2)
    m.add('wA2', wA2)
    for t in (1, 2):
        m.add(f'wq2_{t}', raw[f'tr{t}']['wq2'])
    for t in (1, 2):
        m.add(f'wf1_{t}', raw[f'tr{t}']['wf1'])
    for t in (1, 2):
        ws2p = jnp.zeros((128, 128), jnp.float32).at[:16, :].set(raw[f'tr{t}']['ws2'])
        m.add(f'ws2_{t}', ws2p)
    m.add('cw1', cl['w1'])
    cw2p = jnp.zeros((128, 128), jnp.float32).at[:64, :32].set(cl['w2'])
    m.add('cw2', cw2p)
    m.add('Wbig1', Wbig1)
    wp128 = m.finalize()

    # bf16 512-lane pack: FFN up-projections.
    wp512 = jnp.concatenate([raw['tr1']['wq1'], raw['tr2']['wq1']],
                            axis=0).astype(jnp.bfloat16)                # (256, 512)

    # f32 bias / LayerNorm / tiny-VPU-weight pack, one row each.
    v = _RowPack(128, jnp.float32)
    v.add('ball1', ball1)
    v.add('bA2', bA2)
    v.add('ball2', ball2)
    for t in (1, 2):
        p = raw[f'tr{t}']
        v.add(f'ws1_{t}', p['ws1'])
        v.add(f'bs1_{t}', p['bs1'])
        v.add(f'bs2_{t}', p['bs2'])
        v.add(f'bf1_{t}', p['bf1'])
        v.add(f'wf2t_{t}', p['wf2'].T)
        v.add(f'bf2_{t}', p['bf2'])
        v.add(f'g1_{t}', p['g1'])
        v.add(f'be1_{t}', p['be1'])
        v.add(f'bq2_{t}', p['bq2'])
        v.add(f'g2_{t}', p['g2'])
        v.add(f'be2_{t}', p['be2'])
    v.add('cb1', cl['b1'])
    v.add('cb2', cl['b2'])
    v.add('cw3t', cl['w3'].T)
    v.add('cb3', cl['b3'])
    vecs = v.finalize()

    vecs512 = jnp.concatenate([raw['tr1']['bq1'], raw['tr2']['bq1']], axis=0)  # (2, 512)

    return wp128, wp512, vecs, vecs512, m.layout, v.layout


# ------------------------- pure-JAX f32 reference forward -----------------------

def reference_forward(x, raw):
    B_, T_, _ = x.shape

    def conv1d(x, w, b):                       # 'same' conv, w: (k, cin, cout)
        k, cin, cout = w.shape
        P = (k - 1) // 2
        xp = jnp.pad(x, ((0, 0), (P, P), (0, 0)))
        cols = jnp.concatenate([xp[:, i:i + T_, :] for i in range(k)], axis=-1)
        return jnp.einsum('btk,ko->bto', cols, w.reshape(k * cin, cout)) + b

    def inception(x, p):
        b1 = jax.nn.relu(conv1d(x, p['w1'], p['c1']))
        b2 = jax.nn.relu(conv1d(conv1d(x, p['w2a'], p['b2a']), p['w2b'], p['c2b']))
        b3 = jax.nn.relu(conv1d(conv1d(x, p['w3a'], p['b3a']), p['w3b'], p['c3b']))
        xp = jnp.pad(x, ((0, 0), (1, 1), (0, 0)), constant_values=-jnp.inf)
        mp = jnp.maximum(jnp.maximum(xp[:, 0:T_], xp[:, 1:T_ + 1]), xp[:, 2:T_ + 2])
        b4 = jax.nn.relu(conv1d(mp, p['w4'], p['c4']))
        return jnp.concatenate([b1, b2, b3, b4], axis=-1)

    def layernorm(x, g, b):
        mu = x.mean(-1, keepdims=True)
        var = ((x - mu) ** 2).mean(-1, keepdims=True)
        return (x - mu) * lax.rsqrt(var + EPS) * g + b

    def transformer(x, p):
        s = x.mean(-1, keepdims=True)
        s1 = jax.nn.relu(s * p['ws1'] + p['bs1'])
        a_seq = jax.nn.sigmoid(s1 @ p['ws2'] + p['bs2'])
        f = x.mean(1)
        f1 = jax.nn.relu(f @ p['wf1'] + p['bf1'])
        a_feat = jax.nn.sigmoid(f1 @ p['wf2'] + p['bf2'])
        attn = jax.nn.sigmoid(a_seq + a_feat[:, None, :])
        h = layernorm(x + x * attn, p['g1'], p['be1'])
        ffn = jax.nn.relu(h @ p['wq1'] + p['bq1']) @ p['wq2'] + p['bq2']
        return layernorm(h + ffn, p['g2'], p['be2'])

    h = inception(x, raw['inc1'])
    h = inception(h, raw['inc2'])
    h = transformer(h, raw['tr1'])
    h = transformer(h, raw['tr2'])
    pooled = h.mean(1)
    cl = raw['cls']
    z = jax.nn.relu(pooled @ cl['w1'] + cl['b1'])
    z = jax.nn.relu(z @ cl['w2'] + cl['b2'])
    return jax.nn.sigmoid(z @ cl['w3'] + cl['b3'])


# ----------------------------------- main ---------------------------------------

if __name__ == "__main__":
    # CustomModel(input_shape=(23, 9)): x is (B, T=23, C_in=9); model permutes to NCT.
    B, T, Cin = 2, 23, 9
    key = jax.random.PRNGKey(0)
    kx, kp = jax.random.split(key)
    x = jax.random.normal(kx, (B, T, Cin), jnp.float32)

    raw = init_raw_params(kp)
    wp128, wp512, vecs, vecs512, L128, LV = pack_params(raw)

    forward = build_forward(B, T, Cin, L128, LV)
    out = forward(x, wp128, wp512, vecs, vecs512)
    jax.block_until_ready(out)

    ref = reference_forward(x, raw)

    assert out.shape == (B, 1)
    assert bool(jnp.all(jnp.isfinite(out)))
    assert bool(jnp.all((out >= 0.0) & (out <= 1.0)))       # sigmoid output
    err = float(jnp.max(jnp.abs(out - ref)))
    assert err < 4e-2, f"kernel/reference mismatch: max abs err = {err}"
    print("KERNEL_OK")
</pallas_src>

<mosaic_0001>
module attributes {stable_mosaic.version = 11 : i64} {
  func.func @kernel(%arg0: i32, %arg1: memref<46x9xf32, #tpu.memory_space<vmem>>, %arg2: memref<2530x128xbf16, #tpu.memory_space<vmem>>, %arg3: memref<256x512xbf16, #tpu.memory_space<vmem>>, %arg4: memref<29x128xf32, #tpu.memory_space<vmem>>, %arg5: memref<2x512xf32, #tpu.memory_space<vmem>>, %arg6: memref<2x1xf32, #tpu.memory_space<vmem>>) attributes {dimension_semantics = [#tpu.dimension_semantics<arbitrary>], iteration_bounds = array<i64: 1>, scalar_prefetch = 0 : i64, scratch_operands = 0 : i64, tpu.core_type = #tpu.core_type<tc>, window_params = [{pipeline_mode = #tpu.pipeline_mode<synchronous>, transform_indices = @transform_0, window_bounds = array<i64: 46, 9>}, {pipeline_mode = #tpu.pipeline_mode<synchronous>, transform_indices = @transform_1, window_bounds = array<i64: 2530, 128>}, {pipeline_mode = #tpu.pipeline_mode<synchronous>, transform_indices = @transform_2, window_bounds = array<i64: 256, 512>}, {pipeline_mode = #tpu.pipeline_mode<synchronous>, transform_indices = @transform_3, window_bounds = array<i64: 29, 128>}, {pipeline_mode = #tpu.pipeline_mode<synchronous>, transform_indices = @transform_4, window_bounds = array<i64: 2, 512>}, {pipeline_mode = #tpu.pipeline_mode<synchronous>, transform_indices = @transform_5, window_bounds = array<i64: 2, 1>}]} {
    %c0 = arith.constant 0 : index
    %c0_0 = arith.constant 0 : index
    %0 = vector.load %arg1[%c0, %c0_0] : memref<46x9xf32, #tpu.memory_space<vmem>>, vector<46x9xf32>
    %1 = vector.extract_strided_slice %0 {offsets = [0, 0], sizes = [23, 9], strides = [1, 1]} : vector<46x9xf32> to vector<23x9xf32>
    %cst = arith.constant 1.000000e+00 : f32
    %2 = vector.broadcast %cst : f32 to vector<23x1xf32>
    %3 = tpu.concatenate %1, %2 in 1 : vector<23x9xf32>, vector<23x1xf32> -> vector<23x10xf32>
    %cst_1 = arith.constant 0.000000e+00 : f32
    %4 = vector.broadcast %cst_1 : f32 to vector<2x10xf32>
    %5 = tpu.concatenate %4, %3, %4 in 0 : vector<2x10xf32>, vector<23x10xf32>, vector<2x10xf32> -> vector<27x10xf32>
    %cst_2 = arith.constant -1.000000e+30 : f32
    %6 = vector.broadcast %cst_2 : f32 to vector<1x9xf32>
    %7 = tpu.concatenate %6, %1, %6 in 0 : vector<1x9xf32>, vector<23x9xf32>, vector<1x9xf32> -> vector<25x9xf32>
    %8 = vector.extract_strided_slice %7 {offsets = [0, 0], sizes = [23, 9], strides = [1, 1]} : vector<25x9xf32> to vector<23x9xf32>
    %9 = vector.extract_strided_slice %7 {offsets = [1, 0], sizes = [23, 9], strides = [1, 1]} : vector<25x9xf32> to vector<23x9xf32>
    %10 = arith.maximumf %8, %9 : vector<23x9xf32>
    %11 = vector.extract_strided_slice %7 {offsets = [2, 0], sizes = [23, 9], strides = [1, 1]} : vector<25x9xf32> to vector<23x9xf32>
    %12 = arith.maximumf %10, %11 : vector<23x9xf32>
    %13 = vector.extract_strided_slice %5 {offsets = [1, 0], sizes = [23, 10], strides = [1, 1]} : vector<27x10xf32> to vector<23x10xf32>
    %14 = vector.extract_strided_slice %5 {offsets = [2, 0], sizes = [23, 10], strides = [1, 1]} : vector<27x10xf32> to vector<23x10xf32>
    %15 = vector.extract_strided_slice %5 {offsets = [3, 0], sizes = [23, 10], strides = [1, 1]} : vector<27x10xf32> to vector<23x10xf32>
    %16 = vector.extract_strided_slice %5 {offsets = [0, 0], sizes = [23, 10], strides = [1, 1]} : vector<27x10xf32> to vector<23x10xf32>
    %17 = vector.extract_strided_slice %5 {offsets = [1, 0], sizes = [23, 10], strides = [1, 1]} : vector<27x10xf32> to vector<23x10xf32>
    %18 = vector.extract_strided_slice %5 {offsets = [2, 0], sizes = [23, 10], strides = [1, 1]} : vector<27x10xf32> to vector<23x10xf32>
    %19 = vector.extract_strided_slice %5 {offsets = [3, 0], sizes = [23, 10], strides = [1, 1]} : vector<27x10xf32> to vector<23x10xf32>
    %20 = vector.extract_strided_slice %5 {offsets = [4, 0], sizes = [23, 10], strides = [1, 1]} : vector<27x10xf32> to vector<23x10xf32>
    %21 = tpu.concatenate %1, %13, %14, %15, %16, %17, %18, %19, %20, %12 in 1 : vector<23x9xf32>, vector<23x10xf32>, vector<23x10xf32>, vector<23x10xf32>, vector<23x10xf32>, vector<23x10xf32>, vector<23x10xf32>, vector<23x10xf32>, vector<23x10xf32>, vector<23x9xf32> -> vector<23x98xf32>
    %22 = vector.extract_strided_slice %0 {offsets = [23, 0], sizes = [23, 9], strides = [1, 1]} : vector<46x9xf32> to vector<23x9xf32>
    %cst_3 = arith.constant 1.000000e+00 : f32
    %23 = vector.broadcast %cst_3 : f32 to vector<23x1xf32>
    %24 = tpu.concatenate %22, %23 in 1 : vector<23x9xf32>, vector<23x1xf32> -> vector<23x10xf32>
    %cst_4 = arith.constant 0.000000e+00 : f32
    %25 = vector.broadcast %cst_4 : f32 to vector<2x10xf32>
    %26 = tpu.concatenate %25, %24, %25 in 0 : vector<2x10xf32>, vector<23x10xf32>, vector<2x10xf32> -> vector<27x10xf32>
    %cst_5 = arith.constant -1.000000e+30 : f32
    %27 = vector.broadcast %cst_5 : f32 to vector<1x9xf32>
    %28 = tpu.concatenate %27, %22, %27 in 0 : vector<1x9xf32>, vector<23x9xf32>, vector<1x9xf32> -> vector<25x9xf32>
    %29 = vector.extract_strided_slice %28 {offsets = [0, 0], sizes = [23, 9], strides = [1, 1]} : vector<25x9xf32> to vector<23x9xf32>
    %30 = vector.extract_strided_slice %28 {offsets = [1, 0], sizes = [23, 9], strides = [1, 1]} : vector<25x9xf32> to vector<23x9xf32>
    %31 = arith.maximumf %29, %30 : vector<23x9xf32>
    %32 = vector.extract_strided_slice %28 {offsets = [2, 0], sizes = [23, 9], strides = [1, 1]} : vector<25x9xf32> to vector<23x9xf32>
    %33 = arith.maximumf %31, %32 : vector<23x9xf32>
    %34 = vector.extract_strided_slice %26 {offsets = [1, 0], sizes = [23, 10], strides = [1, 1]} : vector<27x10xf32> to vector<23x10xf32>
    %35 = vector.extract_strided_slice %26 {offsets = [2, 0], sizes = [23, 10], strides = [1, 1]} : vector<27x10xf32> to vector<23x10xf32>
    %36 = vector.extract_strided_slice %26 {offsets = [3, 0], sizes = [23, 10], strides = [1, 1]} : vector<27x10xf32> to vector<23x10xf32>
    %37 = vector.extract_strided_slice %26 {offsets = [0, 0], sizes = [23, 10], strides = [1, 1]} : vector<27x10xf32> to vector<23x10xf32>
    %38 = vector.extract_strided_slice %26 {offsets = [1, 0], sizes = [23, 10], strides = [1, 1]} : vector<27x10xf32> to vector<23x10xf32>
    %39 = vector.extract_strided_slice %26 {offsets = [2, 0], sizes = [23, 10], strides = [1, 1]} : vector<27x10xf32> to vector<23x10xf32>
    %40 = vector.extract_strided_slice %26 {offsets = [3, 0], sizes = [23, 10], strides = [1, 1]} : vector<27x10xf32> to vector<23x10xf32>
    %41 = vector.extract_strided_slice %26 {offsets = [4, 0], sizes = [23, 10], strides = [1, 1]} : vector<27x10xf32> to vector<23x10xf32>
    %42 = tpu.concatenate %22, %34, %35, %36, %37, %38, %39, %40, %41, %33 in 1 : vector<23x9xf32>, vector<23x10xf32>, vector<23x10xf32>, vector<23x10xf32>, vector<23x10xf32>, vector<23x10xf32>, vector<23x10xf32>, vector<23x10xf32>, vector<23x10xf32>, vector<23x9xf32> -> vector<23x98xf32>
    %43 = tpu.concatenate %21, %42 in 0 : vector<23x98xf32>, vector<23x98xf32> -> vector<46x98xf32>
    %44 = arith.truncf %43 : vector<46x98xf32> to vector<46x98xbf16>
    %c2432 = arith.constant 2432 : index
    %c0_6 = arith.constant 0 : index
    %45 = vector.load %arg2[%c2432, %c0_6] : memref<2530x128xbf16, #tpu.memory_space<vmem>>, vector<98x128xbf16>
    %cst_7 = arith.constant dense<0.000000e+00> : vector<46x128xf32>
    %46 = tpu.matmul %44, %45, %cst_7 {dimension_numbers = #tpu.dot_dimension_numbers<[1], [0], [0], [1], [0, 0, 1, 1], [], []>} : vector<46x98xbf16>, vector<98x128xbf16>, vector<46x128xf32> -> vector<46x128xf32>
    %c0_8 = arith.constant 0 : index
    %c0_9 = arith.constant 0 : index
    %47 = vector.load %arg4[%c0_8, %c0_9] : memref<29x128xf32, #tpu.memory_space<vmem>>, vector<1x128xf32>
    %48 = vector.broadcast %47 : vector<1x128xf32> to vector<46x128xf32>
    %49 = arith.addf %46, %48 : vector<46x128xf32>
    %cst_10 = arith.constant 0.000000e+00 : f32
    %50 = vector.broadcast %cst_10 : f32 to vector<46x128xf32>
    %51 = arith.maximumf %49, %50 : vector<46x128xf32>
    %52 = arith.truncf %51 : vector<46x128xf32> to vector<46x128xbf16>
    %c512 = arith.constant 512 : index
    %c0_11 = arith.constant 0 : index
    %53 = vector.load %arg2[%c512, %c0_11] : memref<2530x128xbf16, #tpu.memory_space<vmem>>, vector<128x128xbf16>
    %cst_12 = arith.constant dense<0.000000e+00> : vector<46x128xf32>
    %54 = tpu.matmul %52, %53, %cst_12 {dimension_numbers = #tpu.dot_dimension_numbers<[1], [0], [0], [1], [0, 0, 1, 1], [], []>} : vector<46x128xbf16>, vector<128x128xbf16>, vector<46x128xf32> -> vector<46x128xf32>
    %c1 = arith.constant 1 : index
    %c0_13 = arith.constant 0 : index
    %55 = vector.load %arg4[%c1, %c0_13] : memref<29x128xf32, #tpu.memory_space<vmem>>, vector<1x128xf32>
    %56 = vector.broadcast %55 : vector<1x128xf32> to vector<46x128xf32>
    %57 = arith.addf %54, %56 : vector<46x128xf32>
    %58 = vector.extract_strided_slice %57 {offsets = [0, 0], sizes = [46, 32], strides = [1, 1]} : vector<46x128xf32> to vector<46x32xf32>
    %59 = vector.extract_strided_slice %57 {offsets = [0, 32], sizes = [46, 32], strides = [1, 1]} : vector<46x128xf32> to vector<46x32xf32>
    %60 = vector.extract_strided_slice %51 {offsets = [0, 0], sizes = [23, 128], strides = [1, 1]} : vector<46x128xf32> to vector<23x128xf32>
    %61 = vector.extract_strided_slice %58 {offsets = [0, 0], sizes = [23, 32], strides = [1, 1]} : vector<46x32xf32> to vector<23x32xf32>
    %62 = vector.extract_strided_slice %59 {offsets = [0, 0], sizes = [23, 32], strides = [1, 1]} : vector<46x32xf32> to vector<23x32xf32>
    %cst_14 = arith.constant 0.000000e+00 : f32
    %63 = vector.broadcast %cst_14 : f32 to vector<1x32xf32>
    %64 = tpu.concatenate %63, %61, %63 in 0 : vector<1x32xf32>, vector<23x32xf32>, vector<1x32xf32> -> vector<25x32xf32>
    %cst_15 = arith.constant 0.000000e+00 : f32
    %65 = vector.broadcast %cst_15 : f32 to vector<2x32xf32>
    %66 = tpu.concatenate %65, %62, %65 in 0 : vector<2x32xf32>, vector<23x32xf32>, vector<2x32xf32> -> vector<27x32xf32>
    %cst_16 = arith.constant -1.000000e+30 : f32
    %67 = vector.broadcast %cst_16 : f32 to vector<1x128xf32>
    %68 = tpu.concatenate %67, %60, %67 in 0 : vector<1x128xf32>, vector<23x128xf32>, vector<1x128xf32> -> vector<25x128xf32>
    %69 = vector.extract_strided_slice %68 {offsets = [0, 0], sizes = [23, 128], strides = [1, 1]} : vector<25x128xf32> to vector<23x128xf32>
    %70 = vector.extract_strided_slice %68 {offsets = [1, 0], sizes = [23, 128], strides = [1, 1]} : vector<25x128xf32> to vector<23x128xf32>
    %71 = arith.maximumf %69, %70 : vector<23x128xf32>
    %72 = vector.extract_strided_slice %68 {offsets = [2, 0], sizes = [23, 128], strides = [1, 1]} : vector<25x128xf32> to vector<23x128xf32>
    %73 = arith.maximumf %71, %72 : vector<23x128xf32>
    %74 = vector.extract_strided_slice %64 {offsets = [0, 0], sizes = [23, 32], strides = [1, 1]} : vector<25x32xf32> to vector<23x32xf32>
    %75 = vector.extract_strided_slice %64 {offsets = [1, 0], sizes = [23, 32], strides = [1, 1]} : vector<25x32xf32> to vector<23x32xf32>
    %76 = vector.extract_strided_slice %64 {offsets = [2, 0], sizes = [23, 32], strides = [1, 1]} : vector<25x32xf32> to vector<23x32xf32>
    %77 = vector.extract_strided_slice %66 {offsets = [0, 0], sizes = [23, 32], strides = [1, 1]} : vector<27x32xf32> to vector<23x32xf32>
    %78 = vector.extract_strided_slice %66 {offsets = [1, 0], sizes = [23, 32], strides = [1, 1]} : vector<27x32xf32> to vector<23x32xf32>
    %79 = vector.extract_strided_slice %66 {offsets = [2, 0], sizes = [23, 32], strides = [1, 1]} : vector<27x32xf32> to vector<23x32xf32>
    %80 = vector.extract_strided_slice %66 {offsets = [3, 0], sizes = [23, 32], strides = [1, 1]} : vector<27x32xf32> to vector<23x32xf32>
    %81 = vector.extract_strided_slice %66 {offsets = [4, 0], sizes = [23, 32], strides = [1, 1]} : vector<27x32xf32> to vector<23x32xf32>
    %82 = tpu.concatenate %60, %74, %75, %76, %77, %78, %79, %80, %81, %73 in 1 : vector<23x128xf32>, vector<23x32xf32>, vector<23x32xf32>, vector<23x32xf32>, vector<23x32xf32>, vector<23x32xf32>, vector<23x32xf32>, vector<23x32xf32>, vector<23x32xf32>, vector<23x128xf32> -> vector<23x512xf32>
    %83 = vector.extract_strided_slice %51 {offsets = [23, 0], sizes = [23, 128], strides = [1, 1]} : vector<46x128xf32> to vector<23x128xf32>
    %84 = vector.extract_strided_slice %58 {offsets = [23, 0], sizes = [23, 32], strides = [1, 1]} : vector<46x32xf32> to vector<23x32xf32>
    %85 = vector.extract_strided_slice %59 {offsets = [23, 0], sizes = [23, 32], strides = [1, 1]} : vector<46x32xf32> to vector<23x32xf32>
    %cst_17 = arith.constant 0.000000e+00 : f32
    %86 = vector.broadcast %cst_17 : f32 to vector<1x32xf32>
    %87 = tpu.concatenate %86, %84, %86 in 0 : vector<1x32xf32>, vector<23x32xf32>, vector<1x32xf32> -> vector<25x32xf32>
    %cst_18 = arith.constant 0.000000e+00 : f32
    %88 = vector.broadcast %cst_18 : f32 to vector<2x32xf32>
    %89 = tpu.concatenate %88, %85, %88 in 0 : vector<2x32xf32>, vector<23x32xf32>, vector<2x32xf32> -> vector<27x32xf32>
    %cst_19 = arith.constant -1.000000e+30 : f32
    %90 = vector.broadcast %cst_19 : f32 to vector<1x128xf32>
    %91 = tpu.concatenate %90, %83, %90 in 0 : vector<1x128xf32>, vector<23x128xf32>, vector<1x128xf32> -> vector<25x128xf32>
    %92 = vector.extract_strided_slice %91 {offsets = [0, 0], sizes = [23, 128], strides = [1, 1]} : vector<25x128xf32> to vector<23x128xf32>
    %93 = vector.extract_strided_slice %91 {offsets = [1, 0], sizes = [23, 128], strides = [1, 1]} : vector<25x128xf32> to vector<23x128xf32>
    %94 = arith.maximumf %92, %93 : vector<23x128xf32>
    %95 = vector.extract_strided_slice %91 {offsets = [2, 0], sizes = [23, 128], strides = [1, 1]} : vector<25x128xf32> to vector<23x128xf32>
    %96 = arith.maximumf %94, %95 : vector<23x128xf32>
    %97 = vector.extract_strided_slice %87 {offsets = [0, 0], sizes = [23, 32], strides = [1, 1]} : vector<25x32xf32> to vector<23x32xf32>
    %98 = vector.extract_strided_slice %87 {offsets = [1, 0], sizes = [23, 32], strides = [1, 1]} : vector<25x32xf32> to vector<23x32xf32>
    %99 = vector.extract_strided_slice %87 {offsets = [2, 0], sizes = [23, 32], strides = [1, 1]} : vector<25x32xf32> to vector<23x32xf32>
    %100 = vector.extract_strided_slice %89 {offsets = [0, 0], sizes = [23, 32], strides = [1, 1]} : vector<27x32xf32> to vector<23x32xf32>
    %101 = vector.extract_strided_slice %89 {offsets = [1, 0], sizes = [23, 32], strides = [1, 1]} : vector<27x32xf32> to vector<23x32xf32>
    %102 = vector.extract_strided_slice %89 {offsets = [2, 0], sizes = [23, 32], strides = [1, 1]} : vector<27x32xf32> to vector<23x32xf32>
    %103 = vector.extract_strided_slice %89 {offsets = [3, 0], sizes = [23, 32], strides = [1, 1]} : vector<27x32xf32> to vector<23x32xf32>
    %104 = vector.extract_strided_slice %89 {offsets = [4, 0], sizes = [23, 32], strides = [1, 1]} : vector<27x32xf32> to vector<23x32xf32>
    %105 = tpu.concatenate %83, %97, %98, %99, %100, %101, %102, %103, %104, %96 in 1 : vector<23x128xf32>, vector<23x32xf32>, vector<23x32xf32>, vector<23x32xf32>, vector<23x32xf32>, vector<23x32xf32>, vector<23x32xf32>, vector<23x32xf32>, vector<23x32xf32>, vector<23x128xf32> -> vector<23x512xf32>
    %106 = tpu.concatenate %82, %105 in 0 : vector<23x512xf32>, vector<23x512xf32> -> vector<46x512xf32>
    %107 = arith.truncf %106 : vector<46x512xf32> to vector<46x512xbf16>
    %c0_20 = arith.constant 0 : index
    %c0_21 = arith.constant 0 : index
    %108 = vector.load %arg2[%c0_20, %c0_21] : memref<2530x128xbf16, #tpu.memory_space<vmem>>, vector<512x128xbf16>
    %cst_22 = arith.constant dense<0.000000e+00> : vector<46x128xf32>
    %109 = tpu.matmul %107, %108, %cst_22 {dimension_numbers = #tpu.dot_dimension_numbers<[1], [0], [0], [1], [0, 0, 1, 1], [], []>} : vector<46x512xbf16>, vector<512x128xbf16>, vector<46x128xf32> -> vector<46x128xf32>
    %c2 = arith.constant 2 : index
    %c0_23 = arith.constant 0 : index
    %110 = vector.load %arg4[%c2, %c0_23] : memref<29x128xf32, #tpu.memory_space<vmem>>, vector<1x128xf32>
    %111 = vector.broadcast %110 : vector<1x128xf32> to vector<46x128xf32>
    %112 = arith.addf %109, %111 : vector<46x128xf32>
    %cst_24 = arith.constant 0.000000e+00 : f32
    %113 = vector.broadcast %cst_24 : f32 to vector<46x128xf32>
    %114 = arith.maximumf %112, %113 : vector<46x128xf32>
    %cst_25 = arith.constant dense<0.000000e+00> : vector<46xf32>
    %115 = vector.multi_reduction <add>, %114, %cst_25 [1] : vector<46x128xf32> to vector<46xf32>
    %116 = vector.shape_cast %115 : vector<46xf32> to vector<46x1xf32>
    %cst_26 = arith.constant 1.280000e+02 : f32
    %117 = vector.broadcast %cst_26 : f32 to vector<46x1xf32>
    %118 = arith.divf %116, %117 : vector<46x1xf32>
    %c3 = arith.constant 3 : index
    %c0_27 = arith.constant 0 : index
    %119 = vector.load %arg4[%c3, %c0_27] : memref<29x128xf32, #tpu.memory_space<vmem>>, vector<1x128xf32>
    %120 = vector.broadcast %118 : vector<46x1xf32> to vector<46x128xf32>
    %121 = vector.broadcast %119 : vector<1x128xf32> to vector<46x128xf32>
    %122 = arith.mulf %120, %121 : vector<46x128xf32>
    %c4 = arith.constant 4 : index
    %c0_28 = arith.constant 0 : index
    %123 = vector.load %arg4[%c4, %c0_28] : memref<29x128xf32, #tpu.memory_space<vmem>>, vector<1x128xf32>
    %124 = vector.broadcast %123 : vector<1x128xf32> to vector<46x128xf32>
    %125 = arith.addf %122, %124 : vector<46x128xf32>
    %cst_29 = arith.constant 0.000000e+00 : f32
    %126 = vector.broadcast %cst_29 : f32 to vector<46x128xf32>
    %127 = arith.maximumf %125, %126 : vector<46x128xf32>
    %128 = arith.truncf %127 : vector<46x128xf32> to vector<46x128xbf16>
    %c1920 = arith.constant 1920 : index
    %c0_30 = arith.constant 0 : index
    %129 = vector.load %arg2[%c1920, %c0_30] : memref<2530x128xbf16, #tpu.memory_space<vmem>>, vector<128x128xbf16>
    %cst_31 = arith.constant dense<0.000000e+00> : vector<46x128xf32>
    %130 = tpu.matmul %128, %129, %cst_31 {dimension_numbers = #tpu.dot_dimension_numbers<[1], [0], [0], [1], [0, 0, 1, 1], [], []>} : vector<46x128xbf16>, vector<128x128xbf16>, vector<46x128xf32> -> vector<46x128xf32>
    %c5 = arith.constant 5 : index
    %c0_32 = arith.constant 0 : index
    %131 = vector.load %arg4[%c5, %c0_32] : memref<29x128xf32, #tpu.memory_space<vmem>>, vector<1x128xf32>
    %132 = vector.broadcast %131 : vector<1x128xf32> to vector<46x128xf32>
    %133 = arith.addf %130, %132 : vector<46x128xf32>
    %134 = arith.negf %133 : vector<46x128xf32>
    %135 = math.exp %134 : vector<46x128xf32>
    %cst_33 = arith.constant 1.000000e+00 : f32
    %136 = vector.broadcast %cst_33 : f32 to vector<46x128xf32>
    %137 = arith.addf %136, %135 : vector<46x128xf32>
    %138 = arith.divf %136, %137 : vector<46x128xf32>
    %139 = vector.extract_strided_slice %114 {offsets = [0, 0], sizes = [23, 128], strides = [1, 1]} : vector<46x128xf32> to vector<23x128xf32>
    %cst_34 = arith.constant dense<0.000000e+00> : vector<128xf32>
    %140 = vector.multi_reduction <add>, %139, %cst_34 [0] : vector<23x128xf32> to vector<128xf32>
    %141 = vector.shape_cast %140 : vector<128xf32> to vector<1x128xf32>
    %cst_35 = arith.constant 2.300000e+01 : f32
    %142 = vector.broadcast %cst_35 : f32 to vector<1x128xf32>
    %143 = arith.divf %141, %142 : vector<1x128xf32>
    %144 = vector.extract_strided_slice %114 {offsets = [23, 0], sizes = [23, 128], strides = [1, 1]} : vector<46x128xf32> to vector<23x128xf32>
    %cst_36 = arith.constant dense<0.000000e+00> : vector<128xf32>
    %145 = vector.multi_reduction <add>, %144, %cst_36 [0] : vector<23x128xf32> to vector<128xf32>
    %146 = vector.shape_cast %145 : vector<128xf32> to vector<1x128xf32>
    %cst_37 = arith.constant 2.300000e+01 : f32
    %147 = vector.broadcast %cst_37 : f32 to vector<1x128xf32>
    %148 = arith.divf %146, %147 : vector<1x128xf32>
    %149 = tpu.concatenate %143, %148 in 0 : vector<1x128xf32>, vector<1x128xf32> -> vector<2x128xf32>
    %150 = arith.truncf %149 : vector<2x128xf32> to vector<2x128xbf16>
    %c1664 = arith.constant 1664 : index
    %c0_38 = arith.constant 0 : index
    %151 = vector.load %arg2[%c1664, %c0_38] : memref<2530x128xbf16, #tpu.memory_space<vmem>>, vector<128x128xbf16>
    %cst_39 = arith.constant dense<0.000000e+00> : vector<2x128xf32>
    %152 = tpu.matmul %150, %151, %cst_39 {dimension_numbers = #tpu.dot_dimension_numbers<[1], [0], [0], [1], [0, 0, 1, 1], [], []>} : vector<2x128xbf16>, vector<128x128xbf16>, vector<2x128xf32> -> vector<2x128xf32>
    %c6 = arith.constant 6 : index
    %c0_40 = arith.constant 0 : index
    %153 = vector.load %arg4[%c6, %c0_40] : memref<29x128xf32, #tpu.memory_space<vmem>>, vector<1x128xf32>
    %154 = vector.broadcast %153 : vector<1x128xf32> to vector<2x128xf32>
    %155 = arith.addf %152, %154 : vector<2x128xf32>
    %cst_41 = arith.constant 0.000000e+00 : f32
    %156 = vector.broadcast %cst_41 : f32 to vector<2x128xf32>
    %157 = arith.maximumf %155, %156 : vector<2x128xf32>
    %c7 = arith.constant 7 : index
    %c0_42 = arith.constant 0 : index
    %158 = vector.load %arg4[%c7, %c0_42] : memref<29x128xf32, #tpu.memory_space<vmem>>, vector<1x128xf32>
    %159 = vector.broadcast %158 : vector<1x128xf32> to vector<2x128xf32>
    %160 = arith.mulf %157, %159 : vector<2x128xf32>
    %cst_43 = arith.constant dense<0.000000e+00> : vector<2xf32>
    %161 = vector.multi_reduction <add>, %160, %cst_43 [1] : vector<2x128xf32> to vector<2xf32>
    %162 = vector.shape_cast %161 : vector<2xf32> to vector<2x1xf32>
    %c8 = arith.constant 8 : index
    %c0_44 = arith.constant 0 : index
    %163 = vector.load %arg4[%c8, %c0_44] : memref<29x128xf32, #tpu.memory_space<vmem>>, vector<1x128xf32>
    %164 = vector.extract_strided_slice %163 {offsets = [0, 0], sizes = [1, 1], strides = [1, 1]} : vector<1x128xf32> to vector<1x1xf32>
    %165 = vector.broadcast %164 : vector<1x1xf32> to vector<2x1xf32>
    %166 = arith.addf %162, %165 : vector<2x1xf32>
    %167 = arith.negf %166 : vector<2x1xf32>
    %168 = math.exp %167 : vector<2x1xf32>
    %cst_45 = arith.constant 1.000000e+00 : f32
    %169 = vector.broadcast %cst_45 : f32 to vector<2x1xf32>
    %170 = arith.addf %169, %168 : vector<2x1xf32>
    %171 = arith.divf %169, %170 : vector<2x1xf32>
    %172 = vector.extract_strided_slice %171 {offsets = [0, 0], sizes = [1, 1], strides = [1, 1]} : vector<2x1xf32> to vector<1x1xf32>
    %173 = vector.shape_cast %172 : vector<1x1xf32> to vector<1x1xf32>
    %174 = vector.broadcast %173 : vector<1x1xf32> to vector<23x1xf32>
    %175 = vector.extract_strided_slice %171 {offsets = [1, 0], sizes = [1, 1], strides = [1, 1]} : vector<2x1xf32> to vector<1x1xf32>
    %176 = vector.shape_cast %175 : vector<1x1xf32> to vector<1x1xf32>
    %177 = vector.broadcast %176 : vector<1x1xf32> to vector<23x1xf32>
    %178 = tpu.concatenate %174, %177 in 0 : vector<23x1xf32>, vector<23x1xf32> -> vector<46x1xf32>
    %179 = vector.broadcast %178 : vector<46x1xf32> to vector<46x128xf32>
    %180 = arith.addf %138, %179 : vector<46x128xf32>
    %181 = arith.negf %180 : vector<46x128xf32>
    %182 = math.exp %181 : vector<46x128xf32>
    %cst_46 = arith.constant 1.000000e+00 : f32
    %183 = vector.broadcast %cst_46 : f32 to vector<46x128xf32>
    %184 = arith.addf %183, %182 : vector<46x128xf32>
    %185 = arith.divf %183, %184 : vector<46x128xf32>
    %186 = arith.mulf %114, %185 : vector<46x128xf32>
    %187 = arith.addf %114, %186 : vector<46x128xf32>
    %c9 = arith.constant 9 : index
    %c0_47 = arith.constant 0 : index
    %188 = vector.load %arg4[%c9, %c0_47] : memref<29x128xf32, #tpu.memory_space<vmem>>, vector<1x128xf32>
    %c10 = arith.constant 10 : index
    %c0_48 = arith.constant 0 : index
    %189 = vector.load %arg4[%c10, %c0_48] : memref<29x128xf32, #tpu.memory_space<vmem>>, vector<1x128xf32>
    %cst_49 = arith.constant dense<0.000000e+00> : vector<46xf32>
    %190 = vector.multi_reduction <add>, %187, %cst_49 [1] : vector<46x128xf32> to vector<46xf32>
    %191 = vector.shape_cast %190 : vector<46xf32> to vector<46x1xf32>
    %cst_50 = arith.constant 1.280000e+02 : f32
    %192 = vector.broadcast %cst_50 : f32 to vector<46x1xf32>
    %193 = arith.divf %191, %192 : vector<46x1xf32>
    %194 = vector.broadcast %193 : vector<46x1xf32> to vector<46x128xf32>
    %195 = arith.subf %187, %194 : vector<46x128xf32>
    %196 = arith.mulf %195, %195 : vector<46x128xf32>
    %cst_51 = arith.constant dense<0.000000e+00> : vector<46xf32>
    %197 = vector.multi_reduction <add>, %196, %cst_51 [1] : vector<46x128xf32> to vector<46xf32>
    %198 = vector.shape_cast %197 : vector<46xf32> to vector<46x1xf32>
    %cst_52 = arith.constant 1.280000e+02 : f32
    %199 = vector.broadcast %cst_52 : f32 to vector<46x1xf32>
    %200 = arith.divf %198, %199 : vector<46x1xf32>
    %cst_53 = arith.constant 9.99999974E-6 : f32
    %201 = vector.broadcast %cst_53 : f32 to vector<46x1xf32>
    %202 = arith.addf %200, %201 : vector<46x1xf32>
    %203 = math.rsqrt %202 : vector<46x1xf32>
    %204 = vector.broadcast %203 : vector<46x1xf32> to vector<46x128xf32>
    %205 = arith.mulf %195, %204 : vector<46x128xf32>
    %206 = vector.broadcast %188 : vector<1x128xf32> to vector<46x128xf32>
    %207 = arith.mulf %205, %206 : vector<46x128xf32>
    %208 = vector.broadcast %189 : vector<1x128xf32> to vector<46x128xf32>
    %209 = arith.addf %207, %208 : vector<46x128xf32>
    %c0_54 = arith.constant 0 : index
    %c0_55 = arith.constant 0 : index
    %210 = vector.load %arg3[%c0_54, %c0_55] : memref<256x512xbf16, #tpu.memory_space<vmem>>, vector<128x512xbf16>
    %c0_56 = arith.constant 0 : index
    %c0_57 = arith.constant 0 : index
    %211 = vector.load %arg5[%c0_56, %c0_57] : memref<2x512xf32, #tpu.memory_space<vmem>>, vector<1x512xf32>
    %212 = arith.truncf %209 : vector<46x128xf32> to vector<46x128xbf16>
    %cst_58 = arith.constant dense<0.000000e+00> : vector<46x512xf32>
    %213 = tpu.matmul %212, %210, %cst_58 {dimension_numbers = #tpu.dot_dimension_numbers<[1], [0], [0], [1], [0, 0, 1, 1], [], []>} : vector<46x128xbf16>, vector<128x512xbf16>, vector<46x512xf32> -> vector<46x512xf32>
    %214 = vector.broadcast %211 : vector<1x512xf32> to vector<46x512xf32>
    %215 = arith.addf %213, %214 : vector<46x512xf32>
    %cst_59 = arith.constant 0.000000e+00 : f32
    %216 = vector.broadcast %cst_59 : f32 to vector<46x512xf32>
    %217 = arith.maximumf %215, %216 : vector<46x512xf32>
    %218 = arith.truncf %217 : vector<46x512xf32> to vector<46x512xbf16>
    %c640 = arith.constant 640 : index
    %c0_60 = arith.constant 0 : index
    %219 = vector.load %arg2[%c640, %c0_60] : memref<2530x128xbf16, #tpu.memory_space<vmem>>, vector<512x128xbf16>
    %cst_61 = arith.constant dense<0.000000e+00> : vector<46x128xf32>
    %220 = tpu.matmul %218, %219, %cst_61 {dimension_numbers = #tpu.dot_dimension_numbers<[1], [0], [0], [1], [0, 0, 1, 1], [], []>} : vector<46x512xbf16>, vector<512x128xbf16>, vector<46x128xf32> -> vector<46x128xf32>
    %c11 = arith.constant 11 : index
    %c0_62 = arith.constant 0 : index
    %221 = vector.load %arg4[%c11, %c0_62] : memref<29x128xf32, #tpu.memory_space<vmem>>, vector<1x128xf32>
    %222 = vector.broadcast %221 : vector<1x128xf32> to vector<46x128xf32>
    %223 = arith.addf %220, %222 : vector<46x128xf32>
    %224 = arith.addf %209, %223 : vector<46x128xf32>
    %c12 = arith.constant 12 : index
    %c0_63 = arith.constant 0 : index
    %225 = vector.load %arg4[%c12, %c0_63] : memref<29x128xf32, #tpu.memory_space<vmem>>, vector<1x128xf32>
    %c13 = arith.constant 13 : index
    %c0_64 = arith.constant 0 : index
    %226 = vector.load %arg4[%c13, %c0_64] : memref<29x128xf32, #tpu.memory_space<vmem>>, vector<1x128xf32>
    %cst_65 = arith.constant dense<0.000000e+00> : vector<46xf32>
    %227 = vector.multi_reduction <add>, %224, %cst_65 [1] : vector<46x128xf32> to vector<46xf32>
    %228 = vector.shape_cast %227 : vector<46xf32> to vector<46x1xf32>
    %cst_66 = arith.constant 1.280000e+02 : f32
    %229 = vector.broadcast %cst_66 : f32 to vector<46x1xf32>
    %230 = arith.divf %228, %229 : vector<46x1xf32>
    %231 = vector.broadcast %230 : vector<46x1xf32> to vector<46x128xf32>
    %232 = arith.subf %224, %231 : vector<46x128xf32>
    %233 = arith.mulf %232, %232 : vector<46x128xf32>
    %cst_67 = arith.constant dense<0.000000e+00> : vector<46xf32>
    %234 = vector.multi_reduction <add>, %233, %cst_67 [1] : vector<46x128xf32> to vector<46xf32>
    %235 = vector.shape_cast %234 : vector<46xf32> to vector<46x1xf32>
    %cst_68 = arith.constant 1.280000e+02 : f32
    %236 = vector.broadcast %cst_68 : f32 to vector<46x1xf32>
    %237 = arith.divf %235, %236 : vector<46x1xf32>
    %cst_69 = arith.constant 9.99999974E-6 : f32
    %238 = vector.broadcast %cst_69 : f32 to vector<46x1xf32>
    %239 = arith.addf %237, %238 : vector<46x1xf32>
    %240 = math.rsqrt %239 : vector<46x1xf32>
    %241 = vector.broadcast %240 : vector<46x1xf32> to vector<46x128xf32>
    %242 = arith.mulf %232, %241 : vector<46x128xf32>
    %243 = vector.broadcast %225 : vector<1x128xf32> to vector<46x128xf32>
    %244 = arith.mulf %242, %243 : vector<46x128xf32>
    %245 = vector.broadcast %226 : vector<1x128xf32> to vector<46x128xf32>
    %246 = arith.addf %244, %245 : vector<46x128xf32>
    %cst_70 = arith.constant dense<0.000000e+00> : vector<46xf32>
    %247 = vector.multi_reduction <add>, %246, %cst_70 [1] : vector<46x128xf32> to vector<46xf32>
    %248 = vector.shape_cast %247 : vector<46xf32> to vector<46x1xf32>
    %cst_71 = arith.constant 1.280000e+02 : f32
    %249 = vector.broadcast %cst_71 : f32 to vector<46x1xf32>
    %250 = arith.divf %248, %249 : vector<46x1xf32>
    %c14 = arith.constant 14 : index
    %c0_72 = arith.constant 0 : index
    %251 = vector.load %arg4[%c14, %c0_72] : memref<29x128xf32, #tpu.memory_space<vmem>>, vector<1x128xf32>
    %252 = vector.broadcast %250 : vector<46x1xf32> to vector<46x128xf32>
    %253 = vector.broadcast %251 : vector<1x128xf32> to vector<46x128xf32>
    %254 = arith.mulf %252, %253 : vector<46x128xf32>
    %c15 = arith.constant 15 : index
    %c0_73 = arith.constant 0 : index
    %255 = vector.load %arg4[%c15, %c0_73] : memref<29x128xf32, #tpu.memory_space<vmem>>, vector<1x128xf32>
    %256 = vector.broadcast %255 : vector<1x128xf32> to vector<46x128xf32>
    %257 = arith.addf %254, %256 : vector<46x128xf32>
    %cst_74 = arith.constant 0.000000e+00 : f32
    %258 = vector.broadcast %cst_74 : f32 to vector<46x128xf32>
    %259 = arith.maximumf %257, %258 : vector<46x128xf32>
    %260 = arith.truncf %259 : vector<46x128xf32> to vector<46x128xbf16>
    %c2048 = arith.constant 2048 : index
    %c0_75 = arith.constant 0 : index
    %261 = vector.load %arg2[%c2048, %c0_75] : memref<2530x128xbf16, #tpu.memory_space<vmem>>, vector<128x128xbf16>
    %cst_76 = arith.constant dense<0.000000e+00> : vector<46x128xf32>
    %262 = tpu.matmul %260, %261, %cst_76 {dimension_numbers = #tpu.dot_dimension_numbers<[1], [0], [0], [1], [0, 0, 1, 1], [], []>} : vector<46x128xbf16>, vector<128x128xbf16>, vector<46x128xf32> -> vector<46x128xf32>
    %c16 = arith.constant 16 : index
    %c0_77 = arith.constant 0 : index
    %263 = vector.load %arg4[%c16, %c0_77] : memref<29x128xf32, #tpu.memory_space<vmem>>, vector<1x128xf32>
    %264 = vector.broadcast %263 : vector<1x128xf32> to vector<46x128xf32>
    %265 = arith.addf %262, %264 : vector<46x128xf32>
    %266 = arith.negf %265 : vector<46x128xf32>
    %267 = math.exp %266 : vector<46x128xf32>
    %cst_78 = arith.constant 1.000000e+00 : f32
    %268 = vector.broadcast %cst_78 : f32 to vector<46x128xf32>
    %269 = arith.addf %268, %267 : vector<46x128xf32>
    %270 = arith.divf %268, %269 : vector<46x128xf32>
    %271 = vector.extract_strided_slice %246 {offsets = [0, 0], sizes = [23, 128], strides = [1, 1]} : vector<46x128xf32> to vector<23x128xf32>
    %cst_79 = arith.constant dense<0.000000e+00> : vector<128xf32>
    %272 = vector.multi_reduction <add>, %271, %cst_79 [0] : vector<23x128xf32> to vector<128xf32>
    %273 = vector.shape_cast %272 : vector<128xf32> to vector<1x128xf32>
    %cst_80 = arith.constant 2.300000e+01 : f32
    %274 = vector.broadcast %cst_80 : f32 to vector<1x128xf32>
    %275 = arith.divf %273, %274 : vector<1x128xf32>
    %276 = vector.extract_strided_slice %246 {offsets = [23, 0], sizes = [23, 128], strides = [1, 1]} : vector<46x128xf32> to vector<23x128xf32>
    %cst_81 = arith.constant dense<0.000000e+00> : vector<128xf32>
    %277 = vector.multi_reduction <add>, %276, %cst_81 [0] : vector<23x128xf32> to vector<128xf32>
    %278 = vector.shape_cast %277 : vector<128xf32> to vector<1x128xf32>
    %cst_82 = arith.constant 2.300000e+01 : f32
    %279 = vector.broadcast %cst_82 : f32 to vector<1x128xf32>
    %280 = arith.divf %278, %279 : vector<1x128xf32>
    %281 = tpu.concatenate %275, %280 in 0 : vector<1x128xf32>, vector<1x128xf32> -> vector<2x128xf32>
    %282 = arith.truncf %281 : vector<2x128xf32> to vector<2x128xbf16>
    %c1792 = arith.constant 1792 : index
    %c0_83 = arith.constant 0 : index
    %283 = vector.load %arg2[%c1792, %c0_83] : memref<2530x128xbf16, #tpu.memory_space<vmem>>, vector<128x128xbf16>
    %cst_84 = arith.constant dense<0.000000e+00> : vector<2x128xf32>
    %284 = tpu.matmul %282, %283, %cst_84 {dimension_numbers = #tpu.dot_dimension_numbers<[1], [0], [0], [1], [0, 0, 1, 1], [], []>} : vector<2x128xbf16>, vector<128x128xbf16>, vector<2x128xf32> -> vector<2x128xf32>
    %c17 = arith.constant 17 : index
    %c0_85 = arith.constant 0 : index
    %285 = vector.load %arg4[%c17, %c0_85] : memref<29x128xf32, #tpu.memory_space<vmem>>, vector<1x128xf32>
    %286 = vector.broadcast %285 : vector<1x128xf32> to vector<2x128xf32>
    %287 = arith.addf %284, %286 : vector<2x128xf32>
    %cst_86 = arith.constant 0.000000e+00 : f32
    %288 = vector.broadcast %cst_86 : f32 to vector<2x128xf32>
    %289 = arith.maximumf %287, %288 : vector<2x128xf32>
    %c18 = arith.constant 18 : index
    %c0_87 = arith.constant 0 : index
    %290 = vector.load %arg4[%c18, %c0_87] : memref<29x128xf32, #tpu.memory_space<vmem>>, vector<1x128xf32>
    %291 = vector.broadcast %290 : vector<1x128xf32> to vector<2x128xf32>
    %292 = arith.mulf %289, %291 : vector<2x128xf32>
    %cst_88 = arith.constant dense<0.000000e+00> : vector<2xf32>
    %293 = vector.multi_reduction <add>, %292, %cst_88 [1] : vector<2x128xf32> to vector<2xf32>
    %294 = vector.shape_cast %293 : vector<2xf32> to vector<2x1xf32>
    %c19 = arith.constant 19 : index
    %c0_89 = arith.constant 0 : index
    %295 = vector.load %arg4[%c19, %c0_89] : memref<29x128xf32, #tpu.memory_space<vmem>>, vector<1x128xf32>
    %296 = vector.extract_strided_slice %295 {offsets = [0, 0], sizes = [1, 1], strides = [1, 1]} : vector<1x128xf32> to vector<1x1xf32>
    %297 = vector.broadcast %296 : vector<1x1xf32> to vector<2x1xf32>
    %298 = arith.addf %294, %297 : vector<2x1xf32>
    %299 = arith.negf %298 : vector<2x1xf32>
    %300 = math.exp %299 : vector<2x1xf32>
    %cst_90 = arith.constant 1.000000e+00 : f32
    %301 = vector.broadcast %cst_90 : f32 to vector<2x1xf32>
    %302 = arith.addf %301, %300 : vector<2x1xf32>
    %303 = arith.divf %301, %302 : vector<2x1xf32>
    %304 = vector.extract_strided_slice %303 {offsets = [0, 0], sizes = [1, 1], strides = [1, 1]} : vector<2x1xf32> to vector<1x1xf32>
    %305 = vector.shape_cast %304 : vector<1x1xf32> to vector<1x1xf32>
    %306 = vector.broadcast %305 : vector<1x1xf32> to vector<23x1xf32>
    %307 = vector.extract_strided_slice %303 {offsets = [1, 0], sizes = [1, 1], strides = [1, 1]} : vector<2x1xf32> to vector<1x1xf32>
    %308 = vector.shape_cast %307 : vector<1x1xf32> to vector<1x1xf32>
    %309 = vector.broadcast %308 : vector<1x1xf32> to vector<23x1xf32>
    %310 = tpu.concatenate %306, %309 in 0 : vector<23x1xf32>, vector<23x1xf32> -> vector<46x1xf32>
    %311 = vector.broadcast %310 : vector<46x1xf32> to vector<46x128xf32>
    %312 = arith.addf %270, %311 : vector<46x128xf32>
    %313 = arith.negf %312 : vector<46x128xf32>
    %314 = math.exp %313 : vector<46x128xf32>
    %cst_91 = arith.constant 1.000000e+00 : f32
    %315 = vector.broadcast %cst_91 : f32 to vector<46x128xf32>
    %316 = arith.addf %315, %314 : vector<46x128xf32>
    %317 = arith.divf %315, %316 : vector<46x128xf32>
    %318 = arith.mulf %246, %317 : vector<46x128xf32>
    %319 = arith.addf %246, %318 : vector<46x128xf32>
    %c20 = arith.constant 20 : index
    %c0_92 = arith.constant 0 : index
    %320 = vector.load %arg4[%c20, %c0_92] : memref<29x128xf32, #tpu.memory_space<vmem>>, vector<1x128xf32>
    %c21 = arith.constant 21 : index
    %c0_93 = arith.constant 0 : index
    %321 = vector.load %arg4[%c21, %c0_93] : memref<29x128xf32, #tpu.memory_space<vmem>>, vector<1x128xf32>
    %cst_94 = arith.constant dense<0.000000e+00> : vector<46xf32>
    %322 = vector.multi_reduction <add>, %319, %cst_94 [1] : vector<46x128xf32> to vector<46xf32>
    %323 = vector.shape_cast %322 : vector<46xf32> to vector<46x1xf32>
    %cst_95 = arith.constant 1.280000e+02 : f32
    %324 = vector.broadcast %cst_95 : f32 to vector<46x1xf32>
    %325 = arith.divf %323, %324 : vector<46x1xf32>
    %326 = vector.broadcast %325 : vector<46x1xf32> to vector<46x128xf32>
    %327 = arith.subf %319, %326 : vector<46x128xf32>
    %328 = arith.mulf %327, %327 : vector<46x128xf32>
    %cst_96 = arith.constant dense<0.000000e+00> : vector<46xf32>
    %329 = vector.multi_reduction <add>, %328, %cst_96 [1] : vector<46x128xf32> to vector<46xf32>
    %330 = vector.shape_cast %329 : vector<46xf32> to vector<46x1xf32>
    %cst_97 = arith.constant 1.280000e+02 : f32
    %331 = vector.broadcast %cst_97 : f32 to vector<46x1xf32>
    %332 = arith.divf %330, %331 : vector<46x1xf32>
    %cst_98 = arith.constant 9.99999974E-6 : f32
    %333 = vector.broadcast %cst_98 : f32 to vector<46x1xf32>
    %334 = arith.addf %332, %333 : vector<46x1xf32>
    %335 = math.rsqrt %334 : vector<46x1xf32>
    %336 = vector.broadcast %335 : vector<46x1xf32> to vector<46x128xf32>
    %337 = arith.mulf %327, %336 : vector<46x128xf32>
    %338 = vector.broadcast %320 : vector<1x128xf32> to vector<46x128xf32>
    %339 = arith.mulf %337, %338 : vector<46x128xf32>
    %340 = vector.broadcast %321 : vector<1x128xf32> to vector<46x128xf32>
    %341 = arith.addf %339, %340 : vector<46x128xf32>
    %c128 = arith.constant 128 : index
    %c0_99 = arith.constant 0 : index
    %342 = vector.load %arg3[%c128, %c0_99] : memref<256x512xbf16, #tpu.memory_space<vmem>>, vector<128x512xbf16>
    %c1_100 = arith.constant 1 : index
    %c0_101 = arith.constant 0 : index
    %343 = vector.load %arg5[%c1_100, %c0_101] : memref<2x512xf32, #tpu.memory_space<vmem>>, vector<1x512xf32>
    %344 = arith.truncf %341 : vector<46x128xf32> to vector<46x128xbf16>
    %cst_102 = arith.constant dense<0.000000e+00> : vector<46x512xf32>
    %345 = tpu.matmul %344, %342, %cst_102 {dimension_numbers = #tpu.dot_dimension_numbers<[1], [0], [0], [1], [0, 0, 1, 1], [], []>} : vector<46x128xbf16>, vector<128x512xbf16>, vector<46x512xf32> -> vector<46x512xf32>
    %346 = vector.broadcast %343 : vector<1x512xf32> to vector<46x512xf32>
    %347 = arith.addf %345, %346 : vector<46x512xf32>
    %cst_103 = arith.constant 0.000000e+00 : f32
    %348 = vector.broadcast %cst_103 : f32 to vector<46x512xf32>
    %349 = arith.maximumf %347, %348 : vector<46x512xf32>
    %350 = arith.truncf %349 : vector<46x512xf32> to vector<46x512xbf16>
    %c1152 = arith.constant 1152 : index
    %c0_104 = arith.constant 0 : index
    %351 = vector.load %arg2[%c1152, %c0_104] : memref<2530x128xbf16, #tpu.memory_space<vmem>>, vector<512x128xbf16>
    %cst_105 = arith.constant dense<0.000000e+00> : vector<46x128xf32>
    %352 = tpu.matmul %350, %351, %cst_105 {dimension_numbers = #tpu.dot_dimension_numbers<[1], [0], [0], [1], [0, 0, 1, 1], [], []>} : vector<46x512xbf16>, vector<512x128xbf16>, vector<46x128xf32> -> vector<46x128xf32>
    %c22 = arith.constant 22 : index
    %c0_106 = arith.constant 0 : index
    %353 = vector.load %arg4[%c22, %c0_106] : memref<29x128xf32, #tpu.memory_space<vmem>>, vector<1x128xf32>
    %354 = vector.broadcast %353 : vector<1x128xf32> to vector<46x128xf32>
    %355 = arith.addf %352, %354 : vector<46x128xf32>
    %356 = arith.addf %341, %355 : vector<46x128xf32>
    %c23 = arith.constant 23 : index
    %c0_107 = arith.constant 0 : index
    %357 = vector.load %arg4[%c23, %c0_107] : memref<29x128xf32, #tpu.memory_space<vmem>>, vector<1x128xf32>
    %c24 = arith.constant 24 : index
    %c0_108 = arith.constant 0 : index
    %358 = vector.load %arg4[%c24, %c0_108] : memref<29x128xf32, #tpu.memory_space<vmem>>, vector<1x128xf32>
    %cst_109 = arith.constant dense<0.000000e+00> : vector<46xf32>
    %359 = vector.multi_reduction <add>, %356, %cst_109 [1] : vector<46x128xf32> to vector<46xf32>
    %360 = vector.shape_cast %359 : vector<46xf32> to vector<46x1xf32>
    %cst_110 = arith.constant 1.280000e+02 : f32
    %361 = vector.broadcast %cst_110 : f32 to vector<46x1xf32>
    %362 = arith.divf %360, %361 : vector<46x1xf32>
    %363 = vector.broadcast %362 : vector<46x1xf32> to vector<46x128xf32>
    %364 = arith.subf %356, %363 : vector<46x128xf32>
    %365 = arith.mulf %364, %364 : vector<46x128xf32>
    %cst_111 = arith.constant dense<0.000000e+00> : vector<46xf32>
    %366 = vector.multi_reduction <add>, %365, %cst_111 [1] : vector<46x128xf32> to vector<46xf32>
    %367 = vector.shape_cast %366 : vector<46xf32> to vector<46x1xf32>
    %cst_112 = arith.constant 1.280000e+02 : f32
    %368 = vector.broadcast %cst_112 : f32 to vector<46x1xf32>
    %369 = arith.divf %367, %368 : vector<46x1xf32>
    %cst_113 = arith.constant 9.99999974E-6 : f32
    %370 = vector.broadcast %cst_113 : f32 to vector<46x1xf32>
    %371 = arith.addf %369, %370 : vector<46x1xf32>
    %372 = math.rsqrt %371 : vector<46x1xf32>
    %373 = vector.broadcast %372 : vector<46x1xf32> to vector<46x128xf32>
    %374 = arith.mulf %364, %373 : vector<46x128xf32>
    %375 = vector.broadcast %357 : vector<1x128xf32> to vector<46x128xf32>
    %376 = arith.mulf %374, %375 : vector<46x128xf32>
    %377 = vector.broadcast %358 : vector<1x128xf32> to vector<46x128xf32>
    %378 = arith.addf %376, %377 : vector<46x128xf32>
    %379 = vector.extract_strided_slice %378 {offsets = [0, 0], sizes = [23, 128], strides = [1, 1]} : vector<46x128xf32> to vector<23x128xf32>
    %cst_114 = arith.constant dense<0.000000e+00> : vector<128xf32>
    %380 = vector.multi_reduction <add>, %379, %cst_114 [0] : vector<23x128xf32> to vector<128xf32>
    %381 = vector.shape_cast %380 : vector<128xf32> to vector<1x128xf32>
    %cst_115 = arith.constant 2.300000e+01 : f32
    %382 = vector.broadcast %cst_115 : f32 to vector<1x128xf32>
    %383 = arith.divf %381, %382 : vector<1x128xf32>
    %384 = vector.extract_strided_slice %378 {offsets = [23, 0], sizes = [23, 128], strides = [1, 1]} : vector<46x128xf32> to vector<23x128xf32>
    %cst_116 = arith.constant dense<0.000000e+00> : vector<128xf32>
    %385 = vector.multi_reduction <add>, %384, %cst_116 [0] : vector<23x128xf32> to vector<128xf32>
    %386 = vector.shape_cast %385 : vector<128xf32> to vector<1x128xf32>
    %cst_117 = arith.constant 2.300000e+01 : f32
    %387 = vector.broadcast %cst_117 : f32 to vector<1x128xf32>
    %388 = arith.divf %386, %387 : vector<1x128xf32>
    %389 = tpu.concatenate %383, %388 in 0 : vector<1x128xf32>, vector<1x128xf32> -> vector<2x128xf32>
    %390 = arith.truncf %389 : vector<2x128xf32> to vector<2x128xbf16>
    %c2176 = arith.constant 2176 : index
    %c0_118 = arith.constant 0 : index
    %391 = vector.load %arg2[%c2176, %c0_118] : memref<2530x128xbf16, #tpu.memory_space<vmem>>, vector<128x128xbf16>
    %cst_119 = arith.constant dense<0.000000e+00> : vector<2x128xf32>
    %392 = tpu.matmul %390, %391, %cst_119 {dimension_numbers = #tpu.dot_dimension_numbers<[1], [0], [0], [1], [0, 0, 1, 1], [], []>} : vector<2x128xbf16>, vector<128x128xbf16>, vector<2x128xf32> -> vector<2x128xf32>
    %c25 = arith.constant 25 : index
    %c0_120 = arith.constant 0 : index
    %393 = vector.load %arg4[%c25, %c0_120] : memref<29x128xf32, #tpu.memory_space<vmem>>, vector<1x128xf32>
    %394 = vector.broadcast %393 : vector<1x128xf32> to vector<2x128xf32>
    %395 = arith.addf %392, %394 : vector<2x128xf32>
    %cst_121 = arith.constant 0.000000e+00 : f32
    %396 = vector.broadcast %cst_121 : f32 to vector<2x128xf32>
    %397 = arith.maximumf %395, %396 : vector<2x128xf32>
    %398 = arith.truncf %397 : vector<2x128xf32> to vector<2x128xbf16>
    %c2304 = arith.constant 2304 : index
    %c0_122 = arith.constant 0 : index
    %399 = vector.load %arg2[%c2304, %c0_122] : memref<2530x128xbf16, #tpu.memory_space<vmem>>, vector<128x128xbf16>
    %cst_123 = arith.constant dense<0.000000e+00> : vector<2x128xf32>
    %400 = tpu.matmul %398, %399, %cst_123 {dimension_numbers = #tpu.dot_dimension_numbers<[1], [0], [0], [1], [0, 0, 1, 1], [], []>} : vector<2x128xbf16>, vector<128x128xbf16>, vector<2x128xf32> -> vector<2x128xf32>
    %c26 = arith.constant 26 : index
    %c0_124 = arith.constant 0 : index
    %401 = vector.load %arg4[%c26, %c0_124] : memref<29x128xf32, #tpu.memory_space<vmem>>, vector<1x128xf32>
    %402 = vector.broadcast %401 : vector<1x128xf32> to vector<2x128xf32>
    %403 = arith.addf %400, %402 : vector<2x128xf32>
    %cst_125 = arith.constant 0.000000e+00 : f32
    %404 = vector.broadcast %cst_125 : f32 to vector<2x128xf32>
    %405 = arith.maximumf %403, %404 : vector<2x128xf32>
    %c27 = arith.constant 27 : index
    %c0_126 = arith.constant 0 : index
    %406 = vector.load %arg4[%c27, %c0_126] : memref<29x128xf32, #tpu.memory_space<vmem>>, vector<1x128xf32>
    %407 = vector.broadcast %406 : vector<1x128xf32> to vector<2x128xf32>
    %408 = arith.mulf %405, %407 : vector<2x128xf32>
    %cst_127 = arith.constant dense<0.000000e+00> : vector<2xf32>
    %409 = vector.multi_reduction <add>, %408, %cst_127 [1] : vector<2x128xf32> to vector<2xf32>
    %410 = vector.shape_cast %409 : vector<2xf32> to vector<2x1xf32>
    %c28 = arith.constant 28 : index
    %c0_128 = arith.constant 0 : index
    %411 = vector.load %arg4[%c28, %c0_128] : memref<29x128xf32, #tpu.memory_space<vmem>>, vector<1x128xf32>
    %412 = vector.extract_strided_slice %411 {offsets = [0, 0], sizes = [1, 1], strides = [1, 1]} : vector<1x128xf32> to vector<1x1xf32>
    %413 = vector.broadcast %412 : vector<1x1xf32> to vector<2x1xf32>
    %414 = arith.addf %410, %413 : vector<2x1xf32>
    %415 = arith.negf %414 : vector<2x1xf32>
    %416 = math.exp %415 : vector<2x1xf32>
    %cst_129 = arith.constant 1.000000e+00 : f32
    %417 = vector.broadcast %cst_129 : f32 to vector<2x1xf32>
    %418 = arith.addf %417, %416 : vector<2x1xf32>
    %419 = arith.divf %417, %418 : vector<2x1xf32>
    %c0_130 = arith.constant 0 : index
    %c0_131 = arith.constant 0 : index
    %420 = vector.load %arg6[%c0_130, %c0_131] : memref<2x1xf32, #tpu.memory_space<vmem>>, vector<2x1xf32>
    tpu.vector_store %arg6[%c0_130, %c0_131], %419 {strides = array<i32>} : memref<2x1xf32, #tpu.memory_space<vmem>>, vector<2x1xf32>,
    return
  }
  func.func @transform_0(%arg0: i32) -> (i32, i32) {
    %c0_i32 = arith.constant 0 : i32
    %c0_i32_0 = arith.constant 0 : i32
    %c0_i32_1 = arith.constant 0 : i32
    return %c0_i32, %c0_i32_0 : i32, i32
  }
  func.func @transform_1(%arg0: i32) -> (i32, i32) {
    %c0_i32 = arith.constant 0 : i32
    %c0_i32_0 = arith.constant 0 : i32
    %c0_i32_1 = arith.constant 0 : i32
    return %c0_i32, %c0_i32_0 : i32, i32
  }
  func.func @transform_2(%arg0: i32) -> (i32, i32) {
    %c0_i32 = arith.constant 0 : i32
    %c0_i32_0 = arith.constant 0 : i32
    %c0_i32_1 = arith.constant 0 : i32
    return %c0_i32, %c0_i32_0 : i32, i32
  }
  func.func @transform_3(%arg0: i32) -> (i32, i32) {
    %c0_i32 = arith.constant 0 : i32
    %c0_i32_0 = arith.constant 0 : i32
    %c0_i32_1 = arith.constant 0 : i32
    return %c0_i32, %c0_i32_0 : i32, i32
  }
  func.func @transform_4(%arg0: i32) -> (i32, i32) {
    %c0_i32 = arith.constant 0 : i32
    %c0_i32_0 = arith.constant 0 : i32
    %c0_i32_1 = arith.constant 0 : i32
    return %c0_i32, %c0_i32_0 : i32, i32
  }
  func.func @transform_5(%arg0: i32) -> (i32, i32) {
    %c0_i32 = arith.constant 0 : i32
    %c0_i32_0 = arith.constant 0 : i32
    %c0_i32_1 = arith.constant 0 : i32
    return %c0_i32, %c0_i32_0 : i32, i32
  }
}

</mosaic_0001>

<bundles_post_ra>
// kernel: forward.1
= control target key start
LH: loop header
LB: loop body
LE: loop exit
PB: predicated region body
PF: predicated region fallthrough
CT: control target
= control target key end

     0   :  { %10 = vsyncpa [#allocation3], 0  ;;  %s7462_s0 = inlined_call_operand.vmem [shape: f32[46,9], index: 0, kind: input, shape index: {}]   ;;  %s7463_s1 = inlined_call_operand.hbm [shape: bf16[2530,128], index: 1, kind: input, shape index: {}]   ;;  %s7464_s2 = inlined_call_operand.hbm [shape: bf16[256,512], index: 2, kind: input, shape index: {}]   ;;  %s7465_s3 = inlined_call_operand.vmem [shape: f32[29,128], index: 3, kind: input, shape index: {}]   ;;  %s7466_s4 = inlined_call_operand.vmem [shape: f32[2,512], index: 4, kind: input, shape index: {}]   ;;  %s7467_s5 = inlined_call_operand.vmem [shape: f32[2,1], index: 5, kind: output, shape index: {}]  }
   0x1   :  { %11 = vsyncpa [#allocation5], 0  ;;  %s6169_s18 = smov [#allocation2]   ;;  %s6121_s22 = scalar_lea.hbm %s7463_s1, 20288 }
   0x2   :  { %s19_s19 = sshll.u32 %s6169_s18, 4  ;;  %p6122_p0 = scmp.ne.s32.totalorder %s7463_s1, %s6121_s22  ;;  %s20_s19 = int_to_ptr.vmem [resolvable:$true] %s19_s19 }
   0x3   :  { %p6125_p1 = scmp.lt.u32.totalorder %s6121_s22, %s7463_s1 }
   0x5   :  { %p6127_p2 = pnand %p6125_p1, %p6122_p0 }
   0x7   :  { %6130 = shalt.err (!%p6127_p2)
}
   0x8   :  { %s6131_s27 = scalar_lea.vmem %s20_s19, 20288  ;;  %p6136_p4 = scmp.lt.s32.totalorder %s20_s19, %s20_s19 }
   0x9   :  { %p6132_p3 = scmp.ne.s32.totalorder %s20_s19, %s6131_s27  ;;  %p6137_p5 = scmp.lt.s32.totalorder %s6131_s27, %s6131_s27 }
   0xb   :  { %p6138_p6 = por %p6137_p5, %p6136_p4 }
   0xd   :  { %p6139_p7 = pnand %p6138_p6, %p6132_p3 }
   0xf   :  { %6142 = shalt.err (!%p6139_p7)
}
  0x10   :  { %s6170_s28 = smov 64   ;;  %s6171_s29 = smov 4  }
  0x11   :  { %25 = dma.hbm_to_vmem [thread:$0]  %s7463_s1, 20288, %s20_s19, [#allocation3], %s6170_s28, %s6170_s28, %s6171_s29  }
  0x12   :  { %s6172_s7 = smov [#allocation4]   ;;  %s6143_s11 = scalar_lea.hbm %s7464_s2, 8192 }
  0x13   :  { %s31_s8 = sshll.u32 %s6172_s7, 4  ;;  %p6144_p8 = scmp.ne.s32.totalorder %s7464_s2, %s6143_s11  ;;  %s32_s8 = int_to_ptr.vmem [resolvable:$true] %s31_s8 }
  0x14   :  { %p6147_p9 = scmp.lt.u32.totalorder %s6143_s11, %s7464_s2 }
  0x16   :  { %p6149_p10 = pnand %p6147_p9, %p6144_p8 }
  0x18   :  { %6152 = shalt.err (!%p6149_p10)
}
  0x19   :  { %s6153_s16 = scalar_lea.vmem %s32_s8, 8192  ;;  %p6158_p12 = scmp.lt.s32.totalorder %s32_s8, %s32_s8 }
  0x1a   :  { %p6154_p11 = scmp.ne.s32.totalorder %s32_s8, %s6153_s16  ;;  %p6159_p13 = scmp.lt.s32.totalorder %s6153_s16, %s6153_s16 }
  0x1c   :  { %p6160_p0 = por %p6159_p13, %p6158_p12 }
  0x1e   :  { %p6161_p1 = pnand %p6160_p0, %p6154_p11 }
  0x20   :  { %6164 = shalt.err (!%p6161_p1)
}
  0x21   :  { %s6173_s1 = smov 256   ;;  %s6174_s17 = smov 16  }
  0x22   :  { %37 = dma.hbm_to_vmem [thread:$0]  %s7464_s2, 8192, %s32_s8, [#allocation5], %s6173_s1, %s6173_s1, %s6174_s17  }
  0x23   :  { %6165 = dma.done.wait [#allocation3], 20288  }
  0x24   :  { %6166 = vsyncadd [#allocation3], 4294947008 }
  0x25   :  { %6167 = dma.done.wait [#allocation5], 8192  }
  0x26   :  { %6168 = vsyncadd [#allocation5], 4294959104  ;;  %v6175_v0 = vmov 0.0   ;;  %vm55_vm0 = vcmask 72704   ;;  %vm62_vm1 = vcmask 1041408   ;;  %vm86_vm2 = vcmask 1046528  }
  0x27   :  { %5231 = vmatprep.subr.bf16.mxu0 %v6175_v0  ;;  %5257 = vmatprep.subr.bf16.mxu1 %v6175_v0  ;;  %vm7469_vm3 = vcmask 1044480   ;;  %v6251_v1 = vld [vmem:[%s7462_s0] sm:$0xff]  ;;  %v6256_v2 = vld [vmem:[%s7462_s0 + $0x8] sm:$0xff]  ;;  %v6261_v3 = vld [vmem:[%s7462_s0 + $0x10] sm:$0xff]  ;;  %vm99_vm4 = vcmask 1045504   ;;  %vm268_vm5 = vcmask 1042432  }
  0x28   :  { %v56_v4 = vsel %vm55_vm0, %v6251_v1, 1.0  ;;  %v57_v5 = vsel %vm55_vm0, %v6256_v2, 1.0  ;;  %v58_v6 = vsel %vm55_vm0, %v6261_v3, 1.0  ;;  %v6272_v7 = vld [vmem:[%s7462_s0 + $0x18] sm:$0xff]  ;;  %vm71_vm6 = vcmask 1040384   ;;  %v6277_v8 = vld [vmem:[%s7462_s0 + $0x20] sm:$0xff] }
  0x29   :  { %v63_v9 = vrot.slane %v56_v4, 6  ;;  %v64_v10 = vrot.slane %v57_v5, 6  ;;  %v66_v11 = vrot.slane %v58_v6, 6  ;;  %v6282_v12 = vld [vmem:[%s7462_s0 + $0x28] sm:$0x3f]  ;;  %v76_v13 = vrot.slane %v6251_v1, 7 }
  0x2a   :  { %v269_v14 = vrot.slane %v58_v6, 5  ;;  %v262_v15 = vsel %vm55_vm0, %v6272_v7, 1.0  ;;  %v6289_v16 = vsel %vm55_vm0, %v6277_v8, 1.0  ;;  %v6293_v17 = vsel %vm55_vm0, %v6282_v12, 1.0  ;;  %v5704_v22 = vld [vmem:[#allocation2 + $0x4c0] sm:$0xff]   ;;  %v5705_v27 = vld [vmem:[#allocation2 + $0x4c8] sm:$0xff]  }
  0x2b   :  { %v65_v18 = vsel %vm62_vm1, %v63_v9, %v64_v10  ;;  %v70_v19 = vsel %vm62_vm1, 0.0, %v63_v9  ;;  %v6298_v20 = vsel %vm62_vm1, %v64_v10, %v66_v11  ;;  %v270_v21 = vrot.slane %v262_v15, 5  ;;  %5232 = vmatpush3.bf16.msra.mxu0 %v5704_v22  ;;  %s6176_s7 = smov 39   ;;  %s6177_s8 = smov 9   ;;  %v5706_v49 = vld [vmem:[#allocation2 + $0x4d0] sm:$0xff]   ;;  %v5707_v58 = vld [vmem:[#allocation2 + $0x4d8] sm:$0xff]  }
  0x2c   :  { %vm7468_vm7 = vcmask 1043456   ;;  %v5442_v23 = vpack.i.bf16 %v65_v18, %v70_v19  ;;  %v114_v24 = vrot.slane %v70_v19, 1  ;;  %v115_v25 = vrot.slane %v65_v18, 1  ;;  %5233 = vmatprep.subr.bf16.mxu0 %v6175_v0  ;;  %s6178_s9 = smov 29   ;;  %s6179_s10 = smov 19  }
  0x2d   :  { %v117_v26 = vrot.slane %v6298_v20, 1  ;;  %v146_v28 = vrot.slane %v70_v19, 3  ;;  %v147_v29 = vrot.slane %v65_v18, 3  ;;  %v149_v30 = vrot.slane %v6298_v20, 3  ;;  %s6180_s11 = smov 59   ;;  %s6181_s12 = smov 49  }
  0x2e   :  { %v129_v31 = vrot.slane %v70_v19, 2  ;;  %5443 = vrot.lane.b32.xlu1 %v5442_v23, %s6176_s7  ;;  %v116_v32 = vsel %vm86_vm2, %v114_v24, %v115_v25  ;;  %v130_v34 = vrot.slane %v65_v18, 2  ;;  %v132_v35 = vrot.slane %v6298_v20, 2  ;;  %s6182_s13 = smov 69   ;;  %s6183_s14 = smov 79  }
  0x2f   :  { %v118_v33 = vsel %vm86_vm2, %v115_v25, %v117_v26  ;;  %v148_v37 = vsel %vm7469_vm3, %v146_v28, %v147_v29  ;;  %v150_v38 = vsel %vm7469_vm3, %v147_v29, %v149_v30  ;;  %v77_v39 = vrot.slane %v6256_v2, 7  ;;  %5234 = vmatpush3.bf16.msra.mxu0 %v5705_v27  ;;  %s6184_s15 = smov 89   ;;  %s6187_s30 = smov 96  }
  0x30   :  { %v5447_v36 = vpack.i.bf16 %v118_v33, %v116_v32  ;;  %v6312_v40 = vpack.i.bf16 %v150_v38, %v148_v37  ;;  %v131_v41 = vsel %vm99_vm4, %v129_v31, %v130_v34  ;;  %v133_v42 = vsel %vm99_vm4, %v130_v34, %v132_v35  ;;  %5235 = vmatprep.subr.bf16.mxu0 %v6175_v0  ;;  %v5709_v37 = vld [vmem:[#allocation2 + $0x4e8] sm:$0xff]   ;;  %s6188_s6 = smov 32  }
  0x31   :  { %v271_v43 = vsel %vm268_vm5, %v269_v14, %v270_v21  ;;  %v5452_v44 = vpack.i.bf16 %v133_v42, %v131_v41  ;;  %v6325_v47 = vsel %vm71_vm6, %v66_v11, 0.0  ;;  %v199_v48 = vrot.slane %v70_v19, 4 }
  0x32   :  { %5448 = vrot.lane.b32.xlu0 %v5447_v36, %s6177_s8  ;;  %v6319_v45 = vsel %vm62_vm1, 0.0, %v271_v43  ;;  %5458 = vrot.lane.b32.xlu1 %v6312_v40, %s6178_s9  ;;  %v134_v50 = vrot.slane %v6325_v47, 2  ;;  %v200_v51 = vrot.slane %v65_v18, 4  ;;  %v202_v52 = vrot.slane %v6298_v20, 4  ;;  %v5708_v18 = vld [vmem:[#allocation2 + $0x4e0] sm:$0xff]  }
  0x33   :  { %v319_v46 = vrot.slane %v6319_v45, 2  ;;  %v272_v53 = vrot.slane %v6289_v16, 5  ;;  %v337_v54 = vrot.slane %v6319_v45, 3  ;;  %v274_v55 = vrot.slane %v6293_v17, 5  ;;  %5236 = vmatpush3.bf16.msra.mxu0 %v5706_v49 }
  0x34   :  { %v78_v56 = vsel %vm71_vm6, %v76_v13, %v77_v39  ;;  %v79_v57 = vrot.slane %v6261_v3, 7  ;;  %v135_v60 = vsel %vm99_vm4, %v132_v35, %v134_v50  ;;  %v201_v62 = vsel %vm7468_vm7, %v199_v48, %v200_v51  ;;  %5237 = vmatprep.subr.bf16.mxu0 %v6175_v0 }
  0x35   :  { %v6338_v59 = vpack.i.bf16 %v319_v46, %v117_v26  ;;  %v6342_v61 = vsel %vm268_vm5, %v270_v21, %v272_v53  ;;  %v203_v63 = vsel %vm7468_vm7, %v200_v51, %v202_v52  ;;  %v6352_v2 = vsel %vm268_vm5, %v272_v53, %v274_v55 }
  0x36   :  { %5453 = vrot.lane.b32.xlu0 %v5452_v44, %s6179_s10  ;;  %5468 = vrot.lane.b32.xlu1 %v5452_v44, %s6180_s11  ;;  %v320_v4 = vrot.slane %v6342_v61, 2  ;;  %v6356_v5 = vrot.slane %v6352_v2, 2  ;;  %v6359_v6 = vsel %vm71_vm6, %v77_v39, %v79_v57  ;;  %v84_v9 = vsel %vm71_vm6, -1e+30, %v76_v13 }
  0x37   :  { %v88_v10 = vrot.slane %v78_v56, 1  ;;  %v6365_v11 = vpack.i.bf16 %v337_v54, %v135_v60  ;;  %v87_v14 = vrot.slane %v84_v9, 1  ;;  %v90_v15 = vrot.slane %v6359_v6, 1  ;;  %5238 = vmatpush3.bf16.msra.mxu0 %v5707_v58 }
  0x38   :  { %v100_v16 = vrot.slane %v84_v9, 2  ;;  %v321_v19 = vsel %vm99_vm4, %v319_v46, %v320_v4  ;;  %v101_v21 = vrot.slane %v78_v56, 2  ;;  %v103_v1 = vrot.slane %v6359_v6, 2  ;;  %5239 = vmatprep.subr.bf16.mxu0 %v6175_v0 }
  0x39   :  { %v338_v13 = vrot.slane %v6342_v61, 3  ;;  %v323_v22 = vsel %vm99_vm4, %v320_v4, %v6356_v5  ;;  %v89_v23 = vsel %vm86_vm2, %v87_v14, %v88_v10  ;;  %v91_v24 = vsel %vm86_vm2, %v88_v10, %v90_v15 }
  0x3a   :  { %5463 = vrot.lane.b32.xlu0 %v5447_v36, %s6181_s12  ;;  %5478 = vrot.lane.b32.xlu1 %v6338_v59, %s6177_s8  ;;  %v340_v25 = vrot.slane %v6352_v2, 3  ;;  %v95_v26 = vmax.f32 %v84_v9, %v89_v23  ;;  %v96_v27 = vmax.f32 %v78_v56, %v91_v24  ;;  %v102_v28 = vsel %vm99_vm4, %v100_v16, %v101_v21 }
  0x3b   :  { %v104_v29 = vsel %vm99_vm4, %v101_v21, %v103_v1  ;;  %v151_v31 = vrot.slane %v6325_v47, 3  ;;  %v356_v32 = vrot.slane %v6319_v45, 4  ;;  %v5482_v33 = vpack.i.bf16 %v203_v63, %v201_v62  ;;  %5240 = vmatpush3.bf16.msra.mxu0 %v5708_v18 }
  0x3c   :  { %v110_v34 = vmax.f32 %v95_v26, %v102_v28  ;;  %v111_v35 = vmax.f32 %v96_v27, %v104_v29  ;;  %v357_v36 = vrot.slane %v6342_v61, 4  ;;  %v6393_v38 = vpack.i.bf16 %v323_v22, %v321_v19  ;;  %5241 = vmatprep.subr.bf16.mxu0 %v6175_v0  ;;  %v5710_v26 = vld [vmem:[#allocation2 + $0x4f0] ss:$0 sps:$4 sm:$0x11]  }
  0x3d   :  { %v359_v39 = vrot.slane %v6352_v2, 4  ;;  %v375_v41 = vrot.slane %v6319_v45, 1  ;;  %v376_v42 = vrot.slane %v6342_v61, 1  ;;  %v341_v43 = vsel %vm7469_vm3, %v338_v13, %v340_v25 }
  0x3e   :  { %5473 = vrot.lane.b32.xlu0 %v6312_v40, %s6182_s13  ;;  %5488 = vrot.lane.b32.xlu1 %v6365_v11, %s6179_s10  ;;  %v339_v40 = vsel %vm7469_vm3, %v337_v54, %v338_v13  ;;  %v378_v44 = vrot.slane %v6352_v2, 1  ;;  %v5492_v46 = vpack.i.bf16 %v111_v35, %v110_v34  ;;  %v152_v49 = vsel %vm7469_vm3, %v149_v30, %v151_v31 }
  0x3f   :  { %v5507_v48 = vpack.i.bf16 %v341_v43, %v339_v40  ;;  %v358_v50 = vsel %vm7468_vm7, %v356_v32, %v357_v36  ;;  %v360_v51 = vsel %vm7468_vm7, %v357_v36, %v359_v39  ;;  %5242 = vmatpush3.bf16.msra.mxu0 %v5709_v37  ;;  %v283_v53 = vrot.slane %v6261_v3, 6 }
  0x40   :  { %v284_v54 = vrot.slane %v6272_v7, 6  ;;  %v286_v56 = vrot.slane %v6277_v8, 6  ;;  %5243 = vmatprep.subr.bf16.mxu0 %v6175_v0  ;;  %v5502_v57 = vpack.i.bf16 %v356_v32, %v152_v49  ;;  %v377_v30 = vsel %vm86_vm2, %v375_v41, %v376_v42 }
  0x41   :  { %v288_v58 = vrot.slane %v6282_v12, 6  ;;  %v5517_v60 = vpack.i.bf16 %v360_v51, %v358_v50  ;;  %v379_v3 = vsel %vm86_vm2, %v376_v42, %v378_v44  ;;  %v5512_v18 = vpack.i.bf16 %v375_v41, %v6298_v20 }
  0x42   :  { %5483 = vrot.lane.b32.xlu0 %v5482_v33, %s6183_s14  ;;  %5498 = vrot.lane.b32.xlu1 %v6393_v38, %s6177_s8  ;;  %v285_v7 = vsel %vm62_vm1, %v283_v53, %v284_v54  ;;  %v287_v8 = vsel %vm62_vm1, %v284_v54, %v286_v56  ;;  %v5527_v19 = vpack.i.bf16 %v379_v3, %v377_v30  ;;  %v6434_v21 = vsel %vm71_vm6, %v274_v55, 0.0  ;;  %v5711_v53 = vld [vmem:[#allocation2 + $0x100] sm:$0xff]  }
  0x43   :  { %v293_v62 = vsel %vm71_vm6, -1e+30, %v285_v7  ;;  %v296_v63 = vrot.slane %v287_v8, 1  ;;  %v307_v4 = vrot.slane %v287_v8, 2  ;;  %v289_v9 = vsel %vm62_vm1, %v286_v56, %v288_v58  ;;  %5258 = vmatpush3.bf16.msra.mxu1 %v5711_v53  ;;  %v5713_v56 = vld [vmem:[#allocation2 + $0x110] sm:$0xff]  }
  0x44   :  { %v295_v10 = vrot.slane %v293_v62, 1  ;;  %v306_v14 = vrot.slane %v293_v62, 2  ;;  %v298_v12 = vrot.slane %v289_v9, 1  ;;  %v309_v16 = vrot.slane %v289_v9, 2  ;;  %5259 = vmatprep.subr.bf16.mxu1 %v6175_v0 }
  0x45   :  { %v204_v55 = vrot.slane %v6325_v47, 4  ;;  %v6185_v31 = vmov -1e+30   ;;  %v428_v33 = vrot.slane %v6319_v45, 5  ;;  %v429_v34 = vrot.slane %v6342_v61, 5 }
  0x46   :  { %5493 = vrot.lane.b32.xlu0 %v5492_v46, %s6184_s15  ;;  %5508 = vrot.lane.b32.xlu1 %v5507_v48, %s6179_s10  ;;  %v297_v13 = vsel %vm86_vm2, %v295_v10, %v296_v63  ;;  %v308_v22 = vsel %vm99_vm4, %v306_v14, %v307_v4  ;;  %v299_v23 = vsel %vm86_vm2, %v296_v63, %v298_v12  ;;  %v6444_v32 = vrot.slane %v6185_v31, 2  ;;  %v6116_v14 = vld [vmem:[%s7462_s0] sm:$0xff] }
  0x47   :  { %v310_v24 = vsel %vm99_vm4, %v307_v4, %v309_v16  ;;  %v303_v27 = vmax.f32 %v293_v62, %v297_v13  ;;  %v304_v28 = vmax.f32 %v287_v8, %v299_v23  ;;  %v342_v35 = vrot.slane %v6434_v21, 3 }
  0x48   :  { %v361_v36 = vrot.slane %v6434_v21, 4  ;;  %v575_v42 = vsel %vm71_vm6, %v5710_v26, 0  ;;  %vm6186_vm8 = vmmov 0   ;;  %v97_v45 = vmax.f32 %v6359_v6, %v90_v15 }
  0x49   :  { %v315_v29 = vmax.f32 %v303_v27, %v308_v22  ;;  %v316_v17 = vmax.f32 %v304_v28, %v310_v24  ;;  %5244 = vmatpush3.bf16.msra.mxu0 %v575_v42  ;;  %5245 = vmatprep.mubr.msk.bf16.mxu0 %vm6186_vm8, %v6175_v0  ;;  %v205_v47 = vsel %vm7468_vm7, %v202_v52, %v204_v55  ;;  %vm230_vm9 = vcmask 154624  }
  0x4a   :  { %5503 = vrot.lane.b32.xlu0 %v5502_v57, %s6178_s9  ;;  %5518 = vrot.lane.b32.xlu1 %v5517_v60, %s6178_s9  ;;  %v5552_v61 = vpack.i.bf16 %v428_v33, %v205_v47  ;;  %v305_v52 = vmax.f32 %v289_v9, %v298_v12  ;;  %v311_v6 = vsel %vm99_vm4, %v309_v16, %v6444_v32  ;;  %vm234_vm10 = vcmask 236544   ;;  %v6115_v9 = vld [vmem:[%s7462_s0 + $0x8] sm:$0xff] }
  0x4b   :  { %v450_v37 = vrot.slane %v315_v29, 1  ;;  %v451_v41 = vrot.slane %v316_v17, 1  ;;  %5273 = vmatprep.mubr.msk.bf16.mxu1 %vm6186_vm8, %v6175_v0  ;;  %v343_v43 = vsel %vm7469_vm3, %v340_v25, %v342_v35  ;;  %vm238_vm11 = vcmask 318464  }
  0x4c   :  { %v317_v40 = vmax.f32 %v305_v52, %v311_v6  ;;  %vm242_vm12 = vcmask 400384   ;;  %vm246_vm13 = vcmask 482304   ;;  %vm250_vm14 = vcmask 564224  }
  0x4d   :  { %v452_v20 = vsel %vm86_vm2, %v450_v37, %v451_v41  ;;  %vm254_vm15 = vcmask 646144   ;;  %vm564_vm3 = vcmask 801792  }
  0x4e   :  { %5513 = vrot.lane.b32.xlu0 %v5512_v18, %s6176_s7  ;;  %5528 = vrot.lane.b32.xlu1 %v5527_v19, %s6176_s7  ;;  %v453_v46 = vrot.slane %v317_v40, 1 }
  0x50   :  { %v454_v49 = vsel %vm86_vm2, %v451_v41, %v453_v46 }
  0x51   :  { %v5572_v51 = vpack.i.bf16 %v453_v46, %v454_v49 }
  0x52   :  { %5523 = vrot.lane.b32.xlu0 %v6338_v59, %s6181_s12  ;;  %5538 = vrot.lane.b32.xlu1 %v6393_v38, %s6181_s12  ;;  %v106_v59 = vsel %vm99_vm4, %v103_v1, %v6444_v32  ;;  %v362_v1 = vsel %vm7468_vm7, %v359_v39, %v361_v36  ;;  %v433_v39 = vrot.slane %v6434_v21, 5  ;;  %vm258_vm7 = vcmask 728064  }
  0x53   :  { %v112_v38 = vmax.f32 %v97_v45, %v106_v59 }
  0x55   :  { %v5562_v15 = vpack.i.bf16 %v450_v37, %v112_v38 }
  0x56   :  { %5533 = vrot.lane.b32.xlu0 %v6365_v11, %s6180_s11  ;;  %5548 = vrot.lane.b32.xlu1 %v5507_v48, %s6180_s11  ;;  %v430_v11 = vsel %vm268_vm5, %v428_v33, %v429_v34  ;;  %v431_v48 = vrot.slane %v6352_v2, 5  ;;  %v5714_v2 = vld [vmem:[#allocation2 + $0x118] sm:$0xff]  }
  0x58   :  { %v432_v25 = vsel %vm268_vm5, %v429_v34, %v431_v48  ;;  %v434_v50 = vsel %vm268_vm5, %v431_v48, %v433_v39 }
  0x59   :  { %v5567_v54 = vpack.i.bf16 %v434_v50, %v432_v25 }
  0x5a   :  { %5543 = vrot.lane.b32.xlu0 %v5502_v57, %s6182_s13  ;;  %5558 = vrot.lane.b32.xlu1 %v5517_v60, %s6182_s13  ;;  %v5716_v57 = vld [vmem:[#allocation2 + $0x128] sm:$0xff]  }
  0x5e   :  { %5553 = vrot.lane.b32.xlu0 %v5552_v61, %s6183_s14  ;;  %437 = vrot.lane.b32.xlu1 %v430_v11, %s6183_s14 }
  0x62   :  { %5563 = vrot.lane.b32.xlu0 %v5562_v15, %s6184_s15  ;;  %457 = vrot.lane.b32.xlu1 %v452_v20, %s6184_s15 }
  0x66   :  { %330 = vrot.lane.b32.xlu0 %v6356_v5, %s6177_s8  ;;  %369 = vrot.lane.b32.xlu1 %v362_v1, %s6178_s9 }
  0x6a   :  { %350 = vrot.lane.b32.xlu0 %v343_v43, %s6179_s10  ;;  %398 = vrot.lane.b32.xlu1 %v6356_v5, %s6181_s12  ;;  %v5712_v5 = vld [vmem:[#allocation2 + $0x108] sm:$0xff]  }
  0x6b   :  { %5260 = vmatpush3.bf16.msra.mxu1 %v5712_v5 }
  0x6c   :  { %5261 = vmatprep.subr.bf16.mxu1 %v6175_v0 }
  0x6e   :  { %386 = vrot.lane.b32.xlu0 %v378_v44, %s6176_s7  ;;  %422 = vrot.lane.b32.xlu1 %v362_v1, %s6182_s13  ;;  %v5715_v44 = vld [vmem:[#allocation2 + $0x120] sm:$0xff]  }
  0x6f   :  { %5262 = vmatpush3.bf16.msra.mxu1 %v5713_v56 }
  0x70   :  { %5263 = vmatprep.subr.bf16.mxu1 %v6175_v0 }
  0x72   :  { %410 = vrot.lane.b32.xlu0 %v343_v43, %s6180_s11  ;;  %5573 = vrot.lane.b32.xlu1 %v5572_v51, %s6184_s15 }
  0x73   :  { %5264 = vmatpush3.bf16.msra.mxu1 %v5714_v2 }
  0x74   :  { %5265 = vmatprep.subr.bf16.mxu1 %v6175_v0 }
  0x76   :  { %5568 = vrot.lane.b32.xlu0 %v5567_v54, %s6183_s14 }
  0x77   :  { %5266 = vmatpush3.bf16.msra.mxu1 %v5715_v44 }
  0x78   :  { %5267 = vmatprep.subr.bf16.mxu1 %v6175_v0 }
  0x7b   :  { %5268 = vmatpush3.bf16.msra.mxu1 %v5716_v57 }
  0x7c   :  { %5269 = vmatprep.subr.bf16.mxu1 %v6175_v0 }
  0xa0   :  { %v5444_v30 = vpop.permute.xlu1 %5443 }
  0xa1   :  { %v5446_v26 = vunpack.i.h.bf16 %v5444_v30  ;;  %v5445_v27 = vunpack.i.l.bf16 %v5444_v30 }
  0xa4   :  { %v5449_v58 = vpop.permute.xlu0 %5448  ;;  %v5459_v60 = vpop.permute.xlu1 %5458 }
  0xa5   :  { %v5451_v3 = vunpack.i.h.bf16 %v5449_v58  ;;  %v5450_v7 = vunpack.i.l.bf16 %v5449_v58  ;;  %v5461_v16 = vunpack.i.h.bf16 %v5459_v60  ;;  %v5460_v18 = vunpack.i.l.bf16 %v5459_v60 }
  0xa7   :  { %v228_v10 = vsel %vm55_vm0, %v6115_v9, %v5451_v3  ;;  %v227_v12 = vsel %vm55_vm0, %v6116_v14, %v5450_v7  ;;  %v6117_v3 = vld [vmem:[%s7462_s0 + $0x10] sm:$0xff] }
  0xa8   :  { %v5454_v8 = vpop.permute.xlu0 %5453  ;;  %v5469_v4 = vpop.permute.xlu1 %5468 }
  0xa9   :  { %v5456_v62 = vunpack.i.h.bf16 %v5454_v8  ;;  %v5455_v63 = vunpack.i.l.bf16 %v5454_v8  ;;  %v5471_v34 = vunpack.i.h.bf16 %v5469_v4  ;;  %v5470_v35 = vunpack.i.l.bf16 %v5469_v4  ;;  %v6118_v4 = vld [vmem:[%s7462_s0 + $0x18] sm:$0xff] }
  0xab   :  { %v231_v19 = vsel %vm230_vm9, %v227_v12, %v5455_v63  ;;  %v232_v21 = vsel %vm230_vm9, %v228_v10, %v5456_v62 }
  0xac   :  { %v5464_v13 = vpop.permute.xlu0 %5463  ;;  %v5479_v22 = vpop.permute.xlu1 %5478  ;;  %v235_v23 = vsel %vm234_vm10, %v231_v19, %v5460_v18  ;;  %v236_v24 = vsel %vm234_vm10, %v232_v21, %v5461_v16 }
  0xad   :  { %v5466_v29 = vunpack.i.h.bf16 %v5464_v13  ;;  %v5465_v17 = vunpack.i.l.bf16 %v5464_v13  ;;  %v239_v31 = vsel %vm238_vm11, %v235_v23, %v5445_v27  ;;  %v240_v33 = vsel %vm238_vm11, %v236_v24, %v5446_v26 }
  0xae   :  { %v5481_v56 = vunpack.i.h.bf16 %v5479_v22  ;;  %v5480_v2 = vunpack.i.l.bf16 %v5479_v22 }
  0xaf   :  { %v243_v37 = vsel %vm242_vm12, %v239_v31, %v5465_v17  ;;  %v244_v41 = vsel %vm242_vm12, %v240_v33, %v5466_v29 }
  0xb0   :  { %v5474_v28 = vpop.permute.xlu0 %5473  ;;  %v5489_v55 = vpop.permute.xlu1 %5488  ;;  %v247_v38 = vsel %vm246_vm13, %v243_v37, %v5470_v35  ;;  %v248_v11 = vsel %vm246_vm13, %v244_v41, %v5471_v34  ;;  %v467_v7 = vsel %vm55_vm0, %v6117_v3, %v5481_v56  ;;  %v229_v8 = vsel %vm55_vm0, %v6117_v3, %v5480_v2 }
  0xb1   :  { %v5476_v42 = vunpack.i.h.bf16 %v5474_v28  ;;  %v5475_v45 = vunpack.i.l.bf16 %v5474_v28  ;;  %v5491_v30 = vunpack.i.h.bf16 %v5489_v55  ;;  %v5490_v58 = vunpack.i.l.bf16 %v5489_v55 }
  0xb3   :  { %v251_v20 = vsel %vm250_vm14, %v247_v38, %v5475_v45  ;;  %v252_v52 = vsel %vm250_vm14, %v248_v11, %v5476_v42  ;;  %v233_v16 = vsel %vm230_vm9, %v229_v8, %v5490_v58  ;;  %v471_v18 = vsel %vm230_vm9, %v467_v7, %v5491_v30 }
  0xb4   :  { %v5484_v36 = vpop.permute.xlu0 %5483  ;;  %v6528_v47 = vpop.permute.xlu1 %5498 }
  0xb5   :  { %v5486_v59 = vunpack.i.h.bf16 %v5484_v36  ;;  %v5485_v61 = vunpack.i.l.bf16 %v5484_v36  ;;  %v5500_v44 = vunpack.i.l.bf16 %v6528_v47 }
  0xb7   :  { %v255_v43 = vsel %vm254_vm15, %v251_v20, %v5485_v61  ;;  %v256_v46 = vsel %vm254_vm15, %v252_v52, %v5486_v59  ;;  %v468_v9 = vsel %vm55_vm0, %v6118_v4, %v5500_v44  ;;  %v5501_v4 = vunpack.i.h.bf16 %v6528_v47 }
  0xb8   :  { %v5494_v15 = vpop.permute.xlu0 %5493  ;;  %v6534_v40 = vpop.permute.xlu1 %5508 }
  0xb9   :  { %v5496_v6 = vunpack.i.h.bf16 %v5494_v15  ;;  %v5495_v1 = vunpack.i.l.bf16 %v5494_v15  ;;  %v5510_v62 = vunpack.i.l.bf16 %v6534_v40 }
  0xbb   :  { %v259_v48 = vsel %vm258_vm7, %v255_v43, %v5495_v1  ;;  %v260_v39 = vsel %vm258_vm7, %v256_v46, %v5496_v6  ;;  %v472_v22 = vsel %vm230_vm9, %v468_v9, %v5510_v62  ;;  %v6119_v9 = vld [vmem:[%s7462_s0 + $0x28] sm:$0x3f] }
  0xbc   :  { %v5504_v49 = vpop.permute.xlu0 %5503  ;;  %v504_v25 = vpack.c.bf16 %v260_v39, %v259_v48  ;;  %v6540_v50 = vpop.permute.xlu1 %5518 }
  0xbd   :  { %v5506_v63 = vunpack.i.h.bf16 %v5504_v49  ;;  %v5505_v10 = vunpack.i.l.bf16 %v5504_v49  ;;  %v5520_v14 = vunpack.i.l.bf16 %v6540_v50  ;;  %v5521_v47 = vunpack.i.h.bf16 %v6540_v50 }
  0xbe   :  { %5246 = vmatmul.mubr.msk.bf16.vlgmr.msra.gmra.mrb[0].mxu0 %vm564_vm3, %v504_v25 }
  0xbf   :  { %5249 = vmatprep.mubr.msk.bf16.mxu0 %vm6186_vm8, %v6175_v0  ;;  %v475_v23 = vsel %vm234_vm10, %v471_v18, %v5506_v63  ;;  %v237_v27 = vsel %vm234_vm10, %v233_v16, %v5505_v10  ;;  %v476_v55 = vsel %vm234_vm10, %v472_v22, %v5520_v14  ;;  %v5511_v16 = vunpack.i.h.bf16 %v6534_v40 }
  0xc0   :  { %v5514_v51 = vpop.permute.xlu0 %5513  ;;  %v6545_v53 = vpop.permute.xlu1 %5528 }
  0xc1   :  { %v5515_v19 = vunpack.i.l.bf16 %v5514_v51  ;;  %v5530_v21 = vunpack.i.l.bf16 %v6545_v53  ;;  %v5516_v24 = vunpack.i.h.bf16 %v5514_v51 }
  0xc3   :  { %v241_v36 = vsel %vm238_vm11, %v237_v27, %v5515_v19  ;;  %v480_v37 = vsel %vm238_vm11, %v476_v55, %v5530_v21  ;;  %v479_v59 = vsel %vm238_vm11, %v475_v23, %v5516_v24  ;;  %v6120_v19 = vld [vmem:[%s7462_s0 + $0x20] sm:$0xff]  ;;  %v5531_v23 = vunpack.i.h.bf16 %v6545_v53 }
  0xc4   :  { %v5524_v5 = vpop.permute.xlu0 %5523  ;;  %v6547_v54 = vpop.permute.xlu1 %5538  ;;  %v469_v21 = vsel %vm55_vm0, %v6120_v19, %v5501_v4 }
  0xc5   :  { %v5540_v26 = vunpack.i.l.bf16 %v6547_v54  ;;  %v5526_v28 = vunpack.i.h.bf16 %v5524_v5  ;;  %v5525_v29 = vunpack.i.l.bf16 %v5524_v5  ;;  %v473_v40 = vsel %vm230_vm9, %v469_v21, %v5511_v16 }
  0xc7   :  { %v484_v61 = vsel %vm242_vm12, %v480_v37, %v5540_v26  ;;  %v245_v15 = vsel %vm242_vm12, %v241_v36, %v5525_v29  ;;  %v483_v20 = vsel %vm242_vm12, %v479_v59, %v5526_v28  ;;  %v5541_v26 = vunpack.i.h.bf16 %v6547_v54 }
  0xc8   :  { %v5534_v57 = vpop.permute.xlu0 %5533  ;;  %v6550_v60 = vpop.permute.xlu1 %5548 }
  0xc9   :  { %v5550_v17 = vunpack.i.l.bf16 %v6550_v60  ;;  %v5536_v31 = vunpack.i.h.bf16 %v5534_v57  ;;  %v5535_v33 = vunpack.i.l.bf16 %v5534_v57  ;;  %v5551_v28 = vunpack.i.h.bf16 %v6550_v60 }
  0xcb   :  { %v488_v52 = vsel %vm246_vm13, %v484_v61, %v5550_v17  ;;  %v249_v6 = vsel %vm246_vm13, %v245_v15, %v5535_v33  ;;  %v487_v1 = vsel %vm246_vm13, %v483_v20, %v5536_v31  ;;  %v477_v17 = vsel %vm234_vm10, %v473_v40, %v5521_v47  ;;  %v5718_v15 = vld [vmem:[#allocation2 + $0x138] sm:$0xff]   ;;  %v4665_v20 = vld [vmem:[%s7465_s3] ss:$0 sm:$0xff] }
  0xcc   :  { %v5544_v12 = vpop.permute.xlu0 %5543  ;;  %v6566_v13 = vpop.permute.xlu1 %5558  ;;  %v481_v31 = vsel %vm238_vm11, %v477_v17, %v5531_v23 }
  0xcd   :  { %v5560_v34 = vunpack.i.l.bf16 %v6566_v13  ;;  %v5546_v41 = vunpack.i.h.bf16 %v5544_v12  ;;  %v5545_v42 = vunpack.i.l.bf16 %v5544_v12  ;;  %v5561_v55 = vunpack.i.h.bf16 %v6566_v13 }
  0xce   :  { %v485_v33 = vsel %vm242_vm12, %v481_v31, %v5541_v26 }
  0xcf   :  { %v492_v43 = vsel %vm250_vm14, %v488_v52, %v5560_v34  ;;  %v253_v48 = vsel %vm250_vm14, %v249_v6, %v5545_v42  ;;  %v491_v39 = vsel %vm250_vm14, %v487_v1, %v5546_v41  ;;  %v489_v36 = vsel %vm246_vm13, %v485_v33, %v5551_v28 }
  0xd0   :  { %v5554_v35 = vpop.permute.xlu0 %5553  ;;  %v438_v45 = vpop.permute.xlu1 %437  ;;  %v493_v41 = vsel %vm250_vm14, %v489_v36, %v5561_v55 }
  0xd1   :  { %v5556_v38 = vunpack.i.h.bf16 %v5554_v35  ;;  %v5555_v11 = vunpack.i.l.bf16 %v5554_v35  ;;  %v496_v2 = vsel %vm254_vm15, %v492_v43, %v438_v45 }
  0xd3   :  { %v257_v5 = vsel %vm254_vm15, %v253_v48, %v5555_v11  ;;  %v495_v56 = vsel %vm254_vm15, %v491_v39, %v5556_v38  ;;  %v5717_v11 = vld [vmem:[#allocation2 + $0x130] sm:$0xff]  }
  0xd4   :  { %v5564_v46 = vpop.permute.xlu0 %5563  ;;  %v458_v51 = vpop.permute.xlu1 %457  ;;  %5270 = vmatpush3.bf16.msra.mxu1 %v5717_v11 }
  0xd5   :  { %v5566_v49 = vunpack.i.h.bf16 %v5564_v46  ;;  %v5565_v25 = vunpack.i.l.bf16 %v5564_v46  ;;  %v500_v30 = vsel %vm258_vm7, %v496_v2, %v458_v51  ;;  %5271 = vmatprep.subr.bf16.mxu1 %v6175_v0 }
  0xd7   :  { %v261_v44 = vsel %vm258_vm7, %v257_v5, %v5565_v25  ;;  %v499_v57 = vsel %vm258_vm7, %v495_v56, %v5566_v49 }
  0xd8   :  { %v503_v58 = vsel %vm86_vm2, %v261_v44, %v499_v57  ;;  %v331_v3 = vpop.permute.xlu0 %330  ;;  %v370_v8 = vpop.permute.xlu1 %369  ;;  %5272 = vmatpush3.bf16.msra.mxu1 %v5718_v15 }
  0xd9   :  { %v505_v7 = vpack.c.bf16 %v500_v30, %v503_v58  ;;  %v470_v10 = vsel %vm55_vm0, %v6119_v9, %v331_v3  ;;  %vm7470_vm0 = vcmask 1044480  }
  0xdb   :  { %5250 = vmatmul.mubr.msk.bf16.gmra.mrb[4].mxu0 %vm564_vm3, %v505_v7 }
  0xdc   :  { %v351_v62 = vpop.permute.xlu0 %350  ;;  %5253 = vmatprep.mubr.msk.bf16.mxu0 %vm6186_vm8, %v6175_v0  ;;  %v399_v63 = vpop.permute.xlu1 %398 }
  0xdd   :  { %v474_v14 = vsel %vm230_vm9, %v470_v10, %v351_v62  ;;  %vm7473_vm9 = vmmov %vm7470_vm0 }
  0xde   :  { %v478_v22 = vsel %vm234_vm10, %v474_v14, %v370_v8  ;;  %vm7474_vm10 = vmmov %vm7470_vm0 }
  0xe0   :  { %v387_v12 = vpop.permute.xlu0 %386  ;;  %v423_v18 = vpop.permute.xlu1 %422 }
  0xe1   :  { %v482_v24 = vsel %vm238_vm11, %v478_v22, %v387_v12  ;;  %vm7475_vm11 = vcmask 1043456  }
  0xe2   :  { %v486_v50 = vsel %vm242_vm12, %v482_v24, %v399_v63  ;;  %vm7476_vm12 = vmmov %vm7475_vm11 }
  0xe4   :  { %v411_v27 = vpop.permute.xlu0 %410  ;;  %v5574_v29 = vpop.permute.xlu1 %5573 }
  0xe5   :  { %v490_v53 = vsel %vm246_vm13, %v486_v50, %v411_v27  ;;  %v5576_v54 = vunpack.i.h.bf16 %v5574_v29  ;;  %v5575_v35 = vunpack.i.l.bf16 %v5574_v29  ;;  %vm7477_vm13 = vmmov %vm7470_vm0 }
  0xe6   :  { %v494_v42 = vsel %vm250_vm14, %v490_v53, %v423_v18  ;;  %vm7478_vm14 = vmmov %vm7470_vm0 }
  0xe8   :  { %v5569_v34 = vpop.permute.xlu0 %5568 }
  0xe9   :  { %v5571_v37 = vunpack.i.h.bf16 %v5569_v34  ;;  %v5570_v60 = vunpack.i.l.bf16 %v5569_v34 }
  0xeb   :  { %v498_v13 = vsel %vm254_vm15, %v494_v42, %v5571_v37  ;;  %v497_v45 = vsel %vm254_vm15, %v493_v41, %v5570_v60  ;;  %vm7479_vm15 = vmmov %vm7475_vm11 }
  0xec   :  { %v501_v59 = vsel %vm258_vm7, %v497_v45, %v5575_v35  ;;  %v502_v61 = vsel %vm258_vm7, %v498_v13, %v5576_v54  ;;  %vm7472_vm7 = vmmov %vm7470_vm0 }
  0xed   :  { %v506_v38 = vpack.c.bf16 %v502_v61, %v501_v59 }
  0xef   :  { %5254 = vmatmul.mubr.msk.bf16.gmra.mrb[8].mxu0 %vm564_vm3, %v506_v38  ;;  %vm7471_vm3 = vmmov %vm7470_vm0 }
 0x191   :  { %v611_v52 = vpop.f32.mrb[0].mxu0 }
 0x192   :  { %v612_v6 = vadd.f32 %v4665_v20, %v611_v52  ;;  %v5247_v1 = vpop.f32.mrb[1].mxu0 }
 0x193   :  { %v614_v43 = vpop.f32.mrb[2].mxu0 }
 0x194   :  { %v634_v46 = vmax.f32 %v612_v6, 0.0  ;;  %v615_v48 = vadd.f32 %v4665_v20, %v614_v43  ;;  %v5248_v39 = vpop.f32.mrb[3].mxu0 }
 0x196   :  { %v801_v49 = vrot.slane %v634_v46, 7  ;;  %v635_v25 = vmax.f32 %v615_v48, 0.0 }
 0x198   :  { %v809_v51 = vsel %vm71_vm6, -1e+30, %v801_v49  ;;  %v6634_v5 = vpack.c.bf16 %v635_v25, %v634_v46  ;;  %v802_v56 = vrot.slane %v635_v25, 7 }
 0x199   :  { %v811_v44 = vrot.slane %v809_v51, 1  ;;  %v822_v57 = vrot.slane %v809_v51, 2 }
 0x19a   :  { %v803_v2 = vsel %vm71_vm6, %v801_v49, %v802_v56  ;;  %5274 = vmatmul.mubr.bf16.vlgmr.msra.gmra.mrb[0].mxu1 %v6634_v5 }
 0x19b   :  { %v812_v30 = vrot.slane %v803_v2, 1  ;;  %v823_v58 = vrot.slane %v803_v2, 2  ;;  %5277 = vmatprep.mubr.msk.bf16.mxu1 %vm6186_vm8, %v6175_v0 }
 0x19d   :  { %v813_v3 = vsel %vm86_vm2, %v811_v44, %v812_v30  ;;  %v824_v7 = vsel %vm99_vm4, %v822_v57, %v823_v58 }
 0x19e   :  { %v819_v8 = vmax.f32 %v809_v51, %v813_v3 }
 0x1a0   :  { %v831_v62 = vmax.f32 %v819_v8, %v824_v7 }
 0x1ae   :  { %v619_v63 = vpop.f32.mrb[4].mxu0 }
 0x1af   :  { %v620_v4 = vadd.f32 %v4665_v20, %v619_v63  ;;  %v5251_v9 = vpop.f32.mrb[5].mxu0 }
 0x1b0   :  { %v622_v10 = vpop.f32.mrb[6].mxu0 }
 0x1b1   :  { %v636_v14 = vmax.f32 %v620_v4, 0.0  ;;  %v623_v12 = vadd.f32 %v4665_v20, %v622_v10  ;;  %v5252_v16 = vpop.f32.mrb[7].mxu0  ;;  %v4676_v4 = vld [vmem:[%s7465_s3 + $0x1] ss:$0 sm:$0xff] }
 0x1b3   :  { %v804_v18 = vrot.slane %v636_v14, 7  ;;  %v637_v19 = vmax.f32 %v623_v12, 0.0  ;;  %v987_v47 = vrot.slane %v636_v14, 6 }
 0x1b5   :  { %v805_v21 = vsel %vm71_vm6, %v802_v56, %v804_v18  ;;  %v6643_v22 = vpack.c.bf16 %v637_v19, %v636_v14  ;;  %v988_v23 = vrot.slane %v637_v19, 6 }
 0x1b6   :  { %v814_v24 = vrot.slane %v805_v21, 1  ;;  %v825_v26 = vrot.slane %v805_v21, 2 }
 0x1b7   :  { %v989_v27 = vsel %vm62_vm1, %v987_v47, %v988_v23  ;;  %5278 = vmatmul.mubr.bf16.gmra.mrb[4].mxu1 %v6643_v22 }
 0x1b8   :  { %5281 = vmatprep.mubr.msk.bf16.mxu1 %vm6186_vm8, %v6175_v0  ;;  %v815_v40 = vsel %vm86_vm2, %v812_v30, %v814_v24  ;;  %v826_v28 = vsel %vm99_vm4, %v823_v58, %v825_v26  ;;  %v821_v29 = vmax.f32 %v805_v21, %v814_v24  ;;  %v827_v55 = vsel %vm99_vm4, %v825_v26, %v6444_v32 }
 0x1b9   :  { %v820_v17 = vmax.f32 %v803_v2, %v815_v40  ;;  %v997_v41 = vsel %vm71_vm6, -1e+30, %v989_v27 }
 0x1ba   :  { %v833_v50 = vmax.f32 %v821_v29, %v827_v55  ;;  %v999_v38 = vrot.slane %v997_v41, 1  ;;  %v1010_v11 = vrot.slane %v997_v41, 2 }
 0x1bb   :  { %v832_v31 = vmax.f32 %v820_v17, %v826_v28 }
 0x1bd   :  { %v1194_v53 = vpack.c.bf16 %v832_v31, %v831_v62 }
 0x1c2   :  { %v627_v33 = vpop.f32.mrb[8].mxu0 }
 0x1c3   :  { %v628_v34 = vadd.f32 %v4665_v20, %v627_v33  ;;  %v5255_v54 = vpop.f32.mrb[9].mxu0 }
 0x1c4   :  { %v630_v35 = vpop.f32.mrb[10].mxu0 }
 0x1c5   :  { %v638_v36 = vmax.f32 %v628_v34, 0.0  ;;  %v631_v37 = vadd.f32 %v4665_v20, %v630_v35  ;;  %v5256_v60 = vpop.f32.mrb[11].mxu0 }
 0x1c7   :  { %v990_v42 = vrot.slane %v638_v36, 6  ;;  %v639_v13 = vmax.f32 %v631_v37, 0.0 }
 0x1c9   :  { %v991_v45 = vsel %vm62_vm1, %v988_v23, %v990_v42  ;;  %v6655_v59 = vpack.c.bf16 %v639_v13, %v638_v36  ;;  %v992_v61 = vrot.slane %v639_v13, 6 }
 0x1ca   :  { %v1000_v15 = vrot.slane %v991_v45, 1  ;;  %v1011_v52 = vrot.slane %v991_v45, 2 }
 0x1cb   :  { %v993_v6 = vsel %vm62_vm1, %v990_v42, %v992_v61  ;;  %5282 = vmatmul.mubr.bf16.gmra.mrb[8].mxu1 %v6655_v59 }
 0x1cc   :  { %v1002_v1 = vrot.slane %v993_v6, 1  ;;  %v1013_v20 = vrot.slane %v993_v6, 2  ;;  %1551 = vmatprep.mubr.bf16.mxu1 %v1194_v53  ;;  %v1001_v43 = vsel %vm86_vm2, %v999_v38, %v1000_v15  ;;  %v1012_v46 = vsel %vm99_vm4, %v1010_v11, %v1011_v52 }
 0x1cd   :  { %v1007_v48 = vmax.f32 %v997_v41, %v1001_v43 }
 0x1ce   :  { %v1003_v39 = vsel %vm86_vm2, %v1000_v15, %v1002_v1  ;;  %v1014_v49 = vsel %vm99_vm4, %v1011_v52, %v1013_v20  ;;  %v1009_v25 = vmax.f32 %v993_v6, %v1002_v1  ;;  %v1015_v51 = vsel %vm99_vm4, %v1013_v20, %v6444_v32 }
 0x1cf   :  { %v1008_v56 = vmax.f32 %v991_v45, %v1003_v39  ;;  %v1019_v2 = vmax.f32 %v1007_v48, %v1012_v46  ;;  %v1054_v20 = vrot.slane %v6175_v0, 3 }
 0x1d0   :  { %v1021_v44 = vmax.f32 %v1009_v25, %v1015_v51 }
 0x1d1   :  { %v1020_v57 = vmax.f32 %v1008_v56, %v1014_v49  ;;  %v1156_v30 = vrot.slane %v1019_v2, 1 }
 0x1d2   :  { %v6665_v58 = vrot.slane %v1021_v44, 1 }
 0x1d3   :  { %v1157_v3 = vrot.slane %v1020_v57, 1  ;;  %v6668_v7 = vsel %vm86_vm2, %v833_v50, %v1156_v30 }
 0x1d5   :  { %v6671_v8 = vsel %vm86_vm2, %v1156_v30, %v1157_v3  ;;  %v6675_v62 = vsel %vm86_vm2, %v1157_v3, %v6665_v58 }
 0x1d6   :  { %v1197_v32 = vpack.c.bf16 %v6671_v8, %v6668_v7  ;;  %v1200_v63 = vpack.c.bf16 %v6665_v58, %v6675_v62 }
 0x26d   :  { %v746_v9 = vpop.f32.mrb[0].mxu1 }
 0x26e   :  { %v747_v10 = vadd.f32 %v4676_v4, %v746_v9  ;;  %v5275_v14 = vpop.f32.mrb[1].mxu1 }
 0x26f   :  { %v749_v12 = vpop.f32.mrb[2].mxu1 }
 0x270   :  { %v750_v16 = vadd.f32 %v4676_v4, %v749_v12  ;;  %v5276_v18 = vpop.f32.mrb[3].mxu1  ;;  %v772_v19 = vrot.slane %v747_v10, 7  ;;  %v781_v21 = vrot.slane %v747_v10, 6 }
 0x272   :  { %v773_v47 = vrot.slane %v750_v16, 7  ;;  %v782_v23 = vrot.slane %v750_v16, 6  ;;  %v6697_v42 = vsel %vm71_vm6, 0.0, %v772_v19 }
 0x273   :  { %v835_v15 = vrot.slane %v6697_v42, 1  ;;  %v850_v52 = vrot.slane %v6697_v42, 2 }
 0x274   :  { %v6685_v24 = vsel %vm71_vm6, %v772_v19, %v773_v47  ;;  %v783_v26 = vsel %vm62_vm1, %v781_v21, %v782_v23 }
 0x275   :  { %v5577_v27 = vpack.i.bf16 %v783_v26, %v781_v21  ;;  %v836_v13 = vrot.slane %v6685_v24, 1  ;;  %v851_v1 = vrot.slane %v6685_v24, 2 }
 0x277   :  { %5578 = vrot.lane.b32.xlu0 %v5577_v27, %s6187_s30  ;;  %v837_v25 = vsel %vm86_vm2, %v835_v15, %v836_v13  ;;  %v5722_v15 = vld [vmem:[#allocation2 + $0x8] sm:$0xff]  }
 0x28a   :  { %v754_v40 = vpop.f32.mrb[4].mxu1 }
 0x28b   :  { %v755_v28 = vadd.f32 %v4676_v4, %v754_v40  ;;  %v5279_v29 = vpop.f32.mrb[5].mxu1 }
 0x28c   :  { %v757_v17 = vpop.f32.mrb[6].mxu1 }
 0x28d   :  { %v775_v55 = vrot.slane %v755_v28, 7  ;;  %v784_v50 = vrot.slane %v755_v28, 6  ;;  %v758_v31 = vadd.f32 %v4676_v4, %v757_v17  ;;  %v5280_v53 = vpop.f32.mrb[7].mxu1  ;;  %v965_v33 = vrot.slane %v755_v28, 5 }
 0x28f   :  { %v6690_v34 = vsel %vm71_vm6, %v773_v47, %v775_v55  ;;  %v957_v54 = vrot.slane %v758_v31, 6  ;;  %v966_v35 = vrot.slane %v758_v31, 5  ;;  %v785_v36 = vsel %vm62_vm1, %v782_v23, %v784_v50 }
 0x290   :  { %v5582_v37 = vpack.i.bf16 %v784_v50, %v785_v36  ;;  %v838_v49 = vrot.slane %v6690_v34, 1  ;;  %v853_v51 = vrot.slane %v6690_v34, 2  ;;  %v855_v55 = vrot.slane %v6175_v0, 2 }
 0x291   :  { %v958_v60 = vsel %vm62_vm1, %v784_v50, %v957_v54  ;;  %v967_v41 = vsel %vm268_vm5, %v965_v33, %v966_v35  ;;  %v852_v31 = vsel %vm99_vm4, %v850_v52, %v851_v1  ;;  %v5723_v52 = vld [vmem:[#allocation2 + $0x50] sm:$0xff]  }
 0x292   :  { %5583 = vrot.lane.b32.xlu1 %v5582_v37, %s6187_s30  ;;  %v6701_v61 = vsel %vm71_vm6, 0.0, %v958_v60  ;;  %v839_v19 = vsel %vm86_vm2, %v836_v13, %v838_v49  ;;  %v854_v27 = vsel %vm99_vm4, %v851_v1, %v853_v51  ;;  %v5725_v1 = vld [vmem:[#allocation2 + $0x58] sm:$0xff]  }
 0x293   :  { %v1032_v56 = vrot.slane %v6701_v61, 2  ;;  %v1049_v2 = vrot.slane %v6701_v61, 3  ;;  %v1023_v12 = vrot.slane %v6701_v61, 1  ;;  %v5597_v17 = vpack.i.bf16 %v839_v19, %v837_v25  ;;  %v5732_v25 = vld [vmem:[#allocation2 + $0x30] sm:$0xff]  }
 0x295   :  { %v5607_v60 = vpack.i.bf16 %v1032_v56, %v838_v49  ;;  %v5731_v49 = vld [vmem:[#allocation2 + $0x70] sm:$0xff]  }
 0x29e   :  { %v762_v45 = vpop.f32.mrb[8].mxu1 }
 0x29f   :  { %v763_v38 = vadd.f32 %v4676_v4, %v762_v45  ;;  %v5283_v11 = vpop.f32.mrb[9].mxu1  ;;  %v5719_v45 = vld [vmem:[#allocation2 + $0x40] sm:$0xff]  }
 0x2a0   :  { %v765_v6 = vpop.f32.mrb[10].mxu1  ;;  %v5721_v11 = vld [vmem:[#allocation2 + $0x48] sm:$0xff]   ;;  %4969 = vmatprep.subr.bf16.mxu0 %v5719_v45 }
 0x2a1   :  { %v959_v43 = vrot.slane %v763_v38, 6  ;;  %v968_v46 = vrot.slane %v763_v38, 5  ;;  %v766_v48 = vadd.f32 %v4676_v4, %v765_v6  ;;  %v5284_v39 = vpop.f32.mrb[11].mxu1  ;;  %v5720_v38 = vld [vmem:[#allocation2] sm:$0xff]   ;;  %v5724_v6 = vld [vmem:[#allocation2 + $0x10] sm:$0xff]  }
 0x2a2   :  { %4970 = vmatpush3.bf16.msra.mxu0 %v5720_v38  ;;  %v5730_v39 = vld [vmem:[#allocation2 + $0x28] sm:$0xff]  }
 0x2a3   :  { %v960_v44 = vsel %vm62_vm1, %v957_v54, %v959_v43  ;;  %v961_v57 = vrot.slane %v766_v48, 6  ;;  %v970_v30 = vrot.slane %v766_v48, 5  ;;  %v969_v3 = vsel %vm268_vm5, %v966_v35, %v968_v46  ;;  %4971 = vmatprep.subr.bf16.mxu0 %v5721_v11  ;;  %v5729_v48 = vld [vmem:[#allocation2 + $0x68] sm:$0xff]  }
 0x2a4   :  { %v1024_v9 = vrot.slane %v960_v44, 1  ;;  %v1033_v10 = vrot.slane %v960_v44, 2  ;;  %v5587_v4 = vpack.i.bf16 %v969_v3, %v967_v41  ;;  %v1050_v14 = vrot.slane %v960_v44, 3  ;;  %v5736_v44 = vld [vmem:[#allocation2 + $0x80] sm:$0xff]  }
 0x2a5   :  { %v6716_v16 = vsel %vm62_vm1, %v959_v43, %v961_v57  ;;  %v971_v18 = vsel %vm268_vm5, %v968_v46, %v970_v30  ;;  %v5602_v35 = vpack.i.bf16 %v854_v27, %v852_v31  ;;  %v856_v41 = vsel %vm99_vm4, %v853_v51, %v855_v55  ;;  %v5727_v43 = vld [vmem:[#allocation2 + $0x60] sm:$0xff]   ;;  %v5733_v51 = vld [vmem:[#allocation2 + $0x78] sm:$0xff]   ;;  %v5737_v57 = vld [vmem:[#allocation2 + $0xc8] sm:$0xff]  }
 0x2a6   :  { %v1026_v21 = vrot.slane %v6716_v16, 1  ;;  %5588 = vrot.lane.b32.xlu0 %v5587_v4, %s6187_s30  ;;  %v5592_v47 = vpack.i.bf16 %v970_v30, %v971_v18  ;;  %v6723_v23 = vsel %vm99_vm4, %v1032_v56, %v1033_v10  ;;  %v6726_v26 = vsel %vm7470_vm0, %v1049_v2, %v1050_v14  ;;  %4972 = vmatpush3.bf16.msra.mxu0 %v5722_v15  ;;  %v5728_v46 = vld [vmem:[#allocation2 + $0x20] sm:$0xff]   ;;  %v5734_v56 = vld [vmem:[#allocation2 + $0x38] sm:$0xff]   ;;  %v5740_v27 = vld [vmem:[#allocation2 + $0x90] sm:$0xff]  }
 0x2a7   :  { %v1052_v40 = vrot.slane %v6716_v16, 3  ;;  %v1035_v28 = vrot.slane %v6716_v16, 2  ;;  %v6734_v29 = vsel %vm86_vm2, %v1023_v12, %v1024_v9  ;;  %v5612_v13 = vpack.i.bf16 %v1049_v2, %v856_v41  ;;  %4973 = vmatprep.subr.bf16.mxu0 %v5723_v52  ;;  %v5735_v2 = vld [vmem:[#allocation2 + $0xc0] sm:$0xff]   ;;  %v5748_v41 = vld [vmem:[#allocation2 + $0xb0] sm:$0xff]   ;;  %vm7480_vm0 = vmmov %vm7475_vm11 }
 0x2a8   :  { %5593 = vrot.lane.b32.xlu1 %v5592_v47, %s6187_s30  ;;  %v6741_v50 = vsel %vm86_vm2, %v1024_v9, %v1026_v21  ;;  %5003 = vmatprep.subr.bf16.mxu1 %v5735_v2  ;;  %v5743_v55 = vld [vmem:[#allocation2 + $0xe0] sm:$0xff]  }
 0x2a9   :  { %v6745_v53 = vsel %vm7471_vm3, %v1050_v14, %v1052_v40  ;;  %v6748_v33 = vsel %vm7472_vm7, %v1052_v40, %v1054_v20  ;;  %v1036_v54 = vsel %vm99_vm4, %v1033_v10, %v1035_v28  ;;  %v5726_v20 = vld [vmem:[#allocation2 + $0x18] sm:$0xff]   ;;  %5004 = vmatpush3.bf16.msra.mxu1 %v5736_v44  ;;  %v5738_v10 = vld [vmem:[#allocation2 + $0x88] sm:$0xff]   ;;  %v5739_v14 = vld [vmem:[#allocation2 + $0xd0] sm:$0xff]  }
 0x2aa   :  { %5598 = vrot.lane.b32.xlu0 %v5597_v17, %s6188_s6  ;;  %v5677_v36 = vpack.i.bf16 %v6748_v33, %v6745_v53  ;;  %v6754_v37 = vpack.i.bf16 %v1035_v28, %v1036_v54  ;;  %4974 = vmatpush3.bf16.msra.mxu0 %v5724_v6  ;;  %v5741_v40 = vld [vmem:[#allocation2 + $0xd8] sm:$0xff]   ;;  %v5744_v31 = vld [vmem:[#allocation2 + $0xa0] sm:$0xff]   ;;  %v5745_v54 = vld [vmem:[#allocation2 + $0xe8] sm:$0xff]  }
 0x2ab   :  { %4975 = vmatprep.subr.bf16.mxu0 %v5725_v1  ;;  %5005 = vmatprep.subr.bf16.mxu1 %v5737_v57  ;;  %v5742_v17 = vld [vmem:[#allocation2 + $0x98] sm:$0xff]   ;;  %vm7481_vm7 = vmmov %vm7471_vm3 }
 0x2ac   :  { %5603 = vrot.lane.b32.xlu1 %v5602_v35, %s6170_s28  ;;  %v5746_v35 = vld [vmem:[#allocation2 + $0xa8] sm:$0xff]   ;;  %v5749_v1 = vld [vmem:[#allocation2 + $0xf8] sm:$0xff]  }
 0x2ad   :  { %5006 = vmatpush3.bf16.msra.mxu1 %v5738_v10 }
 0x2ae   :  { %5608 = vrot.lane.b32.xlu0 %v5607_v60, %s6188_s6  ;;  %4976 = vmatpush3.bf16.msra.mxu0 %v5726_v20  ;;  %v5747_v60 = vld [vmem:[#allocation2 + $0xf0] sm:$0xff]   ;;  %v5750_v20 = vld [vmem:[#allocation2 + $0xb8] sm:$0xff]  }
 0x2af   :  { %4977 = vmatprep.subr.bf16.mxu0 %v5727_v43  ;;  %5007 = vmatprep.subr.bf16.mxu1 %v5739_v14 }
 0x2b0   :  { %5613 = vrot.lane.b32.xlu1 %v5612_v13, %s6170_s28 }
 0x2b1   :  { %5008 = vmatpush3.bf16.msra.mxu1 %v5740_v27 }
 0x2b2   :  { %4978 = vmatpush3.bf16.msra.mxu0 %v5728_v46  ;;  %5009 = vmatprep.subr.bf16.mxu1 %v5741_v40 }
 0x2b3   :  { %4979 = vmatprep.subr.bf16.mxu0 %v5729_v48 }
 0x2b5   :  { %5010 = vmatpush3.bf16.msra.mxu1 %v5742_v17 }
 0x2b6   :  { %4980 = vmatpush3.bf16.msra.mxu0 %v5730_v39  ;;  %5011 = vmatprep.subr.bf16.mxu1 %v5743_v55 }
 0x2b7   :  { %4981 = vmatprep.subr.bf16.mxu0 %v5731_v49 }
 0x2b9   :  { %5012 = vmatpush3.bf16.msra.mxu1 %v5744_v31 }
 0x2ba   :  { %4982 = vmatpush3.bf16.msra.mxu0 %v5732_v25  ;;  %5013 = vmatprep.subr.bf16.mxu1 %v5745_v54 }
 0x2bb   :  { %4983 = vmatprep.subr.bf16.mxu0 %v5733_v51 }
 0x2bd   :  { %5014 = vmatpush3.bf16.msra.mxu1 %v5746_v35 }
 0x2be   :  { %4984 = vmatpush3.bf16.msra.mxu0 %v5734_v56  ;;  %5015 = vmatprep.subr.bf16.mxu1 %v5747_v60 }
 0x2bf   :  { %5285 = vmatprep.subr.bf16.mxu0 %v6175_v0 }
 0x2c1   :  { %5016 = vmatpush3.bf16.msra.mxu1 %v5748_v41 }
 0x2c2   :  { %5017 = vmatprep.subr.bf16.mxu1 %v5749_v1 }
 0x2c5   :  { %5018 = vmatpush3.bf16.msra.mxu1 %v5750_v20 }
 0x2c6   :  { %5313 = vmatprep.subr.bf16.mxu1 %v6175_v0 }
 0x2e9   :  { %v5579_v30 = vpop.permute.xlu0 %5578 }
 0x2ea   :  { %v6761_v3 = vunpack.i.h.bf16 %v5579_v30  ;;  %v5580_v9 = vunpack.i.l.bf16 %v5579_v30 }
 0x2ec   :  { %v796_v4 = vsel %vm62_vm1, 0.0, %v5580_v9  ;;  %v877_v47 = vrot.slane %v6761_v3, 1  ;;  %v902_v45 = vrot.slane %v6761_v3, 3  ;;  %v886_v38 = vrot.slane %v6761_v3, 2 }
 0x2ed   :  { %v876_v18 = vrot.slane %v796_v4, 1  ;;  %v5617_v19 = vpack.i.bf16 %v6761_v3, %v796_v4  ;;  %v901_v52 = vrot.slane %v796_v4, 3  ;;  %v885_v6 = vrot.slane %v796_v4, 2 }
 0x2ee   :  { %v917_v25 = vrot.slane %v796_v4, 4  ;;  %v918_v51 = vrot.slane %v6761_v3, 4 }
 0x2ef   :  { %5618 = vrot.lane.b32.xlu0 %v5617_v19, %s6187_s30  ;;  %v6768_v28 = vsel %vm86_vm2, %v876_v18, %v877_v47  ;;  %v903_v2 = vsel %vm7473_vm9, %v901_v52, %v902_v45  ;;  %v887_v57 = vsel %vm99_vm4, %v885_v6, %v886_v38  ;;  %vm7482_vm9 = vmmov %vm7480_vm0 }
 0x2f0   :  { %v919_v19 = vsel %vm7476_vm12, %v917_v25, %v918_v51  ;;  %vm941_vm12 = vcmask 785408  }
 0x304   :  { %v5584_v13 = vpop.permute.xlu1 %5583 }
 0x305   :  { %v5586_v11 = vunpack.i.h.bf16 %v5584_v13  ;;  %v6772_v15 = vunpack.i.l.bf16 %v5584_v13 }
 0x307   :  { %v797_v43 = vsel %vm71_vm6, %v5586_v11, 0.0  ;;  %v904_v46 = vrot.slane %v6772_v15, 3  ;;  %v888_v48 = vrot.slane %v6772_v15, 2  ;;  %v920_v39 = vrot.slane %v6772_v15, 4 }
 0x308   :  { %v890_v49 = vrot.slane %v797_v43, 2  ;;  %v879_v56 = vrot.slane %v6772_v15, 1  ;;  %v906_v14 = vrot.slane %v797_v43, 3 }
 0x309   :  { %v905_v44 = vsel %vm7474_vm10, %v902_v45, %v904_v46  ;;  %v889_v30 = vsel %vm99_vm4, %v886_v38, %v888_v48  ;;  %v921_v3 = vsel %vm7475_vm11, %v918_v51, %v920_v39  ;;  %v922_v38 = vrot.slane %v797_v43, 4  ;;  %vm7483_vm10 = vmmov %vm7480_vm0 }
 0x30a   :  { %v5627_v9 = vpack.i.bf16 %v905_v44, %v903_v2  ;;  %v5622_v10 = vpack.i.bf16 %v889_v30, %v887_v57  ;;  %v891_v4 = vsel %vm99_vm4, %v888_v48, %v890_v49  ;;  %v6790_v18 = vsel %vm86_vm2, %v877_v47, %v879_v56 }
 0x30b   :  { %v5637_v27 = vpack.i.bf16 %v891_v4, %v6723_v23  ;;  %v5632_v40 = vpack.i.bf16 %v921_v3, %v919_v19  ;;  %v907_v17 = vsel %vm7477_vm13, %v904_v46, %v906_v14  ;;  %v923_v48 = vsel %vm7479_vm15, %v920_v39, %v922_v38 }
 0x30c   :  { %5628 = vrot.lane.b32.xlu0 %v5627_v9, %s6170_s28  ;;  %5623 = vrot.lane.b32.xlu1 %v5622_v10, %s6188_s6  ;;  %v5642_v55 = vpack.i.bf16 %v907_v17, %v6726_v26  ;;  %vm933_vm11 = vcmask 261120  }
 0x310   :  { %5638 = vrot.lane.b32.xlu0 %v5637_v27, %s6188_s6  ;;  %5633 = vrot.lane.b32.xlu1 %v5632_v40, %s6187_s30 }
 0x314   :  { %5643 = vrot.lane.b32.xlu0 %v5642_v55, %s6170_s28 }
 0x318   :  { %v5589_v47 = vpop.permute.xlu0 %5588 }
 0x319   :  { %v5591_v31 = vunpack.i.h.bf16 %v5589_v47  ;;  %v5590_v54 = vunpack.i.l.bf16 %v5589_v47 }
 0x31a   :  { %v5594_v60 = vpop.permute.xlu1 %5593 }
 0x31b   :  { %v6802_v35 = vsel %vm62_vm1, 0.0, %v5590_v54  ;;  %v1097_v13 = vrot.slane %v5591_v31, 3  ;;  %v1070_v45 = vrot.slane %v5591_v31, 1  ;;  %v5596_v52 = vunpack.i.h.bf16 %v5594_v60 }
 0x31c   :  { %v1069_v23 = vrot.slane %v6802_v35, 1  ;;  %v1096_v41 = vrot.slane %v6802_v35, 3  ;;  %v1134_v26 = vrot.slane %v6802_v35, 5  ;;  %v1135_v20 = vrot.slane %v5591_v31, 5  ;;  %v5599_v33 = vpop.permute.xlu0 %5598 }
 0x31d   :  { %v1115_v46 = vrot.slane %v6802_v35, 4  ;;  %v6813_v49 = vunpack.i.l.bf16 %v5594_v60  ;;  %v1116_v51 = vrot.slane %v5591_v31, 4  ;;  %v983_v44 = vsel %vm71_vm6, %v5596_v52, 0.0 }
 0x31e   :  { %v5647_v11 = vpack.i.bf16 %v1069_v23, %v6772_v15  ;;  %v1098_v6 = vsel %vm7478_vm14, %v1096_v41, %v1097_v13  ;;  %v1071_v1 = vsel %vm86_vm2, %v1069_v23, %v1070_v45  ;;  %v1136_v2 = vsel %vm268_vm5, %v1134_v26, %v1135_v20 }
 0x31f   :  { %v5657_v25 = vpack.i.bf16 %v1098_v6, %v1096_v41  ;;  %v5652_v43 = vpack.i.bf16 %v923_v48, %v1071_v1  ;;  %v1117_v57 = vsel %vm7480_vm0, %v1115_v46, %v1116_v51  ;;  %v1086_v30 = vrot.slane %v6802_v35, 2  ;;  %v5604_v6 = vpop.permute.xlu1 %5603 }
 0x320   :  { %5648 = vrot.lane.b32.xlu1 %v5647_v11, %s6187_s30  ;;  %v5672_v9 = vpack.i.bf16 %v1136_v2, %v1134_v26  ;;  %v5662_v10 = vpack.i.bf16 %v1117_v57, %v1115_v46  ;;  %v1099_v39 = vrot.slane %v6813_v49, 3  ;;  %v1101_v14 = vrot.slane %v983_v44, 3  ;;  %v5609_v1 = vpop.permute.xlu0 %5608 }
 0x321   :  { %5658 = vrot.lane.b32.xlu0 %v5657_v25, %s6188_s6  ;;  %v1072_v4 = vrot.slane %v6813_v49, 1  ;;  %v1087_v3 = vrot.slane %v5591_v31, 2  ;;  %v1120_v19 = vrot.slane %v983_v44, 4  ;;  %v1089_v27 = vrot.slane %v6813_v49, 2 }
 0x322   :  { %v1139_v40 = vrot.slane %v983_v44, 5  ;;  %v1100_v17 = vsel %vm7471_vm3, %v1097_v13, %v1099_v39  ;;  %v1137_v55 = vrot.slane %v6813_v49, 5  ;;  %v1102_v54 = vsel %vm7481_vm7, %v1099_v39, %v1101_v14 }
 0x323   :  { %v6831_v47 = vsel %vm99_vm4, %v1086_v30, %v1087_v3  ;;  %v1073_v60 = vsel %vm86_vm2, %v1070_v45, %v1072_v4  ;;  %v1118_v23 = vrot.slane %v6813_v49, 4  ;;  %v6839_v31 = vsel %vm99_vm4, %v1087_v3, %v1089_v27 }
 0x324   :  { %5653 = vrot.lane.b32.xlu1 %v5652_v43, %s6187_s30  ;;  %v5687_v41 = vpack.i.bf16 %v1102_v54, %v1100_v17  ;;  %v5682_v13 = vpack.i.bf16 %v1072_v4, %v1073_v60  ;;  %v1138_v38 = vsel %vm268_vm5, %v1135_v20, %v1137_v55  ;;  %v1140_v45 = vsel %vm268_vm5, %v1137_v55, %v1139_v40 }
 0x325   :  { %5673 = vrot.lane.b32.xlu0 %v5672_v9, %s6187_s30  ;;  %v1119_v11 = vsel %vm7482_vm9, %v1116_v51, %v1118_v23  ;;  %v1121_v52 = vsel %vm7483_vm10, %v1118_v23, %v1120_v19  ;;  %v5697_v26 = vpack.i.bf16 %v1140_v45, %v1138_v38  ;;  %v5606_v20 = vunpack.i.h.bf16 %v5604_v6 }
 0x326   :  { %v5692_v53 = vpack.i.bf16 %v1121_v52, %v1119_v11  ;;  %v5605_v46 = vunpack.i.l.bf16 %v5604_v6  ;;  %vm937_vm5 = vcmask 523264   ;;  %v5611_v11 = vunpack.i.h.bf16 %v5609_v1 }
 0x328   :  { %5663 = vrot.lane.b32.xlu1 %v5662_v10, %s6170_s28 }
 0x329   :  { %5678 = vrot.lane.b32.xlu0 %v5677_v36, %s6170_s28  ;;  %v5601_v36 = vunpack.i.h.bf16 %v5599_v33 }
 0x32b   :  { %v935_v48 = vsel %vm933_vm11, %v6685_v24, %v5601_v36  ;;  %v5614_v24 = vpop.permute.xlu1 %5613 }
 0x32c   :  { %5668 = vrot.lane.b32.xlu1 %v6754_v37, %s6188_s6  ;;  %v5600_v37 = vunpack.i.l.bf16 %v5599_v33  ;;  %v939_v44 = vsel %vm937_vm5, %v935_v48, %v5606_v20  ;;  %v5616_v52 = vunpack.i.h.bf16 %v5614_v24  ;;  %v1165_v33 = vsel %vm933_vm11, %v1023_v12, %v5611_v11 }
 0x32d   :  { %5688 = vrot.lane.b32.xlu0 %v5687_v41, %s6188_s6 }
 0x32e   :  { %v934_v25 = vsel %vm933_vm11, %v6697_v42, %v5600_v37  ;;  %v1169_v7 = vsel %vm937_vm5, %v1165_v33, %v5616_v52 }
 0x32f   :  { %v938_v57 = vsel %vm937_vm5, %v934_v25, %v5605_v46 }
 0x330   :  { %5683 = vrot.lane.b32.xlu1 %v5682_v13, %s6187_s30 }
 0x331   :  { %5698 = vrot.lane.b32.xlu0 %v5697_v26, %s6187_s30  ;;  %v5615_v26 = vunpack.i.l.bf16 %v5614_v24 }
 0x334   :  { %5693 = vrot.lane.b32.xlu1 %v5692_v53, %s6170_s28 }
 0x361   :  { %v5619_v43 = vpop.permute.xlu0 %5618 }
 0x362   :  { %v5621_v51 = vunpack.i.h.bf16 %v5619_v43  ;;  %v5620_v2 = vunpack.i.l.bf16 %v5619_v43 }
 0x364   :  { %v942_v9 = vsel %vm941_vm12, %v938_v57, %v5620_v2  ;;  %v943_v10 = vsel %vm941_vm12, %v939_v44, %v5621_v51 }
 0x365   :  { %v1192_v39 = vpack.c.bf16 %v943_v10, %v942_v9 }
 0x367   :  { %1494 = vmatprep.mubr.bf16.mxu0 %v1192_v39 }
 0x368   :  { %1495 = vmatmul.mubr.bf16.vlgmr.msra.gmra.mrb[12].mxu0 %v6634_v5 }
 0x37e   :  { %v5629_v14 = vpop.permute.xlu0 %5628  ;;  %v5624_v42 = vpop.permute.xlu1 %5623 }
 0x37f   :  { %v5626_v4 = vunpack.i.h.bf16 %v5624_v42  ;;  %v5625_v3 = vunpack.i.l.bf16 %v5624_v42  ;;  %v5631_v19 = vunpack.i.h.bf16 %v5629_v14  ;;  %v5630_v40 = vunpack.i.l.bf16 %v5629_v14 }
 0x381   :  { %v946_v17 = vsel %vm933_vm11, %v6790_v18, %v5626_v4  ;;  %v945_v55 = vsel %vm933_vm11, %v6768_v28, %v5625_v3  ;;  %v5610_v28 = vunpack.i.l.bf16 %v5609_v1 }
 0x382   :  { %v5634_v54 = vpop.permute.xlu1 %5633  ;;  %v948_v41 = vsel %vm937_vm5, %v945_v55, %v5630_v40  ;;  %v949_v5 = vsel %vm937_vm5, %v946_v17, %v5631_v19  ;;  %v5639_v18 = vpop.permute.xlu0 %5638 }
 0x383   :  { %v5636_v60 = vunpack.i.h.bf16 %v5634_v54  ;;  %v5635_v23 = vunpack.i.l.bf16 %v5634_v54  ;;  %v936_v36 = vsel %vm933_vm11, %v6690_v34, %v5610_v28  ;;  %v5640_v6 = vunpack.i.l.bf16 %v5639_v18 }
 0x384   :  { %v940_v8 = vsel %vm937_vm5, %v936_v36, %v5615_v26  ;;  %v5641_v44 = vunpack.i.h.bf16 %v5639_v18 }
 0x385   :  { %v951_v13 = vsel %vm941_vm12, %v948_v41, %v5635_v23  ;;  %v952_v38 = vsel %vm941_vm12, %v949_v5, %v5636_v60  ;;  %v1166_v12 = vsel %vm933_vm11, %v6734_v29, %v5640_v6 }
 0x386   :  { %v1193_v45 = vpack.c.bf16 %v952_v38, %v951_v13  ;;  %v5644_v53 = vpop.permute.xlu0 %5643  ;;  %v947_v55 = vsel %vm933_vm11, %v879_v56, %v5641_v44  ;;  %v5760_v44 = vld [vmem:[#allocation2 + $0x3c8] sm:$0xff]  }
 0x387   :  { %v5645_v48 = vunpack.i.l.bf16 %v5644_v53  ;;  %v5646_v10 = vunpack.i.h.bf16 %v5644_v53 }
 0x388   :  { %1552 = vmatmul.mubr.bf16.vlgmr.msra.gmra.mrb[12].mxu1 %v1193_v45 }
 0x389   :  { %1559 = vmatprep.mubr.bf16.mxu1 %v1197_v32  ;;  %v1170_v34 = vsel %vm937_vm5, %v1166_v12, %v5645_v48  ;;  %v950_v23 = vsel %vm937_vm5, %v947_v55, %v5646_v10  ;;  %v5753_v12 = vld [vmem:[#allocation2 + $0x350] sm:$0xff]   ;;  %v5762_v10 = vld [vmem:[#allocation2 + $0x3d8] sm:$0xff]  }
 0x392   :  { %v5649_v37 = vpop.permute.xlu1 %5648 }
 0x393   :  { %v5651_v20 = vunpack.i.h.bf16 %v5649_v37  ;;  %v5650_v46 = vunpack.i.l.bf16 %v5649_v37  ;;  %v5659_v25 = vpop.permute.xlu0 %5658 }
 0x394   :  { %v5661_v51 = vunpack.i.h.bf16 %v5659_v25  ;;  %v5660_v2 = vunpack.i.l.bf16 %v5659_v25 }
 0x395   :  { %v944_v32 = vsel %vm941_vm12, %v940_v8, %v5650_v46  ;;  %v1173_v1 = vsel %vm941_vm12, %v1169_v7, %v5651_v20 }
 0x396   :  { %v5654_v61 = vpop.permute.xlu1 %5653  ;;  %v1189_v9 = vsel %vm86_vm2, %v944_v32, %v1173_v1  ;;  %v1178_v29 = vsel %vm933_vm11, %v6831_v47, %v5661_v51  ;;  %v1177_v19 = vsel %vm933_vm11, %v1086_v30, %v5660_v2  ;;  %v5759_v51 = vld [vmem:[#allocation2 + $0x3c0] sm:$0xff]   ;;  %v5757_v2 = vld [vmem:[#allocation2 + $0x370] sm:$0xff]  }
 0x397   :  { %v5655_v43 = vunpack.i.l.bf16 %v5654_v61  ;;  %v5674_v39 = vpop.permute.xlu0 %5673  ;;  %v5656_v42 = vunpack.i.h.bf16 %v5654_v61  ;;  %5286 = vmatpush3.bf16.msra.mxu0 %v5759_v51 }
 0x398   :  { %v5676_v40 = vunpack.i.h.bf16 %v5674_v39  ;;  %v5675_v17 = vunpack.i.l.bf16 %v5674_v39  ;;  %5287 = vmatprep.subr.bf16.mxu0 %v6175_v0  ;;  %v5763_v39 = vld [vmem:[#allocation2 + $0x3e0] sm:$0xff]  }
 0x399   :  { %v1174_v57 = vsel %vm941_vm12, %v1170_v34, %v5655_v43  ;;  %v953_v5 = vsel %vm941_vm12, %v950_v23, %v5656_v42  ;;  %v5755_v43 = vld [vmem:[#allocation2 + $0x360] sm:$0xff]   ;;  %v5756_v34 = vld [vmem:[#allocation2 + $0x368] sm:$0xff]  }
 0x39a   :  { %v5664_v24 = vpop.permute.xlu1 %5663  ;;  %v1195_v14 = vpack.c.bf16 %v1174_v57, %v1189_v9  ;;  %v5758_v57 = vld [vmem:[#allocation2 + $0x378] sm:$0xff]   ;;  %v5761_v9 = vld [vmem:[#allocation2 + $0x3d0] sm:$0xff]  }
 0x39b   :  { %v5666_v4 = vunpack.i.h.bf16 %v5664_v24  ;;  %v5665_v3 = vunpack.i.l.bf16 %v5664_v24  ;;  %v5679_v47 = vpop.permute.xlu0 %5678  ;;  %5288 = vmatpush3.bf16.msra.mxu0 %v5760_v44 }
 0x39c   :  { %1502 = vmatprep.mubr.bf16.mxu0 %v1195_v14  ;;  %v5681_v18 = vunpack.i.h.bf16 %v5679_v47  ;;  %v5680_v11 = vunpack.i.l.bf16 %v5679_v47  ;;  %5289 = vmatprep.subr.bf16.mxu0 %v6175_v0 }
 0x39d   :  { %v1182_v54 = vsel %vm937_vm5, %v1178_v29, %v5666_v4  ;;  %v1181_v60 = vsel %vm937_vm5, %v1177_v19, %v5665_v3  ;;  %1503 = vmatmul.mubr.bf16.gmra.mrb[16].mxu0 %v6643_v22  ;;  %v4685_v19 = vld [vmem:[%s7465_s3 + $0x2] ss:$0 sm:$0xff] }
 0x39e   :  { %v5669_v41 = vpop.permute.xlu1 %5668  ;;  %v1185_v35 = vsel %vm941_vm12, %v1181_v60, %v5675_v17  ;;  %v1186_v30 = vsel %vm941_vm12, %v1182_v54, %v5676_v40 }
 0x39f   :  { %v5671_v13 = vunpack.i.h.bf16 %v5669_v41  ;;  %v5670_v15 = vunpack.i.l.bf16 %v5669_v41  ;;  %v1190_v56 = vsel %vm86_vm2, %v953_v5, %v1185_v35  ;;  %v5689_v28 = vpop.permute.xlu0 %5688  ;;  %5290 = vmatpush3.bf16.msra.mxu0 %v5761_v9 }
 0x3a0   :  { %v1196_v45 = vpack.c.bf16 %v1186_v30, %v1190_v56  ;;  %v5691_v33 = vunpack.i.h.bf16 %v5689_v28  ;;  %v5690_v36 = vunpack.i.l.bf16 %v5689_v28  ;;  %5291 = vmatprep.subr.bf16.mxu0 %v6175_v0 }
 0x3a1   :  { %v1167_v38 = vsel %vm933_vm11, %v6741_v50, %v5670_v15  ;;  %v1168_v22 = vsel %vm933_vm11, %v1026_v21, %v5671_v13 }
 0x3a2   :  { %v5684_v52 = vpop.permute.xlu1 %5683  ;;  %1560 = vmatmul.mubr.bf16.gmra.mrb[16].mxu1 %v1196_v45  ;;  %v1171_v50 = vsel %vm937_vm5, %v1167_v38, %v5680_v11  ;;  %v1172_v16 = vsel %vm937_vm5, %v1168_v22, %v5681_v18  ;;  %v1180_v8 = vsel %vm933_vm11, %v1089_v27, %v5691_v33  ;;  %v1179_v58 = vsel %vm933_vm11, %v6839_v31, %v5690_v36  ;;  %v5751_v27 = vld [vmem:[#allocation2 + $0x340] sm:$0xff]   ;;  %v5752_v31 = vld [vmem:[#allocation2 + $0x348] sm:$0xff]  }
 0x3a3   :  { %v5686_v26 = vunpack.i.h.bf16 %v5684_v52  ;;  %v5685_v53 = vunpack.i.l.bf16 %v5684_v52  ;;  %1567 = vmatprep.mubr.bf16.mxu1 %v1200_v63  ;;  %v5699_v6 = vpop.permute.xlu0 %5698  ;;  %5314 = vmatpush3.bf16.msra.mxu1 %v5751_v27  ;;  %v5764_v52 = vld [vmem:[#allocation2 + $0x3e8] sm:$0xff]  }
 0x3a4   :  { %v5701_v62 = vunpack.i.h.bf16 %v5699_v6  ;;  %v5700_v63 = vunpack.i.l.bf16 %v5699_v6  ;;  %5315 = vmatprep.subr.bf16.mxu1 %v6175_v0  ;;  %5292 = vmatpush3.bf16.msra.mxu0 %v5762_v10 }
 0x3a5   :  { %v1175_v21 = vsel %vm941_vm12, %v1171_v50, %v5685_v53  ;;  %v1176_v37 = vsel %vm941_vm12, %v1172_v16, %v5686_v26  ;;  %5293 = vmatprep.subr.bf16.mxu0 %v6175_v0 }
 0x3a6   :  { %v5694_v20 = vpop.permute.xlu1 %5693  ;;  %v1198_v46 = vpack.c.bf16 %v1176_v37, %v1175_v21  ;;  %v5765_v37 = vld [vmem:[#allocation2 + $0x3f0] sm:$0xff]  }
 0x3a7   :  { %v5696_v48 = vunpack.i.h.bf16 %v5694_v20  ;;  %v5695_v7 = vunpack.i.l.bf16 %v5694_v20  ;;  %5316 = vmatpush3.bf16.msra.mxu1 %v5752_v31 }
 0x3a8   :  { %1510 = vmatprep.mubr.bf16.mxu0 %v1198_v46  ;;  %5317 = vmatprep.subr.bf16.mxu1 %v6175_v0 }
 0x3a9   :  { %v1184_v32 = vsel %vm937_vm5, %v1180_v8, %v5696_v48  ;;  %v1183_v1 = vsel %vm937_vm5, %v1179_v58, %v5695_v7  ;;  %1511 = vmatmul.mubr.bf16.gmra.mrb[20].mxu0 %v6655_v59  ;;  %v5754_v59 = vld [vmem:[#allocation2 + $0x358] sm:$0xff]  }
 0x3aa   :  { %v1187_v25 = vsel %vm941_vm12, %v1183_v1, %v5700_v63  ;;  %v1188_v61 = vsel %vm941_vm12, %v1184_v32, %v5701_v62  ;;  %5301 = vmatprep.mubr.msk.bf16.mxu0 %vm6186_vm8, %v6175_v0  ;;  %5294 = vmatpush3.bf16.msra.mxu0 %v5763_v39  ;;  %v5766_v7 = vld [vmem:[#allocation2 + $0x3f8] sm:$0xff]  }
 0x3ab   :  { %v1199_v49 = vpack.c.bf16 %v1188_v61, %v1187_v25  ;;  %5318 = vmatpush3.bf16.msra.mxu1 %v5753_v12  ;;  %5295 = vmatprep.subr.bf16.mxu0 %v6175_v0 }
 0x3ac   :  { %5319 = vmatprep.subr.bf16.mxu1 %v6175_v0 }
 0x3ad   :  { %1568 = vmatmul.mubr.bf16.gmra.mrb[20].mxu1 %v1199_v49 }
 0x3ae   :  { %5329 = vmatprep.mubr.msk.bf16.mxu1 %vm6186_vm8, %v6175_v0  ;;  %5296 = vmatpush3.bf16.msra.mxu0 %v5764_v52  ;;  %v4718_v52 = vld [vmem:[%s7465_s3 + $0x3] ss:$0 sm:$0xff] }
 0x3af   :  { %5320 = vmatpush3.bf16.msra.mxu1 %v5754_v59  ;;  %5297 = vmatprep.subr.bf16.mxu0 %v6175_v0 }
 0x3b0   :  { %5321 = vmatprep.subr.bf16.mxu1 %v6175_v0 }
 0x3b2   :  { %5298 = vmatpush3.bf16.msra.mxu0 %v5765_v37 }
 0x3b3   :  { %5322 = vmatpush3.bf16.msra.mxu1 %v5755_v43  ;;  %5299 = vmatprep.subr.bf16.mxu0 %v6175_v0 }
 0x3b4   :  { %5323 = vmatprep.subr.bf16.mxu1 %v6175_v0 }
 0x3b6   :  { %5300 = vmatpush3.bf16.msra.mxu0 %v5766_v7 }
 0x3b7   :  { %5324 = vmatpush3.bf16.msra.mxu1 %v5756_v34 }
 0x3b8   :  { %5325 = vmatprep.subr.bf16.mxu1 %v6175_v0 }
 0x3bb   :  { %5326 = vmatpush3.bf16.msra.mxu1 %v5757_v2 }
 0x3bc   :  { %5327 = vmatprep.subr.bf16.mxu1 %v6175_v0 }
 0x3bf   :  { %5328 = vmatpush3.bf16.msra.mxu1 %v5758_v57 }
 0x43b   :  { %v4985_v24 = vpop.f32.mrb[12].mxu0 }
 0x43c   :  { %v4986_v14 = vpop.f32.mrb[13].mxu0 }
 0x43d   :  { %v4987_v42 = vadd.f32 %v4986_v14, %v4985_v24  ;;  %v4988_v4 = vpop.f32.mrb[14].mxu0 }
 0x43e   :  { %v4989_v3 = vpop.f32.mrb[15].mxu0 }
 0x43f   :  { %v4990_v29 = vadd.f32 %v4989_v3, %v4988_v4  ;;  %v1497_v55 = vadd.f32 %v4987_v42, %v4685_v19 }
 0x441   :  { %v1500_v47 = vadd.f32 %v4990_v29, %v4685_v19 }
 0x45b   :  { %v5019_v40 = vpop.f32.mrb[12].mxu1 }
 0x45c   :  { %v5020_v17 = vpop.f32.mrb[13].mxu1 }
 0x45d   :  { %v5021_v54 = vadd.f32 %v5020_v17, %v5019_v40  ;;  %v5022_v60 = vpop.f32.mrb[14].mxu1 }
 0x45e   :  { %v5023_v23 = vpop.f32.mrb[15].mxu1 }
 0x45f   :  { %v1554_v41 = vadd.f32 %v5021_v54, %v1497_v55  ;;  %v5024_v35 = vadd.f32 %v5023_v23, %v5022_v60 }
 0x461   :  { %v6946_v30 = vmax.f32 %v1554_v41, 0.0  ;;  %v1557_v5 = vadd.f32 %v5024_v35, %v1500_v47 }
 0x463   :  { %v6948_v13 = vmax.f32 %v1557_v5, 0.0  ;;  %1582 = vadd.xlane.f32.xlu1 %v6946_v30 }
 0x465   :  { %1584 = vadd.xlane.f32.xlu0 %v6948_v13  ;;  %v1795_v8 = vadd.f32 %v6948_v13, %v6946_v30 }
 0x470   :  { %v4991_v15 = vpop.f32.mrb[16].mxu0 }
 0x471   :  { %v4992_v56 = vpop.f32.mrb[17].mxu0 }
 0x472   :  { %v4993_v38 = vadd.f32 %v4992_v56, %v4991_v15  ;;  %v4994_v22 = vpop.f32.mrb[18].mxu0 }
 0x473   :  { %v4995_v45 = vpop.f32.mrb[19].mxu0 }
 0x474   :  { %v4996_v18 = vadd.f32 %v4995_v45, %v4994_v22  ;;  %v1505_v26 = vadd.f32 %v4993_v38, %v4685_v19 }
 0x475   :  { %v5025_v11 = vpop.f32.mrb[16].mxu1 }
 0x476   :  { %v5026_v28 = vpop.f32.mrb[17].mxu1  ;;  %v1508_v50 = vadd.f32 %v4996_v18, %v4685_v19 }
 0x477   :  { %v5027_v53 = vadd.f32 %v5026_v28, %v5025_v11  ;;  %v5028_v33 = vpop.f32.mrb[18].mxu1 }
 0x478   :  { %v5029_v36 = vpop.f32.mrb[19].mxu1 }
 0x479   :  { %v1562_v16 = vadd.f32 %v5027_v53, %v1505_v26  ;;  %v5030_v21 = vadd.f32 %v5029_v36, %v5028_v33  ;;  %v4719_v33 = vld [vmem:[%s7465_s3 + $0x4] ss:$0 sm:$0xff] }
 0x47b   :  { %v6953_v6 = vmax.f32 %v1562_v16, 0.0  ;;  %v1565_v20 = vadd.f32 %v5030_v21, %v1508_v50 }
 0x47c   :  { %v4997_v46 = vpop.f32.mrb[20].mxu0 }
 0x47d   :  { %v4998_v48 = vpop.f32.mrb[21].mxu0  ;;  %v1796_v58 = vsel %vm86_vm2, %v6953_v6, 0.0  ;;  %v6959_v62 = vmax.f32 %v1565_v20, 0.0  ;;  %1586 = vadd.xlane.f32.xlu0 %v6953_v6  ;;  %v1810_v24 = vrot.slane %v6953_v6, 7 }
 0x47e   :  { %v4999_v63 = vadd.f32 %v4998_v48, %v4997_v46  ;;  %v5000_v32 = vpop.f32.mrb[22].mxu0  ;;  %v1797_v25 = vadd.f32 %v1796_v58, %v1795_v8 }
 0x47f   :  { %v5001_v1 = vpop.f32.mrb[23].mxu0  ;;  %1588 = vadd.xlane.f32.xlu1 %v6959_v62  ;;  %v1811_v57 = vrot.slane %v6959_v62, 7 }
 0x480   :  { %v5002_v61 = vadd.f32 %v5001_v1, %v5000_v32  ;;  %v5031_v49 = vpop.f32.mrb[20].mxu1  ;;  %v1513_v31 = vadd.f32 %v4999_v63, %v4685_v19  ;;  %v1798_v34 = vrot.slane %v1797_v25, 4 }
 0x481   :  { %v5032_v27 = vpop.f32.mrb[21].mxu1  ;;  %v1812_v4 = vsel %vm71_vm6, %v1810_v24, %v1811_v57 }
 0x482   :  { %v5033_v12 = vadd.f32 %v5032_v27, %v5031_v49  ;;  %v5034_v59 = vpop.f32.mrb[22].mxu1  ;;  %v1516_v51 = vadd.f32 %v5002_v61, %v4685_v19  ;;  %v1799_v39 = vadd.f32 %v1798_v34, %v1797_v25 }
 0x483   :  { %v5035_v43 = vpop.f32.mrb[23].mxu1 }
 0x484   :  { %v1570_v2 = vadd.f32 %v5033_v12, %v1513_v31  ;;  %v5036_v44 = vadd.f32 %v5035_v43, %v5034_v59  ;;  %v1800_v17 = vrot.slane %v1799_v39, 2 }
 0x486   :  { %v6965_v9 = vmax.f32 %v1570_v2, 0.0  ;;  %v1573_v10 = vadd.f32 %v5036_v44, %v1516_v51  ;;  %v1801_v47 = vadd.f32 %v1800_v17, %v1799_v39  ;;  %v4744_v17 = vld [vmem:[%s7465_s3 + $0x7] ss:$0 sm:$0xff] }
 0x488   :  { %v1813_v14 = vrot.slane %v6965_v9, 7  ;;  %v6969_v42 = vmax.f32 %v1573_v10, 0.0  ;;  %1590 = vadd.xlane.f32.xlu0 %v6965_v9  ;;  %v1802_v35 = vrot.slane %v1801_v47, 1 }
 0x48a   :  { %v1814_v3 = vsel %vm71_vm6, %v1811_v57, %v1813_v14  ;;  %v1815_v29 = vrot.slane %v6969_v42, 7  ;;  %v1592_v19 = vsel %vm99_vm4, %v6969_v42, 0.0  ;;  %v1803_v56 = vadd.f32 %v1802_v35, %v1801_v47 }
 0x48b   :  { %v1820_v40 = vadd.f32 %v1814_v3, %v1812_v4  ;;  %1593 = vadd.xlane.f32.xlu1 %v1592_v19  ;;  %v4735_v4 = vld [vmem:[%s7465_s3 + $0x6] ss:$0 sm:$0xff]  ;;  %v6189_v47 = vmov 0  }
 0x48c   :  { %v1816_v55 = vsel %vm71_vm6, %v1813_v14, %v1815_v29  ;;  %v1805_v45 = vmul.f32 0.04347826, %v1803_v56  ;;  %5702 = vset.pattern.permute.xlu1 %v6189_v47  ;;  %5703 = vset.pattern.permute.xlu0 %v6189_v47 }
 0x48d   :  { %v1821_v54 = vsel %vm86_vm2, %v1816_v55, 0.0 }
 0x48e   :  { %v1822_v60 = vadd.f32 %v1821_v54, %v1820_v40 }
 0x490   :  { %v1823_v23 = vrot.slane %v1822_v60, 4 }
 0x492   :  { %v1824_v41 = vadd.f32 %v1823_v23, %v1822_v60 }
 0x494   :  { %v1825_v5 = vrot.slane %v1824_v41, 2 }
 0x496   :  { %v1826_v15 = vadd.f32 %v1825_v5, %v1824_v41 }
 0x498   :  { %v1827_v38 = vrot.slane %v1826_v15, 1 }
 0x49a   :  { %v1828_v22 = vadd.f32 %v1827_v38, %v1826_v15 }
 0x49c   :  { %v1829_v18 = vmul.f32 0.04347826, %v1828_v22 }
 0x49e   :  { %v1830_v11 = vsel %vm71_vm6, %v1805_v45, %v1829_v18 }
 0x49f   :  { %v1831_v28 = vpack.c.bf16 %v1830_v11, %v1830_v11 }
 0x4a1   :  { %5330 = vmatmul.mubr.bf16.vlgmr.msra.gmra.mrb[24].mxu1 %v1831_v28 }
 0x4a2   :  { %2443 = vmatprep.mubr.bf16.mxu1 %v6189_v47 }
 0x4f0   :  { %v1583_v26 = vpop.xlane.xlu1 %1582 }
 0x4f1   :  { %v1596_v53 = vmul.f32 0.0078125, %v1583_v26  ;;  %v4745_v26 = vld [vmem:[%s7465_s3 + $0x8] ss:$0 sm:$0xff] }
 0x4f2   :  { %v1585_v36 = vpop.xlane.xlu0 %1584 }
 0x4f3   :  { %v1607_v50 = vmul.f32 %v4718_v52, %v1596_v53  ;;  %v1597_v16 = vmul.f32 0.0078125, %v1585_v36 }
 0x4f5   :  { %v1618_v21 = vadd.f32 %v4719_v33, %v1607_v50  ;;  %v1608_v37 = vmul.f32 %v4718_v52, %v1597_v16 }
 0x4f7   :  { %v1619_v20 = vadd.f32 %v4719_v33, %v1608_v37  ;;  %v1624_v46 = vmax.f32 %v1618_v21, 0.0  ;;  %v1963_v21 = vlaneseq }
 0x4f9   :  { %v1625_v48 = vmax.f32 %v1619_v20, 0.0  ;;  %v7004_v37 = vshrl.u32 %v1963_v21, 7 }
 0x4fb   :  { %v1630_v7 = vpack.c.bf16 %v1625_v48, %v1624_v46  ;;  %v7007_v20 = vsub.s32 0, %v7004_v37  ;;  %v7010_v46 = vsub.s32 1, %v7004_v37 }
 0x4fd   :  { %5302 = vmatmul.mubr.bf16.vlgmr.msra.gmra.mrb[24].mxu0 %v1630_v7 }
 0x4fe   :  { %5305 = vmatprep.mubr.msk.bf16.mxu0 %vm6186_vm8, %v6175_v0 }
 0x50a   :  { %v1587_v8 = vpop.xlane.xlu0 %1586 }
 0x50b   :  { %v1598_v58 = vmul.f32 0.0078125, %v1587_v8 }
 0x50c   :  { %v1589_v63 = vpop.xlane.xlu1 %1588 }
 0x50d   :  { %v1609_v32 = vmul.f32 %v4718_v52, %v1598_v58  ;;  %v1599_v1 = vmul.f32 0.0078125, %v1589_v63  ;;  %v4720_v63 = vld [vmem:[%s7465_s3 + $0x5] ss:$0 sm:$0xff] }
 0x50f   :  { %v1620_v25 = vadd.f32 %v4719_v33, %v1609_v32  ;;  %v1610_v61 = vmul.f32 %v4718_v52, %v1599_v1 }
 0x511   :  { %v1621_v49 = vadd.f32 %v4719_v33, %v1610_v61  ;;  %v1626_v27 = vmax.f32 %v1620_v25, 0.0 }
 0x513   :  { %v1627_v31 = vmax.f32 %v1621_v49, 0.0 }
 0x515   :  { %v1591_v12 = vpop.xlane.xlu0 %1590  ;;  %v1631_v43 = vpack.c.bf16 %v1627_v31, %v1626_v27 }
 0x516   :  { %v1600_v59 = vmul.f32 0.0078125, %v1591_v12 }
 0x517   :  { %5306 = vmatmul.mubr.bf16.gmra.mrb[28].mxu0 %v1631_v43 }
 0x518   :  { %v1611_v34 = vmul.f32 %v4718_v52, %v1600_v59  ;;  %v1594_v51 = vpop.xlane.xlu1 %1593  ;;  %5309 = vmatprep.mubr.msk.bf16.mxu0 %vm6186_vm8, %v6175_v0 }
 0x519   :  { %v1601_v2 = vmul.f32 0.0078125, %v1594_v51 }
 0x51a   :  { %v1622_v44 = vadd.f32 %v4719_v33, %v1611_v34 }
 0x51b   :  { %v1612_v57 = vmul.f32 %v4718_v52, %v1601_v2 }
 0x51c   :  { %v1628_v39 = vmax.f32 %v1622_v44, 0.0 }
 0x51d   :  { %v1623_v10 = vadd.f32 %v4719_v33, %v1612_v57 }
 0x51f   :  { %v1629_v24 = vmax.f32 %v1623_v10, 0.0 }
 0x521   :  { %v1632_v14 = vpack.c.bf16 %v1629_v24, %v1628_v39 }
 0x523   :  { %5310 = vmatmul.mubr.bf16.gmra.mrb[32].mxu0 %v1632_v14 }
 0x524   :  { %2380 = vmatprep.mubr.bf16.mxu0 %v6189_v47 }
 0x574   :  { %v1935_v3 = vpop.f32.mrb[24].mxu1 }
 0x575   :  { %v1936_v29 = vadd.f32 %v4735_v4, %v1935_v3  ;;  %v5331_v19 = vpop.f32.mrb[25].mxu1 }
 0x576   :  { %v1938_v40 = vpop.f32.mrb[26].mxu1 }
 0x577   :  { %v1941_v55 = vmax.f32 %v1936_v29, 0.0  ;;  %v5332_v54 = vpop.f32.mrb[27].mxu1 }
 0x579   :  { %v1947_v60 = vmul.f32 %v4744_v17, %v1941_v55 }
 0x57b   :  { %v1948_v23 = vsel %vm62_vm1, %v1947_v60, 0.0 }
 0x57c   :  { %1949 = vadd.xlane.f32.xlu0 %v1948_v23 }
 0x5d0   :  { %v1736_v41 = vpop.f32.mrb[24].mxu0 }
 0x5d1   :  { %v5303_v35 = vpop.f32.mrb[25].mxu0  ;;  %v1737_v32 = vadd.f32 %v4720_v63, %v1736_v41 }
 0x5d2   :  { %v1739_v5 = vpop.f32.mrb[26].mxu0 }
 0x5d3   :  { %v5304_v15 = vpop.f32.mrb[27].mxu0  ;;  %v1740_v1 = vadd.f32 %v4720_v63, %v1739_v5  ;;  %v4729_v49 = vmul.f32 -1.442695, %v1737_v32 }
 0x5d5   :  { %v4730_v31 = vmul.f32 -1.442695, %v1740_v1 }
 0x5ea   :  { %v1744_v56 = vpop.f32.mrb[28].mxu0 }
 0x5eb   :  { %v5307_v38 = vpop.f32.mrb[29].mxu0  ;;  %v1745_v25 = vadd.f32 %v4720_v63, %v1744_v56 }
 0x5ec   :  { %v1747_v22 = vpop.f32.mrb[30].mxu0 }
 0x5ed   :  { %v5308_v45 = vpop.f32.mrb[31].mxu0  ;;  %v1748_v61 = vadd.f32 %v4720_v63, %v1747_v22  ;;  %v4731_v59 = vmul.f32 -1.442695, %v1745_v25 }
 0x5ef   :  { %v4732_v43 = vmul.f32 -1.442695, %v1748_v61 }
 0x5f6   :  { %v1752_v18 = vpop.f32.mrb[32].mxu0 }
 0x5f7   :  { %v5311_v11 = vpop.f32.mrb[33].mxu0  ;;  %v1753_v27 = vadd.f32 %v4720_v63, %v1752_v18 }
 0x5f8   :  { %v1755_v28 = vpop.f32.mrb[34].mxu0 }
 0x5f9   :  { %v5312_v52 = vpop.f32.mrb[35].mxu0  ;;  %v1756_v12 = vadd.f32 %v4720_v63, %v1755_v28  ;;  %v4733_v34 = vmul.f32 -1.442695, %v1753_v27 }
 0x5fb   :  { %v4734_v51 = vmul.f32 -1.442695, %v1756_v12 }
 0x609   :  { %v1950_v53 = vpop.xlane.xlu0 %1949 }
 0x60a   :  { %v1956_v33 = vadd.f32 %v4745_v26, %v1950_v53 }
 0x60c   :  { %v4746_v36 = vmul.f32 -1.442695, %v1956_v33 }
 0x60e   :  { %5959 = vpow2.f32 %v4746_v36 }
 0x618   :  { %v5960_v50 = vpop.eup %5959 }
 0x619   :  { %v1960_v16 = vadd.f32 1.0, %v5960_v50 }
 0x61b   :  { %5961 = vrcp.f32 %v1960_v16 }
 0x61c   :  { %5963 = vpow2.f32 %v4729_v49 }
 0x61d   :  { %5965 = vpow2.f32 %v4730_v31 }
 0x61e   :  { %5967 = vpow2.f32 %v4731_v59 }
 0x61f   :  { %5969 = vpow2.f32 %v4732_v43 }
 0x620   :  { %5971 = vpow2.f32 %v4733_v34 }
 0x621   :  { %5973 = vpow2.f32 %v4734_v51 }
 0x625   :  { %v5962_v48 = vpop.eup %5961 }
 0x626   :  { %v1966_v7 = vrot.slane %v5962_v48, %v7007_v20  ;;  %v1970_v8 = vrot.slane %v5962_v48, %v7010_v46  ;;  %v5964_v2 = vpop.eup %5963 }
 0x627   :  { %v5966_v44 = vpop.eup %5965  ;;  %v1777_v39 = vadd.f32 1.0, %v5964_v2 }
 0x628   :  { %1975 = vperm.xlu1 %5702, %v1966_v7   ;;  %v1973_v58 = vsel %vm86_vm2, %v1966_v7, %v1970_v8  ;;  %v5968_v57 = vpop.eup %5967  ;;  %v1778_v14 = vadd.f32 1.0, %v5966_v44 }
 0x629   :  { %1980 = vperm.xlu0 %5703, %v1973_v58   ;;  %v5970_v10 = vpop.eup %5969  ;;  %v1779_v3 = vadd.f32 1.0, %v5968_v57  ;;  %5975 = vrcp.f32 %v1777_v39 }
 0x62a   :  { %v5972_v24 = vpop.eup %5971  ;;  %v1780_v29 = vadd.f32 1.0, %v5970_v10  ;;  %5977 = vrcp.f32 %v1778_v14 }
 0x62b   :  { %v5974_v4 = vpop.eup %5973  ;;  %v1781_v19 = vadd.f32 1.0, %v5972_v24  ;;  %5979 = vrcp.f32 %v1779_v3 }
 0x62c   :  { %1984 = vperm.xlu1 %5702, %v1970_v8   ;;  %v1782_v40 = vadd.f32 1.0, %v5974_v4  ;;  %5981 = vrcp.f32 %v1780_v29  ;;  %v5769_v29 = vld [vmem:[#allocation4 + $0x4] ss:$16 sps:$4 sm:$0xff]  }
 0x62d   :  { %5983 = vrcp.f32 %v1781_v19  ;;  %v5770_v19 = vld [vmem:[#allocation4 + $0x8] ss:$16 sps:$4 sm:$0xff]   ;;  %2348 = vmatprep.subr.bf16.mxu0 %v5769_v29 }
 0x62e   :  { %5985 = vrcp.f32 %v1782_v40  ;;  %v5772_v40 = vld [vmem:[#allocation4 + $0xc] ss:$16 sps:$4 sm:$0xff]  }
 0x62f   :  { %2411 = vmatprep.subr.bf16.mxu1 %v5772_v40 }
 0x630   :  { %2412 = vmatpush1.bf16.msra.mxu1 %v5770_v19 }
 0x633   :  { %v5976_v17 = vpop.eup %5975 }
 0x634   :  { %v5978_v55 = vpop.eup %5977 }
 0x635   :  { %v5980_v60 = vpop.eup %5979 }
 0x636   :  { %v5982_v5 = vpop.eup %5981 }
 0x637   :  { %v5984_v56 = vpop.eup %5983 }
 0x638   :  { %v5986_v45 = vpop.eup %5985 }
 0x6a7   :  { %v1976_v54 = vpop.permute.xlu1 %1975 }
 0x6a8   :  { %v1987_v23 = vadd.f32 %v5976_v17, %v1976_v54  ;;  %v1988_v41 = vadd.f32 %v5978_v55, %v1976_v54  ;;  %v1981_v35 = vpop.permute.xlu0 %1980  ;;  %v5775_v17 = vld [vmem:[#allocation4 + $0x24] ss:$16 sps:$4 sm:$0xff]   ;;  %v5778_v55 = vld [vmem:[#allocation4 + $0x2c] ss:$16 sps:$4 sm:$0xff]  }
 0x6a9   :  { %v1989_v15 = vadd.f32 %v5980_v60, %v1981_v35  ;;  %2413 = vmatprep.subr.bf16.mxu1 %v5778_v55 }
 0x6aa   :  { %v4747_v38 = vmul.f32 -1.442695, %v1987_v23  ;;  %v4748_v22 = vmul.f32 -1.442695, %v1988_v41 }
 0x6ab   :  { %v4749_v18 = vmul.f32 -1.442695, %v1989_v15  ;;  %v1985_v11 = vpop.permute.xlu1 %1984 }
 0x6ac   :  { %5987 = vpow2.f32 %v4747_v38  ;;  %v1990_v28 = vadd.f32 %v5982_v5, %v1985_v11  ;;  %v1991_v52 = vadd.f32 %v5984_v56, %v1985_v11  ;;  %v1992_v26 = vadd.f32 %v5986_v45, %v1985_v11 }
 0x6ad   :  { %5989 = vpow2.f32 %v4748_v22 }
 0x6ae   :  { %5991 = vpow2.f32 %v4749_v18  ;;  %v4750_v53 = vmul.f32 -1.442695, %v1990_v28  ;;  %v4752_v33 = vmul.f32 -1.442695, %v1992_v26  ;;  %v4751_v36 = vmul.f32 -1.442695, %v1991_v52 }
 0x6b0   :  { %5993 = vpow2.f32 %v4750_v53 }
 0x6b1   :  { %5995 = vpow2.f32 %v4752_v33 }
 0x6b2   :  { %5997 = vpow2.f32 %v4751_v36 }
 0x6b6   :  { %v5988_v50 = vpop.eup %5987 }
 0x6b7   :  { %v5990_v16 = vpop.eup %5989  ;;  %v2011_v21 = vadd.f32 1.0, %v5988_v50 }
 0x6b8   :  { %v5992_v48 = vpop.eup %5991  ;;  %v2012_v7 = vadd.f32 1.0, %v5990_v16 }
 0x6b9   :  { %5999 = vrcp.f32 %v2011_v21  ;;  %v2013_v8 = vadd.f32 1.0, %v5992_v48 }
 0x6ba   :  { %v5994_v58 = vpop.eup %5993  ;;  %6001 = vrcp.f32 %v2012_v7 }
 0x6bb   :  { %v2014_v63 = vadd.f32 1.0, %v5994_v58  ;;  %v5996_v32 = vpop.eup %5995  ;;  %6003 = vrcp.f32 %v2013_v8  ;;  %v5781_v8 = vld [vmem:[#allocation4 + $0x44] ss:$16 sps:$4 sm:$0xff]   ;;  %v5784_v58 = vld [vmem:[#allocation4 + $0x4c] ss:$16 sps:$4 sm:$0xff]  }
 0x6bc   :  { %v2016_v1 = vadd.f32 1.0, %v5996_v32  ;;  %v5998_v25 = vpop.eup %5997  ;;  %v5782_v32 = vld [vmem:[#allocation4 + $0x48] ss:$16 sps:$4 sm:$0xff]  }
 0x6bd   :  { %6005 = vrcp.f32 %v2014_v63  ;;  %v2015_v61 = vadd.f32 1.0, %v5998_v25  ;;  %v5779_v63 = vld [vmem:[#allocation4 + $0x40] ss:$16 sps:$4 sm:$0xff]   ;;  %v5790_v25 = vld [vmem:[#allocation4 + $0x6c] ss:$16 sps:$4 sm:$0xff]  }
 0x6be   :  { %6007 = vrcp.f32 %v2016_v1  ;;  %v5787_v1 = vld [vmem:[#allocation4 + $0x64] ss:$16 sps:$4 sm:$0xff]  }
 0x6bf   :  { %6009 = vrcp.f32 %v2015_v61  ;;  %v5785_v61 = vld [vmem:[#allocation4 + $0x60] ss:$16 sps:$4 sm:$0xff]  }
 0x6c3   :  { %v6000_v49 = vpop.eup %5999 }
 0x6c4   :  { %v6002_v27 = vpop.eup %6001  ;;  %v2029_v31 = vmul.f32 %v6000_v49, %v6946_v30  ;;  %v5788_v49 = vld [vmem:[#allocation4 + $0x68] ss:$16 sps:$4 sm:$0xff]  }
 0x6c5   :  { %v2030_v12 = vmul.f32 %v6002_v27, %v6948_v13  ;;  %v6004_v59 = vpop.eup %6003  ;;  %v5791_v27 = vld [vmem:[#allocation4 + $0x80] ss:$16 sps:$4 sm:$0xff]  }
 0x6c6   :  { %v2035_v43 = vadd.f32 %v2029_v31, %v6946_v30  ;;  %v2031_v10 = vmul.f32 %v6004_v59, %v6953_v6  ;;  %v5793_v31 = vld [vmem:[#allocation4 + $0x84] ss:$16 sps:$4 sm:$0xff]   ;;  %v5796_v59 = vld [vmem:[#allocation4 + $0x8c] ss:$16 sps:$4 sm:$0xff]  }
 0x6c7   :  { %v6006_v34 = vpop.eup %6005  ;;  %v2036_v51 = vadd.f32 %v2030_v12, %v6948_v13  ;;  %v5794_v12 = vld [vmem:[#allocation4 + $0x88] ss:$16 sps:$4 sm:$0xff]  }
 0x6c8   :  { %2043 = vadd.xlane.f32.xlu1 %v2035_v43  ;;  %v2032_v2 = vmul.f32 %v6006_v34, %v6959_v62  ;;  %v6008_v44 = vpop.eup %6007  ;;  %v2037_v24 = vadd.f32 %v2031_v10, %v6953_v6  ;;  %v5773_v6 = vld [vmem:[#allocation4 + $0x20] ss:$16 sps:$4 sm:$0xff]   ;;  %v5802_v34 = vld [vmem:[#allocation4 + $0xac] ss:$16 sps:$4 sm:$0xff]  }
 0x6c9   :  { %2045 = vadd.xlane.f32.xlu0 %v2036_v51  ;;  %v2034_v39 = vmul.f32 %v6008_v44, %v6969_v42  ;;  %v6010_v14 = vpop.eup %6009  ;;  %v5805_v44 = vld [vmem:[#allocation4 + $0xc4] ss:$16 sps:$4 sm:$0xff]   ;;  %v5803_v10 = vld [vmem:[#allocation4 + $0xc0] ss:$16 sps:$4 sm:$0xff]  }
 0x6ca   :  { %v2038_v57 = vadd.f32 %v2032_v2, %v6959_v62  ;;  %v2033_v13 = vmul.f32 %v6010_v14, %v6965_v9  ;;  %v5767_v62 = vld [vmem:[#allocation4] ss:$16 sps:$4 sm:$0xff]   ;;  %v5800_v2 = vld [vmem:[#allocation4 + $0xa8] ss:$16 sps:$4 sm:$0xff]   ;;  %v5814_v14 = vld [vmem:[#allocation4 + $0xec] ss:$16 sps:$4 sm:$0xff]  }
 0x6cb   :  { %v2040_v30 = vadd.f32 %v2034_v39, %v6969_v42  ;;  %2349 = vmatpush1.bf16.msra.mxu0 %v5767_v62  ;;  %v5776_v42 = vld [vmem:[#allocation4 + $0x28] ss:$16 sps:$4 sm:$0xff]  }
 0x6cc   :  { %2049 = vadd.xlane.f32.xlu1 %v2038_v57  ;;  %v2039_v3 = vadd.f32 %v2033_v13, %v6965_v9  ;;  %2350 = vmatprep.subr.bf16.mxu0 %v5775_v17  ;;  %v5806_v39 = vld [vmem:[#allocation4 + $0xc8] ss:$16 sps:$4 sm:$0xff]  }
 0x6cd   :  { %v2053_v4 = vsel %vm99_vm4, %v2040_v30, 0.0  ;;  %2414 = vmatpush1.bf16.msra.mxu1 %v5776_v42  ;;  %v5812_v13 = vld [vmem:[#allocation4 + $0xe8] ss:$16 sps:$4 sm:$0xff]  }
 0x6ce   :  { %2415 = vmatprep.subr.bf16.mxu1 %v5784_v58 }
 0x6cf   :  { %2351 = vmatpush1.bf16.msra.mxu0 %v5773_v6 }
 0x6d0   :  { %2047 = vadd.xlane.f32.xlu1 %v2037_v24  ;;  %2352 = vmatprep.subr.bf16.mxu0 %v5781_v8 }
 0x6d1   :  { %2416 = vmatpush1.bf16.msra.mxu1 %v5782_v32 }
 0x6d2   :  { %2417 = vmatprep.subr.bf16.mxu1 %v5790_v25  ;;  %v5817_v25 = vld [vmem:[#allocation2 + $0x140] sm:$0xff]  }
 0x6d3   :  { %2353 = vmatpush1.bf16.msra.mxu0 %v5779_v63 }
 0x6d4   :  { %2054 = vadd.xlane.f32.xlu1 %v2053_v4  ;;  %2354 = vmatprep.subr.bf16.mxu0 %v5787_v1  ;;  %v5815_v4 = vld [vmem:[#allocation2 + $0x180] sm:$0xff]  }
 0x6d5   :  { %2418 = vmatpush1.bf16.msra.mxu1 %v5788_v49 }
 0x6d6   :  { %2419 = vmatprep.subr.bf16.mxu1 %v5796_v59 }
 0x6d7   :  { %2355 = vmatpush1.bf16.msra.mxu0 %v5785_v61  ;;  %v5818_v61 = vld [vmem:[#allocation2 + $0x1c0] sm:$0xff]  }
 0x6d8   :  { %2051 = vadd.xlane.f32.xlu1 %v2039_v3  ;;  %2356 = vmatprep.subr.bf16.mxu0 %v5793_v31  ;;  %v5820_v31 = vld [vmem:[#allocation2 + $0x208] sm:$0xff]  }
 0x6d9   :  { %2420 = vmatpush1.bf16.msra.mxu1 %v5794_v12 }
 0x6da   :  { %2421 = vmatprep.subr.bf16.mxu1 %v5802_v34 }
 0x6db   :  { %2357 = vmatpush1.bf16.msra.mxu0 %v5791_v27  ;;  %v5819_v27 = vld [vmem:[#allocation2 + $0x188] sm:$0xff]  }
 0x6dd   :  { %2422 = vmatpush1.bf16.msra.mxu1 %v5800_v2  ;;  %v5824_v2 = vld [vmem:[#allocation2 + $0x210] sm:$0xff]  }
 0x755   :  { %v2044_v54 = vpop.xlane.xlu1 %2043 }
 0x756   :  { %v2056_v60 = vmul.f32 0.0078125, %v2044_v54  ;;  %v2046_v9 = vpop.xlane.xlu0 %2045 }
 0x757   :  { %v2057_v23 = vmul.f32 0.0078125, %v2046_v9 }
 0x758   :  { %v7031_v41 = vsub.f32 %v2035_v43, %v2056_v60  ;;  %v5799_v43 = vld [vmem:[#allocation4 + $0xa4] ss:$16 sps:$4 sm:$0xff]  }
 0x759   :  { %v2050_v35 = vpop.xlane.xlu1 %2049  ;;  %v7033_v5 = vsub.f32 %v2036_v51, %v2057_v23  ;;  %v5797_v51 = vld [vmem:[#allocation4 + $0xa0] ss:$16 sps:$4 sm:$0xff]   ;;  %2358 = vmatprep.subr.bf16.mxu0 %v5799_v43  ;;  %v5822_v43 = vld [vmem:[#allocation2 + $0x1c8] sm:$0xff]  }
 0x75a   :  { %v2059_v15 = vmul.f32 0.0078125, %v2050_v35  ;;  %v2068_v56 = vmul.f32 %v7031_v41, %v7031_v41  ;;  %2359 = vmatpush1.bf16.msra.mxu0 %v5797_v51  ;;  %v5823_v51 = vld [vmem:[#allocation2 + $0x190] sm:$0xff]  }
 0x75b   :  { %v2069_v18 = vmul.f32 %v7033_v5, %v7033_v5  ;;  %2360 = vmatprep.subr.bf16.mxu0 %v5805_v44 }
 0x75c   :  { %2074 = vadd.xlane.f32.xlu1 %v2068_v56  ;;  %v7037_v22 = vsub.f32 %v2038_v57, %v2059_v15  ;;  %v5808_v57 = vld [vmem:[#allocation4 + $0xcc] ss:$16 sps:$4 sm:$0xff]  }
 0x75d   :  { %v2048_v38 = vpop.xlane.xlu1 %2047  ;;  %2423 = vmatprep.subr.bf16.mxu1 %v5808_v57 }
 0x75e   :  { %v2058_v45 = vmul.f32 0.0078125, %v2048_v38  ;;  %v2071_v53 = vmul.f32 %v7037_v22, %v7037_v22  ;;  %2361 = vmatpush1.bf16.msra.mxu0 %v5803_v10  ;;  %2424 = vmatpush1.bf16.msra.mxu1 %v5806_v39 }
 0x75f   :  { %2425 = vmatprep.subr.bf16.mxu1 %v5814_v14  ;;  %v5826_v14 = vld [vmem:[#allocation2 + $0x1d0] sm:$0xff]  }
 0x760   :  { %v7041_v11 = vsub.f32 %v2037_v24, %v2058_v45  ;;  %2076 = vadd.xlane.f32.xlu1 %v2069_v18  ;;  %v5811_v24 = vld [vmem:[#allocation4 + $0xe4] ss:$16 sps:$4 sm:$0xff]  }
 0x761   :  { %v2055_v28 = vpop.xlane.xlu1 %2054  ;;  %2362 = vmatprep.subr.bf16.mxu0 %v5811_v24  ;;  %v5825_v24 = vld [vmem:[#allocation2 + $0x150] sm:$0xff]  }
 0x762   :  { %v2061_v52 = vmul.f32 0.0078125, %v2055_v28  ;;  %v2070_v26 = vmul.f32 %v7041_v11, %v7041_v11  ;;  %2426 = vmatpush1.bf16.msra.mxu1 %v5812_v13  ;;  %v4753_v28 = vld [vmem:[%s7465_s3 + $0x9] ss:$0 sm:$0xff]  ;;  %v5828_v13 = vld [vmem:[#allocation2 + $0x218] sm:$0xff]  }
 0x764   :  { %v7047_v33 = vsub.f32 %v2040_v30, %v2061_v52  ;;  %2078 = vadd.xlane.f32.xlu0 %v2070_v26  ;;  %2080 = vadd.xlane.f32.xlu1 %v2071_v53  ;;  %v5809_v30 = vld [vmem:[#allocation4 + $0xe0] ss:$16 sps:$4 sm:$0xff]  }
 0x765   :  { %v2052_v36 = vpop.xlane.xlu1 %2051  ;;  %2363 = vmatpush1.bf16.msra.mxu0 %v5809_v30  ;;  %v5827_v30 = vld [vmem:[#allocation2 + $0x198] sm:$0xff]  }
 0x766   :  { %v2060_v50 = vmul.f32 0.0078125, %v2052_v36  ;;  %v2073_v16 = vmul.f32 %v7047_v33, %v7047_v33  ;;  %5057 = vmatprep.subr.bf16.mxu0 %v5815_v4 }
 0x768   :  { %v7051_v21 = vsub.f32 %v2039_v3, %v2060_v50  ;;  %v2084_v48 = vsel %vm99_vm4, %v2073_v16, 0.0  ;;  %v5816_v3 = vld [vmem:[#allocation2 + $0x200] sm:$0xff]   ;;  %v4754_v16 = vld [vmem:[%s7465_s3 + $0xa] ss:$0 sm:$0xff] }
 0x769   :  { %2085 = vadd.xlane.f32.xlu1 %v2084_v48  ;;  %5091 = vmatprep.subr.bf16.mxu1 %v5816_v3  ;;  %v5830_v3 = vld [vmem:[#allocation2 + $0x1d8] sm:$0xff]  }
 0x76a   :  { %v2072_v7 = vmul.f32 %v7051_v21, %v7051_v21 }
 0x76c   :  { %2082 = vadd.xlane.f32.xlu0 %v2072_v7 }
 0x7e9   :  { %v2075_v62 = vpop.xlane.xlu1 %2074 }
 0x7ea   :  { %v2087_v29 = vmul.f32 0.0078125, %v2075_v62  ;;  %v5831_v62 = vld [vmem:[#allocation2 + $0x1a0] sm:$0xff]  }
 0x7ec   :  { %v2093_v19 = vadd.f32 1e-05, %v2087_v29  ;;  %v5832_v29 = vld [vmem:[#allocation2 + $0x220] sm:$0xff]  }
 0x7ed   :  { %v2077_v40 = vpop.xlane.xlu1 %2076 }
 0x7ee   :  { %6011 = vrsqrt.f32 %v2093_v19  ;;  %v2088_v17 = vmul.f32 0.0078125, %v2077_v40 }
 0x7f0   :  { %v2094_v55 = vadd.f32 1e-05, %v2088_v17  ;;  %v5833_v17 = vld [vmem:[#allocation2 + $0x160] sm:$0xff]  }
 0x7f1   :  { %v2081_v6 = vpop.xlane.xlu1 %2080  ;;  %v2079_v42 = vpop.xlane.xlu0 %2078 }
 0x7f2   :  { %6013 = vrsqrt.f32 %v2094_v55  ;;  %v2090_v54 = vmul.f32 0.0078125, %v2081_v6  ;;  %v2089_v60 = vmul.f32 0.0078125, %v2079_v42  ;;  %v5834_v55 = vld [vmem:[#allocation2 + $0x1e0] sm:$0xff]   ;;  %v5835_v6 = vld [vmem:[#allocation2 + $0x1a8] sm:$0xff]  }
 0x7f3   :  { %v5836_v42 = vld [vmem:[#allocation2 + $0x228] sm:$0xff]  }
 0x7f4   :  { %v2096_v9 = vadd.f32 1e-05, %v2090_v54  ;;  %v2095_v23 = vadd.f32 1e-05, %v2089_v60  ;;  %v5837_v54 = vld [vmem:[#allocation2 + $0x168] sm:$0xff]  }
 0x7f5   :  { %v5838_v60 = vld [vmem:[#allocation2 + $0x1e8] sm:$0xff]  }
 0x7f6   :  { %6015 = vrsqrt.f32 %v2096_v9  ;;  %v2086_v35 = vpop.xlane.xlu1 %2085  ;;  %v5839_v9 = vld [vmem:[#allocation2 + $0x1b0] sm:$0xff]  }
 0x7f7   :  { %6017 = vrsqrt.f32 %v2095_v23  ;;  %v2092_v15 = vmul.f32 0.0078125, %v2086_v35  ;;  %v5840_v23 = vld [vmem:[#allocation2 + $0x230] sm:$0xff]  }
 0x7f8   :  { %v6012_v56 = vpop.eup %6011  ;;  %v5841_v35 = vld [vmem:[#allocation2 + $0x170] sm:$0xff]  }
 0x7f9   :  { %v2105_v38 = vmul.f32 %v6012_v56, %v7031_v41  ;;  %v2098_v45 = vadd.f32 1e-05, %v2092_v15  ;;  %v2083_v18 = vpop.xlane.xlu0 %2082  ;;  %v5842_v15 = vld [vmem:[#allocation2 + $0x1f0] sm:$0xff]   ;;  %v5843_v56 = vld [vmem:[#allocation2 + $0x1b8] sm:$0xff]  }
 0x7fa   :  { %v2091_v52 = vmul.f32 0.0078125, %v2083_v18  ;;  %v5846_v18 = vld [vmem:[#allocation2 + $0x1f8] sm:$0xff]  }
 0x7fb   :  { %6019 = vrsqrt.f32 %v2098_v45  ;;  %v2115_v36 = vmul.f32 %v4753_v28, %v2105_v38  ;;  %v5844_v38 = vld [vmem:[#allocation2 + $0x238] sm:$0xff]  }
 0x7fc   :  { %v6014_v26 = vpop.eup %6013  ;;  %v2097_v53 = vadd.f32 1e-05, %v2091_v52  ;;  %v5845_v45 = vld [vmem:[#allocation2 + $0x178] sm:$0xff]   ;;  %v2163_v52 = vld [vmem:[%s7466_s4] ss:$2 sm:$0xf] }
 0x7fd   :  { %v2106_v50 = vmul.f32 %v6014_v26, %v7033_v5  ;;  %v7064_v8 = vadd.f32 %v4754_v16, %v2115_v36  ;;  %v2182_v26 = vsub.s32 3, %v7004_v37 }
 0x7fe   :  { %6021 = vrsqrt.f32 %v2097_v53  ;;  %v7098_v53 = vrot.slane %v2163_v52, %v7007_v20 }
 0x7ff   :  { %v2116_v48 = vmul.f32 %v4753_v28, %v2106_v50  ;;  %v7105_v50 = vrot.slane %v2163_v52, %v7010_v46 }
 0x800   :  { %v6016_v41 = vpop.eup %6015 }
 0x801   :  { %v6018_v7 = vpop.eup %6017  ;;  %v7066_v58 = vadd.f32 %v4754_v16, %v2116_v48  ;;  %v2108_v63 = vmul.f32 %v6016_v41, %v7037_v22 }
 0x802   :  { %v2107_v32 = vmul.f32 %v6018_v7, %v7041_v11  ;;  %v5821_v11 = vld [vmem:[#allocation2 + $0x148] sm:$0xff]  }
 0x803   :  { %v2164_v1 = vpack.c.bf16 %v7066_v58, %v7064_v8  ;;  %v2118_v5 = vmul.f32 %v4753_v28, %v2108_v63 }
 0x804   :  { %v2117_v49 = vmul.f32 %v4753_v28, %v2107_v32 }
 0x805   :  { %2381 = vmatmul.mubr.bf16.vlgmr.msra.gmra.mrb[36].mxu0 %v2164_v1  ;;  %2444 = vmatmul.mubr.bf16.vlgmr.msra.gmra.mrb[28].mxu1 %v2164_v1  ;;  %v6020_v12 = vpop.eup %6019  ;;  %v7076_v22 = vadd.f32 %v4754_v16, %v2118_v5 }
 0x806   :  { %2390 = vmatprep.mubr.bf16.mxu0 %v6189_v47  ;;  %2453 = vmatprep.mubr.bf16.mxu1 %v6189_v47  ;;  %v7074_v59 = vadd.f32 %v4754_v16, %v2117_v49  ;;  %v2110_v57 = vmul.f32 %v6020_v12, %v7047_v33 }
 0x807   :  { %5058 = vmatpush3.bf16.msra.mxu0 %v5817_v25  ;;  %5092 = vmatpush3.bf16.msra.mxu1 %v5818_v61 }
 0x808   :  { %v6022_v34 = vpop.eup %6021  ;;  %5059 = vmatprep.subr.bf16.mxu0 %v5819_v27  ;;  %5093 = vmatprep.subr.bf16.mxu1 %v5820_v31  ;;  %v2165_v10 = vpack.c.bf16 %v7076_v22, %v7074_v59  ;;  %v2120_v4 = vmul.f32 %v4753_v28, %v2110_v57 }
 0x809   :  { %v2109_v44 = vmul.f32 %v6022_v34, %v7051_v21  ;;  %v5829_v21 = vld [vmem:[#allocation2 + $0x158] sm:$0xff]  }
 0x80a   :  { %v7086_v19 = vadd.f32 %v4754_v16, %v2120_v4 }
 0x80b   :  { %v2119_v39 = vmul.f32 %v4753_v28, %v2109_v44  ;;  %5060 = vmatpush3.bf16.msra.mxu0 %v5821_v11  ;;  %5094 = vmatpush3.bf16.msra.mxu1 %v5822_v43  ;;  %v2178_v28 = vsub.s32 2, %v7004_v37 }
 0x80c   :  { %5061 = vmatprep.subr.bf16.mxu0 %v5823_v51  ;;  %5095 = vmatprep.subr.bf16.mxu1 %v5824_v2 }
 0x80d   :  { %2391 = vmatmul.mubr.bf16.gmra.mrb[40].mxu0 %v2165_v10  ;;  %2454 = vmatmul.mubr.bf16.gmra.mrb[32].mxu1 %v2165_v10  ;;  %v7084_v33 = vadd.f32 %v4754_v16, %v2119_v39  ;;  %v7102_v36 = vrot.slane %v2163_v52, %v2178_v28  ;;  %v7109_v16 = vrot.slane %v2163_v52, %v2182_v26 }
 0x80e   :  { %2400 = vmatprep.mubr.bf16.mxu0 %v6189_v47  ;;  %2463 = vmatprep.mubr.bf16.mxu1 %v6189_v47 }
 0x80f   :  { %5062 = vmatpush3.bf16.msra.mxu0 %v5825_v24  ;;  %5096 = vmatpush3.bf16.msra.mxu1 %v5826_v14  ;;  %v2166_v40 = vpack.c.bf16 %v7086_v19, %v7084_v33 }
 0x810   :  { %5063 = vmatprep.subr.bf16.mxu0 %v5827_v30  ;;  %5097 = vmatprep.subr.bf16.mxu1 %v5828_v13 }
 0x813   :  { %5064 = vmatpush3.bf16.msra.mxu0 %v5829_v21  ;;  %5098 = vmatpush3.bf16.msra.mxu1 %v5830_v3 }
 0x814   :  { %5065 = vmatprep.subr.bf16.mxu0 %v5831_v62  ;;  %5099 = vmatprep.subr.bf16.mxu1 %v5832_v29 }
 0x815   :  { %2401 = vmatmul.mubr.bf16.gmra.mrb[44].mxu0 %v2166_v40  ;;  %2464 = vmatmul.mubr.bf16.gmra.mrb[36].mxu1 %v2166_v40 }
 0x817   :  { %5066 = vmatpush3.bf16.msra.mxu0 %v5833_v17  ;;  %5100 = vmatpush3.bf16.msra.mxu1 %v5834_v55 }
 0x818   :  { %5067 = vmatprep.subr.bf16.mxu0 %v5835_v6  ;;  %5101 = vmatprep.subr.bf16.mxu1 %v5836_v42 }
 0x81b   :  { %5068 = vmatpush3.bf16.msra.mxu0 %v5837_v54  ;;  %5102 = vmatpush3.bf16.msra.mxu1 %v5838_v60 }
 0x81c   :  { %5069 = vmatprep.subr.bf16.mxu0 %v5839_v9  ;;  %5103 = vmatprep.subr.bf16.mxu1 %v5840_v23 }
 0x81f   :  { %5070 = vmatpush3.bf16.msra.mxu0 %v5841_v35  ;;  %5104 = vmatpush3.bf16.msra.mxu1 %v5842_v15 }
 0x820   :  { %5071 = vmatprep.subr.bf16.mxu0 %v5843_v56  ;;  %5105 = vmatprep.subr.bf16.mxu1 %v5844_v38 }
 0x823   :  { %5072 = vmatpush3.bf16.msra.mxu0 %v5845_v45  ;;  %5106 = vmatpush3.bf16.msra.mxu1 %v5846_v18 }
 0x824   :  { %5361 = vmatprep.subr.bf16.mxu1 %v6175_v0  ;;  %5333 = vmatprep.subr.bf16.mxu0 %v6175_v0 }
 0x8d8   :  { %v2382_v48 = vpop.f32.mrb[36].mxu0  ;;  %v2445_v41 = vpop.f32.mrb[28].mxu1 }
 0x8d9   :  { %v2383_v7 = vadd.f32 %v2382_v48, %v7098_v53  ;;  %v2446_v63 = vadd.f32 %v2445_v41, %v7102_v36  ;;  %v2384_v32 = vpop.f32.mrb[37].mxu0  ;;  %v2447_v1 = vpop.f32.mrb[29].mxu1 }
 0x8da   :  { %v2385_v5 = vadd.f32 %v2384_v32, %v7105_v50  ;;  %v2448_v25 = vadd.f32 %v2447_v1, %v7109_v16  ;;  %v2386_v61 = vpop.f32.mrb[38].mxu0  ;;  %v2449_v49 = vpop.f32.mrb[30].mxu1 }
 0x8db   :  { %v2387_v27 = vadd.f32 %v2386_v61, %v7098_v53  ;;  %v2450_v31 = vadd.f32 %v2449_v49, %v7102_v36  ;;  %v2388_v12 = vpop.f32.mrb[39].mxu0  ;;  %v2451_v11 = vpop.f32.mrb[31].mxu1  ;;  %v2474_v51 = vmax.f32 %v2383_v7, 0.0  ;;  %v2476_v2 = vmax.f32 %v2446_v63, 0.0 }
 0x8dc   :  { %v2389_v43 = vadd.f32 %v2388_v12, %v7105_v50  ;;  %v2452_v34 = vadd.f32 %v2451_v11, %v7109_v16  ;;  %v2475_v10 = vmax.f32 %v2385_v5, 0.0  ;;  %v2477_v39 = vmax.f32 %v2448_v25, 0.0 }
 0x8dd   :  { %v2478_v44 = vmax.f32 %v2387_v27, 0.0  ;;  %v2480_v57 = vmax.f32 %v2450_v31, 0.0 }
 0x8de   :  { %v2479_v24 = vmax.f32 %v2389_v43, 0.0  ;;  %v2481_v14 = vmax.f32 %v2452_v34, 0.0 }
 0x8df   :  { %v2498_v30 = vpack.c.bf16 %v2478_v44, %v2474_v51  ;;  %v2500_v13 = vpack.c.bf16 %v2480_v57, %v2476_v2 }
 0x8e0   :  { %v2499_v4 = vpack.c.bf16 %v2479_v24, %v2475_v10  ;;  %v2501_v21 = vpack.c.bf16 %v2481_v14, %v2477_v39  ;;  %v2392_v3 = vpop.f32.mrb[40].mxu0  ;;  %v2455_v62 = vpop.f32.mrb[32].mxu1 }
 0x8e1   :  { %v2393_v29 = vadd.f32 %v2392_v3, %v7098_v53  ;;  %v2456_v40 = vadd.f32 %v2455_v62, %v7102_v36  ;;  %v2394_v17 = vpop.f32.mrb[41].mxu0  ;;  %v2457_v55 = vpop.f32.mrb[33].mxu1 }
 0x8e2   :  { %v2395_v6 = vadd.f32 %v2394_v17, %v7105_v50  ;;  %v2458_v42 = vadd.f32 %v2457_v55, %v7109_v16  ;;  %v2396_v54 = vpop.f32.mrb[42].mxu0  ;;  %v2459_v60 = vpop.f32.mrb[34].mxu1  ;;  %2803 = vmatprep.mubr.bf16.mxu0 %v2499_v4  ;;  %2860 = vmatprep.mubr.bf16.mxu1 %v2501_v21 }
 0x8e3   :  { %v2397_v9 = vadd.f32 %v2396_v54, %v7098_v53  ;;  %v2460_v23 = vadd.f32 %v2459_v60, %v7102_v36  ;;  %v2398_v35 = vpop.f32.mrb[43].mxu0  ;;  %v2461_v15 = vpop.f32.mrb[35].mxu1  ;;  %2804 = vmatmul.mubr.bf16.vlgmr.msra.gmra.mrb[48].mxu0 %v2498_v30  ;;  %2861 = vmatmul.mubr.bf16.vlgmr.msra.gmra.mrb[40].mxu1 %v2500_v13  ;;  %v2482_v45 = vmax.f32 %v2393_v29, 0.0  ;;  %v2484_v18 = vmax.f32 %v2456_v40, 0.0 }
 0x8e4   :  { %v2399_v56 = vadd.f32 %v2398_v35, %v7105_v50  ;;  %v2462_v38 = vadd.f32 %v2461_v15, %v7109_v16  ;;  %v2483_v41 = vmax.f32 %v2395_v6, 0.0  ;;  %v2485_v7 = vmax.f32 %v2458_v42, 0.0  ;;  %v4787_v42 = vld [vmem:[%s7465_s3 + $0xb] ss:$0 sm:$0xff] }
 0x8e5   :  { %v2486_v52 = vmax.f32 %v2397_v9, 0.0  ;;  %v2488_v48 = vmax.f32 %v2460_v23, 0.0 }
 0x8e6   :  { %v2487_v63 = vmax.f32 %v2399_v56, 0.0  ;;  %v2489_v32 = vmax.f32 %v2462_v38, 0.0 }
 0x8e7   :  { %v2502_v1 = vpack.c.bf16 %v2486_v52, %v2482_v45  ;;  %v2504_v5 = vpack.c.bf16 %v2488_v48, %v2484_v18 }
 0x8e8   :  { %v2503_v25 = vpack.c.bf16 %v2487_v63, %v2483_v41  ;;  %v2505_v61 = vpack.c.bf16 %v2489_v32, %v2485_v7  ;;  %v2402_v49 = vpop.f32.mrb[44].mxu0  ;;  %v2465_v27 = vpop.f32.mrb[36].mxu1 }
 0x8e9   :  { %v2403_v31 = vadd.f32 %v2402_v49, %v7098_v53  ;;  %v2466_v12 = vadd.f32 %v2465_v27, %v7102_v36  ;;  %v2404_v11 = vpop.f32.mrb[45].mxu0  ;;  %v2467_v43 = vpop.f32.mrb[37].mxu1 }
 0x8ea   :  { %v2405_v34 = vadd.f32 %v2404_v11, %v7105_v50  ;;  %v2468_v51 = vadd.f32 %v2467_v43, %v7109_v16  ;;  %v2406_v2 = vpop.f32.mrb[46].mxu0  ;;  %v2469_v44 = vpop.f32.mrb[38].mxu1  ;;  %2811 = vmatprep.mubr.bf16.mxu0 %v2503_v25  ;;  %2868 = vmatprep.mubr.bf16.mxu1 %v2505_v61 }
 0x8eb   :  { %v2407_v57 = vadd.f32 %v2406_v2, %v7098_v53  ;;  %v2470_v10 = vadd.f32 %v2469_v44, %v7102_v36  ;;  %v2408_v39 = vpop.f32.mrb[47].mxu0  ;;  %v2471_v24 = vpop.f32.mrb[39].mxu1  ;;  %2812 = vmatmul.mubr.bf16.gmra.mrb[52].mxu0 %v2502_v1  ;;  %2869 = vmatmul.mubr.bf16.gmra.mrb[44].mxu1 %v2504_v5  ;;  %v2490_v13 = vmax.f32 %v2403_v31, 0.0  ;;  %v2492_v4 = vmax.f32 %v2466_v12, 0.0 }
 0x8ec   :  { %v2409_v14 = vadd.f32 %v2408_v39, %v7105_v50  ;;  %v2472_v30 = vadd.f32 %v2471_v24, %v7109_v16  ;;  %v2491_v62 = vmax.f32 %v2405_v34, 0.0  ;;  %v2493_v29 = vmax.f32 %v2468_v51, 0.0 }
 0x8ed   :  { %v2494_v21 = vmax.f32 %v2407_v57, 0.0  ;;  %v2496_v3 = vmax.f32 %v2470_v10, 0.0 }
 0x8ee   :  { %v2495_v40 = vmax.f32 %v2409_v14, 0.0  ;;  %v2497_v17 = vmax.f32 %v2472_v30, 0.0 }
 0x8ef   :  { %v2506_v55 = vpack.c.bf16 %v2494_v21, %v2490_v13  ;;  %v2508_v53 = vpack.c.bf16 %v2496_v3, %v2492_v4 }
 0x8f0   :  { %v2507_v6 = vpack.c.bf16 %v2495_v40, %v2491_v62  ;;  %v2509_v36 = vpack.c.bf16 %v2497_v17, %v2493_v29 }
 0x8f2   :  { %2819 = vmatprep.mubr.bf16.mxu0 %v2507_v6  ;;  %2876 = vmatprep.mubr.bf16.mxu1 %v2509_v36 }
 0x8f3   :  { %2820 = vmatmul.mubr.bf16.gmra.mrb[56].mxu0 %v2506_v55  ;;  %2877 = vmatmul.mubr.bf16.gmra.mrb[48].mxu1 %v2508_v53 }
 0x8f4   :  { %5377 = vmatprep.mubr.msk.bf16.mxu1 %vm6186_vm8, %v6175_v0  ;;  %5349 = vmatprep.mubr.msk.bf16.mxu0 %vm6186_vm8, %v6175_v0 }
 0x9b6   :  { %v5073_v50 = vpop.f32.mrb[48].mxu0  ;;  %v5107_v16 = vpop.f32.mrb[40].mxu1 }
 0x9b7   :  { %v5074_v54 = vpop.f32.mrb[49].mxu0  ;;  %v5108_v60 = vpop.f32.mrb[41].mxu1 }
 0x9b8   :  { %v5075_v9 = vadd.f32 %v5074_v54, %v5073_v50  ;;  %v5109_v23 = vadd.f32 %v5108_v60, %v5107_v16  ;;  %v5076_v35 = vpop.f32.mrb[50].mxu0  ;;  %v5110_v15 = vpop.f32.mrb[42].mxu1 }
 0x9b9   :  { %v5077_v56 = vpop.f32.mrb[51].mxu0  ;;  %v5111_v38 = vpop.f32.mrb[43].mxu1 }
 0x9ba   :  { %v2806_v45 = vadd.f32 %v5075_v9, %v4787_v42  ;;  %v5078_v18 = vadd.f32 %v5077_v56, %v5076_v35  ;;  %v5112_v52 = vadd.f32 %v5111_v38, %v5110_v15 }
 0x9bc   :  { %v2863_v48 = vadd.f32 %v5109_v23, %v2806_v45  ;;  %v2809_v41 = vadd.f32 %v5078_v18, %v4787_v42 }
 0x9be   :  { %v2866_v7 = vadd.f32 %v5112_v52, %v2809_v41  ;;  %v5079_v63 = vpop.f32.mrb[52].mxu0  ;;  %v5113_v32 = vpop.f32.mrb[44].mxu1  ;;  %v2885_v54 = vadd.f32 %v2863_v48, %v7064_v8 }
 0x9bf   :  { %v5080_v1 = vpop.f32.mrb[53].mxu0  ;;  %v5114_v5 = vpop.f32.mrb[45].mxu1 }
 0x9c0   :  { %v5081_v25 = vadd.f32 %v5080_v1, %v5079_v63  ;;  %v5115_v61 = vadd.f32 %v5114_v5, %v5113_v32  ;;  %v5082_v49 = vpop.f32.mrb[54].mxu0  ;;  %v5116_v27 = vpop.f32.mrb[46].mxu1 }
 0x9c1   :  { %v5083_v31 = vpop.f32.mrb[55].mxu0  ;;  %v5117_v12 = vpop.f32.mrb[47].mxu1 }
 0x9c2   :  { %v2814_v11 = vadd.f32 %v5081_v25, %v4787_v42  ;;  %v5084_v43 = vadd.f32 %v5083_v31, %v5082_v49  ;;  %v5118_v34 = vadd.f32 %v5117_v12, %v5116_v27  ;;  %v5847_v27 = vld [vmem:[#allocation2 + $0x380] sm:$0xff]   ;;  %v5848_v31 = vld [vmem:[#allocation2 + $0x388] sm:$0xff]   ;;  %v5849_v12 = vld [vmem:[#allocation2 + $0x390] sm:$0xff]  }
 0x9c3   :  { %5362 = vmatpush3.bf16.msra.mxu1 %v5847_v27 }
 0x9c4   :  { %v2871_v51 = vadd.f32 %v5115_v61, %v2814_v11  ;;  %v2817_v2 = vadd.f32 %v5084_v43, %v4787_v42  ;;  %5363 = vmatprep.subr.bf16.mxu1 %v6175_v0  ;;  %v5850_v11 = vld [vmem:[#allocation2 + $0x398] sm:$0xff]   ;;  %v5851_v43 = vld [vmem:[#allocation2 + $0x3a0] sm:$0xff]  }
 0x9c6   :  { %v2874_v44 = vadd.f32 %v5118_v34, %v2817_v2  ;;  %v5085_v57 = vpop.f32.mrb[56].mxu0  ;;  %v5119_v10 = vpop.f32.mrb[48].mxu1  ;;  %v2887_v39 = vadd.f32 %v2871_v51, %v7074_v59  ;;  %v5852_v34 = vld [vmem:[#allocation2 + $0x3a8] sm:$0xff]   ;;  %v5853_v51 = vld [vmem:[#allocation2 + $0x3b0] sm:$0xff]   ;;  %v5854_v2 = vld [vmem:[#allocation2 + $0x3b8] sm:$0xff]  }
 0x9c7   :  { %v5086_v24 = vpop.f32.mrb[57].mxu0  ;;  %v5120_v14 = vpop.f32.mrb[49].mxu1  ;;  %5364 = vmatpush3.bf16.msra.mxu1 %v5848_v31 }
 0x9c8   :  { %v5087_v30 = vadd.f32 %v5086_v24, %v5085_v57  ;;  %v5121_v13 = vadd.f32 %v5120_v14, %v5119_v10  ;;  %v5088_v4 = vpop.f32.mrb[58].mxu0  ;;  %v5122_v21 = vpop.f32.mrb[50].mxu1  ;;  %2897 = vadd.xlane.f32.xlu0 %v2887_v39  ;;  %v2888_v3 = vadd.f32 %v2874_v44, %v7076_v22  ;;  %v2886_v22 = vadd.f32 %v2866_v7, %v7066_v58  ;;  %v5855_v44 = vld [vmem:[#allocation2 + $0x400] sm:$0xff]   ;;  %v5856_v57 = vld [vmem:[#allocation2 + $0x408] sm:$0xff]   ;;  %v5857_v10 = vld [vmem:[#allocation2 + $0x410] sm:$0xff]  }
 0x9c9   :  { %v5089_v62 = vpop.f32.mrb[59].mxu0  ;;  %v5123_v29 = vpop.f32.mrb[51].mxu1  ;;  %5365 = vmatprep.subr.bf16.mxu1 %v6175_v0  ;;  %5334 = vmatpush3.bf16.msra.mxu0 %v5855_v44  ;;  %v5859_v24 = vld [vmem:[#allocation2 + $0x420] sm:$0xff]  }
 0x9ca   :  { %v2822_v40 = vadd.f32 %v5087_v30, %v4787_v42  ;;  %v5090_v17 = vadd.f32 %v5089_v62, %v5088_v4  ;;  %v5124_v55 = vadd.f32 %v5123_v29, %v5122_v21  ;;  %2899 = vadd.xlane.f32.xlu1 %v2888_v3  ;;  %5335 = vmatprep.subr.bf16.mxu0 %v6175_v0 }
 0x9cb   :  { %5366 = vmatpush3.bf16.msra.mxu1 %v5849_v12 }
 0x9cc   :  { %v2879_v53 = vadd.f32 %v5121_v13, %v2822_v40  ;;  %v2825_v6 = vadd.f32 %v5090_v17, %v4787_v42  ;;  %5367 = vmatprep.subr.bf16.mxu1 %v6175_v0 }
 0x9cd   :  { %5336 = vmatpush3.bf16.msra.mxu0 %v5856_v57 }
 0x9ce   :  { %v2882_v36 = vadd.f32 %v5124_v55, %v2825_v6  ;;  %v2889_v59 = vadd.f32 %v2879_v53, %v7084_v33  ;;  %5337 = vmatprep.subr.bf16.mxu0 %v6175_v0 }
 0x9cf   :  { %5368 = vmatpush3.bf16.msra.mxu1 %v5850_v11 }
 0x9d0   :  { %2901 = vadd.xlane.f32.xlu0 %v2889_v59  ;;  %v2890_v50 = vadd.f32 %v2882_v36, %v7086_v19  ;;  %5369 = vmatprep.subr.bf16.mxu1 %v6175_v0 }
 0x9d1   :  { %5338 = vmatpush3.bf16.msra.mxu0 %v5857_v10 }
 0x9d2   :  { %v2903_v16 = vsel %vm99_vm4, %v2890_v50, 0.0  ;;  %5339 = vmatprep.subr.bf16.mxu0 %v6175_v0 }
 0x9d3   :  { %2904 = vadd.xlane.f32.xlu1 %v2903_v16  ;;  %5370 = vmatpush3.bf16.msra.mxu1 %v5851_v43 }
 0x9d4   :  { %2893 = vadd.xlane.f32.xlu0 %v2885_v54  ;;  %5371 = vmatprep.subr.bf16.mxu1 %v6175_v0 }
 0x9d7   :  { %2895 = vadd.xlane.f32.xlu1 %v2886_v22  ;;  %5372 = vmatpush3.bf16.msra.mxu1 %v5852_v34 }
 0x9d8   :  { %5373 = vmatprep.subr.bf16.mxu1 %v6175_v0 }
 0x9db   :  { %5374 = vmatpush3.bf16.msra.mxu1 %v5853_v51 }
 0x9dc   :  { %5375 = vmatprep.subr.bf16.mxu1 %v6175_v0 }
 0x9df   :  { %5376 = vmatpush3.bf16.msra.mxu1 %v5854_v2 }
 0xa55   :  { %v2898_v60 = vpop.xlane.xlu0 %2897 }
 0xa56   :  { %v2908_v9 = vmul.f32 0.0078125, %v2898_v60 }
 0xa57   :  { %v2900_v23 = vpop.xlane.xlu1 %2899 }
 0xa58   :  { %v7149_v35 = vsub.f32 %v2887_v39, %v2908_v9  ;;  %v2909_v42 = vmul.f32 0.0078125, %v2900_v23  ;;  %v5858_v39 = vld [vmem:[#allocation2 + $0x418] sm:$0xff]  }
 0xa59   :  { %5340 = vmatpush3.bf16.msra.mxu0 %v5858_v39 }
 0xa5a   :  { %v7151_v15 = vsub.f32 %v2888_v3, %v2909_v42  ;;  %v2920_v33 = vmul.f32 %v7149_v35, %v7149_v35  ;;  %5341 = vmatprep.subr.bf16.mxu0 %v6175_v0  ;;  %v4820_v42 = vld [vmem:[%s7465_s3 + $0xc] ss:$0 sm:$0xff] }
 0xa5c   :  { %2928 = vadd.xlane.f32.xlu0 %v2920_v33  ;;  %v2921_v8 = vmul.f32 %v7151_v15, %v7151_v15 }
 0xa5d   :  { %v2902_v19 = vpop.xlane.xlu0 %2901  ;;  %5342 = vmatpush3.bf16.msra.mxu0 %v5859_v24 }
 0xa5e   :  { %v2910_v56 = vmul.f32 0.0078125, %v2902_v19  ;;  %2930 = vadd.xlane.f32.xlu1 %v2921_v8  ;;  %5343 = vmatprep.subr.bf16.mxu0 %v6175_v0 }
 0xa60   :  { %v7157_v58 = vsub.f32 %v2889_v59, %v2910_v56  ;;  %v2905_v38 = vpop.xlane.xlu1 %2904 }
 0xa61   :  { %v2911_v45 = vmul.f32 0.0078125, %v2905_v38  ;;  %v2894_v18 = vpop.xlane.xlu0 %2893  ;;  %v4821_v38 = vld [vmem:[%s7465_s3 + $0xd] ss:$0 sm:$0xff] }
 0xa62   :  { %v2906_v52 = vmul.f32 0.0078125, %v2894_v18  ;;  %v2922_v48 = vmul.f32 %v7157_v58, %v7157_v58 }
 0xa63   :  { %v7161_v41 = vsub.f32 %v2890_v50, %v2911_v45 }
 0xa64   :  { %v7163_v7 = vsub.f32 %v2885_v54, %v2906_v52  ;;  %v2896_v63 = vpop.xlane.xlu1 %2895  ;;  %2932 = vadd.xlane.f32.xlu0 %v2922_v48 }
 0xa65   :  { %v2907_v32 = vmul.f32 0.0078125, %v2896_v63  ;;  %v2923_v1 = vmul.f32 %v7161_v41, %v7161_v41 }
 0xa66   :  { %v2918_v5 = vmul.f32 %v7163_v7, %v7163_v7 }
 0xa67   :  { %v7169_v25 = vsub.f32 %v2886_v22, %v2907_v32  ;;  %v2934_v61 = vsel %vm99_vm4, %v2923_v1, 0.0 }
 0xa68   :  { %2935 = vadd.xlane.f32.xlu1 %v2934_v61  ;;  %2924 = vadd.xlane.f32.xlu0 %v2918_v5 }
 0xa69   :  { %v2919_v49 = vmul.f32 %v7169_v25, %v7169_v25 }
 0xa6c   :  { %2926 = vadd.xlane.f32.xlu1 %v2919_v49 }
 0xae9   :  { %v2929_v14 = vpop.xlane.xlu0 %2928 }
 0xaea   :  { %v2939_v30 = vmul.f32 0.0078125, %v2929_v14 }
 0xaeb   :  { %v2931_v13 = vpop.xlane.xlu1 %2930 }
 0xaec   :  { %v2940_v4 = vmul.f32 0.0078125, %v2931_v13  ;;  %v2945_v21 = vadd.f32 1e-05, %v2939_v30 }
 0xaee   :  { %v2946_v3 = vadd.f32 1e-05, %v2940_v4 }
 0xaf0   :  { %6023 = vrsqrt.f32 %v2946_v3 }
 0xaf1   :  { %6025 = vrsqrt.f32 %v2945_v21  ;;  %v2933_v62 = vpop.xlane.xlu0 %2932 }
 0xaf2   :  { %v2941_v29 = vmul.f32 0.0078125, %v2933_v62 }
 0xaf4   :  { %v2947_v40 = vadd.f32 1e-05, %v2941_v29 }
 0xaf5   :  { %v2936_v17 = vpop.xlane.xlu1 %2935  ;;  %v2925_v55 = vpop.xlane.xlu0 %2924 }
 0xaf6   :  { %6027 = vrsqrt.f32 %v2947_v40  ;;  %v2942_v53 = vmul.f32 0.0078125, %v2936_v17  ;;  %v2937_v6 = vmul.f32 0.0078125, %v2925_v55 }
 0xaf8   :  { %v2948_v36 = vadd.f32 1e-05, %v2942_v53  ;;  %v2943_v59 = vadd.f32 1e-05, %v2937_v6 }
 0xaf9   :  { %v2927_v50 = vpop.xlane.xlu1 %2926 }
 0xafa   :  { %v6024_v16 = vpop.eup %6023  ;;  %6029 = vrsqrt.f32 %v2948_v36  ;;  %v2938_v54 = vmul.f32 0.0078125, %v2927_v50  ;;  %v5860_v50 = vld [vmem:[#allocation2 + $0x428] sm:$0xff]  }
 0xafb   :  { %v6026_v22 = vpop.eup %6025  ;;  %6031 = vrsqrt.f32 %v2943_v59  ;;  %v2958_v9 = vmul.f32 %v6024_v16, %v7151_v15  ;;  %5344 = vmatpush3.bf16.msra.mxu0 %v5860_v50 }
 0xafc   :  { %v2944_v60 = vadd.f32 1e-05, %v2938_v54  ;;  %v2957_v23 = vmul.f32 %v6026_v22, %v7149_v35  ;;  %5345 = vmatprep.subr.bf16.mxu0 %v6175_v0  ;;  %v5861_v22 = vld [vmem:[#allocation2 + $0x430] sm:$0xff]  }
 0xafd   :  { %v2968_v8 = vmul.f32 %v4820_v42, %v2958_v9  ;;  %v4822_v9 = vld [vmem:[%s7465_s3 + $0xe] ss:$0 sm:$0xff] }
 0xafe   :  { %6033 = vrsqrt.f32 %v2944_v60  ;;  %v2967_v56 = vmul.f32 %v4820_v42, %v2957_v23  ;;  %v5862_v60 = vld [vmem:[#allocation2 + $0x438] sm:$0xff]  }
 0xaff   :  { %v7195_v52 = vadd.f32 %v4821_v38, %v2968_v8  ;;  %5346 = vmatpush3.bf16.msra.mxu0 %v5861_v22 }
 0xb00   :  { %v6028_v33 = vpop.eup %6027  ;;  %v7201_v32 = vadd.f32 %v4821_v38, %v2967_v56  ;;  %5347 = vmatprep.subr.bf16.mxu0 %v6175_v0 }
 0xb01   :  { %v2959_v19 = vmul.f32 %v6028_v33, %v7157_v58  ;;  %v3208_v49 = vrot.slane %v7195_v52, 7  ;;  %v4823_v33 = vld [vmem:[%s7465_s3 + $0xf] ss:$0 sm:$0xff] }
 0xb02   :  { %v3194_v39 = vsel %vm86_vm2, %v7201_v32, 0.0 }
 0xb03   :  { %v2969_v45 = vmul.f32 %v4820_v42, %v2959_v19  ;;  %5348 = vmatpush3.bf16.msra.mxu0 %v5862_v60 }
 0xb04   :  { %v6030_v18 = vpop.eup %6029 }
 0xb05   :  { %v6032_v15 = vpop.eup %6031  ;;  %v2960_v35 = vmul.f32 %v6030_v18, %v7161_v41  ;;  %v7198_v48 = vadd.f32 %v4821_v38, %v2969_v45  ;;  %v3207_v41 = vrot.slane %v7201_v32, 7 }
 0xb06   :  { %v2955_v63 = vmul.f32 %v6032_v15, %v7163_v7 }
 0xb07   :  { %v3210_v58 = vrot.slane %v7198_v48, 7  ;;  %v2970_v1 = vmul.f32 %v4820_v42, %v2960_v35  ;;  %v3209_v34 = vsel %vm71_vm6, %v3207_v41, %v3208_v49 }
 0xb08   :  { %v6034_v5 = vpop.eup %6033  ;;  %v2965_v61 = vmul.f32 %v4820_v42, %v2955_v63 }
 0xb09   :  { %v2956_v27 = vmul.f32 %v6034_v5, %v7169_v25  ;;  %v7206_v31 = vadd.f32 %v4821_v38, %v2970_v1  ;;  %v3211_v11 = vsel %vm71_vm6, %v3208_v49, %v3210_v58 }
 0xb0a   :  { %v7208_v12 = vadd.f32 %v4821_v38, %v2965_v61  ;;  %v3217_v2 = vadd.f32 %v3211_v11, %v3209_v34 }
 0xb0b   :  { %v2966_v7 = vmul.f32 %v4820_v42, %v2956_v27  ;;  %v3212_v43 = vrot.slane %v7206_v31, 7  ;;  %v2991_v3 = vsel %vm99_vm4, %v7206_v31, 0.0 }
 0xb0c   :  { %2981 = vadd.xlane.f32.xlu0 %v7208_v12 }
 0xb0d   :  { %v7215_v51 = vadd.f32 %v4821_v38, %v2966_v7  ;;  %v3213_v25 = vsel %vm71_vm6, %v3210_v58, %v3212_v43 }
 0xb0e   :  { %v3218_v44 = vsel %vm86_vm2, %v3213_v25, 0.0 }
 0xb0f   :  { %2983 = vadd.xlane.f32.xlu1 %v7215_v51  ;;  %v3193_v57 = vadd.f32 %v7215_v51, %v7208_v12  ;;  %v3219_v10 = vadd.f32 %v3218_v44, %v3217_v2 }
 0xb10   :  { %2985 = vadd.xlane.f32.xlu0 %v7201_v32 }
 0xb11   :  { %v3195_v24 = vadd.f32 %v3194_v39, %v3193_v57  ;;  %v3220_v14 = vrot.slane %v3219_v10, 4 }
 0xb13   :  { %2987 = vadd.xlane.f32.xlu1 %v7195_v52  ;;  %v3196_v30 = vrot.slane %v3195_v24, 4  ;;  %v3221_v13 = vadd.f32 %v3220_v14, %v3219_v10 }
 0xb14   :  { %2989 = vadd.xlane.f32.xlu0 %v7198_v48 }
 0xb15   :  { %v3197_v4 = vadd.f32 %v3196_v30, %v3195_v24  ;;  %v3222_v21 = vrot.slane %v3221_v13, 2 }
 0xb17   :  { %2992 = vadd.xlane.f32.xlu1 %v2991_v3  ;;  %v3198_v62 = vrot.slane %v3197_v4, 2  ;;  %v3223_v29 = vadd.f32 %v3222_v21, %v3221_v13  ;;  %v4839_v21 = vld [vmem:[%s7465_s3 + $0x11] ss:$0 sm:$0xff] }
 0xb19   :  { %v3199_v40 = vadd.f32 %v3198_v62, %v3197_v4  ;;  %v3224_v17 = vrot.slane %v3223_v29, 1 }
 0xb1b   :  { %v3200_v55 = vrot.slane %v3199_v40, 1  ;;  %v3225_v53 = vadd.f32 %v3224_v17, %v3223_v29  ;;  %v4848_v17 = vld [vmem:[%s7465_s3 + $0x12] ss:$0 sm:$0xff] }
 0xb1d   :  { %v3201_v6 = vadd.f32 %v3200_v55, %v3199_v40  ;;  %v3226_v59 = vmul.f32 0.04347826, %v3225_v53 }
 0xb1f   :  { %v3202_v36 = vmul.f32 0.04347826, %v3201_v6 }
 0xb21   :  { %v3227_v16 = vsel %vm71_vm6, %v3202_v36, %v3226_v59 }
 0xb22   :  { %v3228_v54 = vpack.c.bf16 %v3227_v16, %v3227_v16 }
 0xb24   :  { %5378 = vmatmul.mubr.bf16.vlgmr.msra.gmra.mrb[52].mxu1 %v3228_v54 }
 0xb25   :  { %3841 = vmatprep.mubr.bf16.mxu1 %v6189_v47 }
 0xb99   :  { %v2982_v23 = vpop.xlane.xlu0 %2981 }
 0xb9a   :  { %v2994_v42 = vmul.f32 0.0078125, %v2982_v23 }
 0xb9c   :  { %v3005_v8 = vmul.f32 %v4822_v9, %v2994_v42  ;;  %v2984_v19 = vpop.xlane.xlu1 %2983 }
 0xb9d   :  { %v2995_v56 = vmul.f32 0.0078125, %v2984_v19  ;;  %v2986_v38 = vpop.xlane.xlu0 %2985 }
 0xb9e   :  { %v3016_v45 = vadd.f32 %v4823_v33, %v3005_v8  ;;  %v2996_v15 = vmul.f32 0.0078125, %v2986_v38 }
 0xb9f   :  { %v3006_v18 = vmul.f32 %v4822_v9, %v2995_v56 }
 0xba0   :  { %v2988_v35 = vpop.xlane.xlu1 %2987  ;;  %v3022_v1 = vmax.f32 %v3016_v45, 0.0  ;;  %v3007_v61 = vmul.f32 %v4822_v9, %v2996_v15 }
 0xba1   :  { %v3017_v63 = vadd.f32 %v4823_v33, %v3006_v18  ;;  %v2997_v58 = vmul.f32 0.0078125, %v2988_v35  ;;  %v2990_v27 = vpop.xlane.xlu0 %2989 }
 0xba2   :  { %v3018_v34 = vadd.f32 %v4823_v33, %v3007_v61  ;;  %v2998_v2 = vmul.f32 0.0078125, %v2990_v27  ;;  %v4824_v61 = vld [vmem:[%s7465_s3 + $0x10] ss:$0 sm:$0xff] }
 0xba3   :  { %v3023_v5 = vmax.f32 %v3017_v63, 0.0  ;;  %v3008_v49 = vmul.f32 %v4822_v9, %v2997_v58 }
 0xba4   :  { %v2993_v41 = vpop.xlane.xlu1 %2992  ;;  %v3024_v57 = vmax.f32 %v3018_v34, 0.0  ;;  %v3009_v10 = vmul.f32 %v4822_v9, %v2998_v2 }
 0xba5   :  { %v3028_v11 = vpack.c.bf16 %v3023_v5, %v3022_v1  ;;  %v3019_v7 = vadd.f32 %v4823_v33, %v3008_v49  ;;  %v2999_v43 = vmul.f32 0.0078125, %v2993_v41 }
 0xba6   :  { %v3020_v14 = vadd.f32 %v4823_v33, %v3009_v10 }
 0xba7   :  { %5350 = vmatmul.mubr.bf16.vlgmr.msra.gmra.mrb[60].mxu0 %v3028_v11  ;;  %v3025_v25 = vmax.f32 %v3019_v7, 0.0  ;;  %v3010_v44 = vmul.f32 %v4822_v9, %v2999_v43 }
 0xba8   :  { %5353 = vmatprep.mubr.msk.bf16.mxu0 %vm6186_vm8, %v6175_v0  ;;  %v3026_v13 = vmax.f32 %v3020_v14, 0.0 }
 0xba9   :  { %v3021_v39 = vadd.f32 %v4823_v33, %v3010_v44  ;;  %v3029_v24 = vpack.c.bf16 %v3025_v25, %v3024_v57  ;;  %v4849_v33 = vld [vmem:[%s7465_s3 + $0x13] ss:$0 sm:$0xff] }
 0xbab   :  { %v3027_v30 = vmax.f32 %v3021_v39, 0.0 }
 0xbad   :  { %v3030_v4 = vpack.c.bf16 %v3027_v30, %v3026_v13 }
 0xbaf   :  { %5354 = vmatmul.mubr.bf16.gmra.mrb[64].mxu0 %v3029_v24 }
 0xbb0   :  { %5357 = vmatprep.mubr.msk.bf16.mxu0 %vm6186_vm8, %v6175_v0 }
 0xbb7   :  { %5358 = vmatmul.mubr.bf16.gmra.mrb[68].mxu0 %v3030_v4 }
 0xbb8   :  { %3778 = vmatprep.mubr.bf16.mxu0 %v6189_v47 }
 0xbf7   :  { %v3332_v3 = vpop.f32.mrb[52].mxu1 }
 0xbf8   :  { %v3333_v62 = vadd.f32 %v4839_v21, %v3332_v3  ;;  %v5379_v29 = vpop.f32.mrb[53].mxu1 }
 0xbf9   :  { %v3335_v40 = vpop.f32.mrb[54].mxu1 }
 0xbfa   :  { %v3338_v55 = vmax.f32 %v3333_v62, 0.0  ;;  %v5380_v53 = vpop.f32.mrb[55].mxu1 }
 0xbfc   :  { %v3344_v6 = vmul.f32 %v4848_v17, %v3338_v55 }
 0xbfe   :  { %v3345_v36 = vsel %vm62_vm1, %v3344_v6, 0.0 }
 0xbff   :  { %3346 = vadd.xlane.f32.xlu0 %v3345_v36 }
 0xc7a   :  { %v3134_v59 = vpop.f32.mrb[60].mxu0 }
 0xc7b   :  { %v5351_v50 = vpop.f32.mrb[61].mxu0  ;;  %v3135_v49 = vadd.f32 %v4824_v61, %v3134_v59 }
 0xc7c   :  { %v3137_v16 = vpop.f32.mrb[62].mxu0 }
 0xc7d   :  { %v5352_v54 = vpop.f32.mrb[63].mxu0  ;;  %v3138_v27 = vadd.f32 %v4824_v61, %v3137_v16  ;;  %v4833_v7 = vmul.f32 -1.442695, %v3135_v49 }
 0xc7f   :  { %v4834_v34 = vmul.f32 -1.442695, %v3138_v27 }
 0xc82   :  { %v3142_v22 = vpop.f32.mrb[64].mxu0 }
 0xc83   :  { %v5355_v60 = vpop.f32.mrb[65].mxu0  ;;  %v3143_v41 = vadd.f32 %v4824_v61, %v3142_v22 }
 0xc84   :  { %v3145_v9 = vpop.f32.mrb[66].mxu0 }
 0xc85   :  { %v5356_v23 = vpop.f32.mrb[67].mxu0  ;;  %v3146_v11 = vadd.f32 %v4824_v61, %v3145_v9  ;;  %v4835_v25 = vmul.f32 -1.442695, %v3143_v41 }
 0xc87   :  { %v4836_v44 = vmul.f32 -1.442695, %v3146_v11 }
 0xc8a   :  { %v3150_v42 = vpop.f32.mrb[68].mxu0 }
 0xc8b   :  { %v5359_v8 = vpop.f32.mrb[69].mxu0  ;;  %v3151_v43 = vadd.f32 %v4824_v61, %v3150_v42 }
 0xc8c   :  { %v3153_v19 = vpop.f32.mrb[70].mxu0  ;;  %v3347_v56 = vpop.xlane.xlu0 %3346 }
 0xc8d   :  { %v3353_v38 = vadd.f32 %v4849_v33, %v3347_v56  ;;  %v5360_v45 = vpop.f32.mrb[71].mxu0  ;;  %v3154_v2 = vadd.f32 %v4824_v61, %v3153_v19  ;;  %v4837_v57 = vmul.f32 -1.442695, %v3151_v43 }
 0xc8f   :  { %v4850_v18 = vmul.f32 -1.442695, %v3353_v38  ;;  %v4838_v10 = vmul.f32 -1.442695, %v3154_v2 }
 0xc91   :  { %6035 = vpow2.f32 %v4850_v18 }
 0xc9b   :  { %v6036_v15 = vpop.eup %6035 }
 0xc9c   :  { %v3357_v35 = vadd.f32 1.0, %v6036_v15 }
 0xc9e   :  { %6037 = vrcp.f32 %v3357_v35 }
 0xc9f   :  { %6039 = vpow2.f32 %v4833_v7 }
 0xca0   :  { %6041 = vpow2.f32 %v4834_v34 }
 0xca1   :  { %6043 = vpow2.f32 %v4835_v25 }
 0xca2   :  { %6045 = vpow2.f32 %v4836_v44 }
 0xca3   :  { %6047 = vpow2.f32 %v4837_v57 }
 0xca4   :  { %6049 = vpow2.f32 %v4838_v10 }
 0xca8   :  { %v6038_v63 = vpop.eup %6037 }
 0xca9   :  { %v3363_v58 = vrot.slane %v6038_v63, %v7007_v20  ;;  %v3367_v1 = vrot.slane %v6038_v63, %v7010_v46  ;;  %v6040_v39 = vpop.eup %6039 }
 0xcaa   :  { %v6042_v24 = vpop.eup %6041  ;;  %v3175_v13 = vadd.f32 1.0, %v6040_v39 }
 0xcab   :  { %3372 = vperm.xlu1 %5702, %v3363_v58   ;;  %v3370_v5 = vsel %vm86_vm2, %v3363_v58, %v3367_v1  ;;  %v6044_v14 = vpop.eup %6043  ;;  %v3176_v21 = vadd.f32 1.0, %v6042_v24 }
 0xcac   :  { %3377 = vperm.xlu0 %5703, %v3370_v5   ;;  %v6046_v30 = vpop.eup %6045  ;;  %v3177_v62 = vadd.f32 1.0, %v6044_v14  ;;  %6051 = vrcp.f32 %v3175_v13 }
 0xcad   :  { %v6048_v4 = vpop.eup %6047  ;;  %v3178_v29 = vadd.f32 1.0, %v6046_v30  ;;  %6053 = vrcp.f32 %v3176_v21 }
 0xcae   :  { %v6050_v3 = vpop.eup %6049  ;;  %v3179_v40 = vadd.f32 1.0, %v6048_v4  ;;  %6055 = vrcp.f32 %v3177_v62 }
 0xcaf   :  { %3381 = vperm.xlu1 %5702, %v3367_v1   ;;  %v3180_v17 = vadd.f32 1.0, %v6050_v3  ;;  %6057 = vrcp.f32 %v3178_v29 }
 0xcb0   :  { %6059 = vrcp.f32 %v3179_v40 }
 0xcb1   :  { %6061 = vrcp.f32 %v3180_v17  ;;  %v5863_v17 = vld [vmem:[#allocation4 + $0x100] ss:$16 sps:$4 sm:$0xff]  }
 0xcb6   :  { %v6052_v55 = vpop.eup %6051 }
 0xcb7   :  { %v6054_v53 = vpop.eup %6053 }
 0xcb8   :  { %v6056_v36 = vpop.eup %6055 }
 0xcb9   :  { %v6058_v54 = vpop.eup %6057 }
 0xcba   :  { %v6060_v60 = vpop.eup %6059 }
 0xcbb   :  { %v6062_v42 = vpop.eup %6061 }
 0xd2a   :  { %v3373_v6 = vpop.permute.xlu1 %3372 }
 0xd2b   :  { %v3384_v59 = vadd.f32 %v6052_v55, %v3373_v6  ;;  %v3385_v50 = vadd.f32 %v6054_v53, %v3373_v6  ;;  %v3378_v16 = vpop.permute.xlu0 %3377  ;;  %v5865_v55 = vld [vmem:[#allocation4 + $0x104] ss:$16 sps:$4 sm:$0xff]   ;;  %v5866_v53 = vld [vmem:[#allocation4 + $0x108] ss:$16 sps:$4 sm:$0xff]  }
 0xd2c   :  { %v3386_v22 = vadd.f32 %v6056_v36, %v3378_v16  ;;  %v5871_v6 = vld [vmem:[#allocation4 + $0x124] ss:$16 sps:$4 sm:$0xff]   ;;  %3746 = vmatprep.subr.bf16.mxu0 %v5865_v55  ;;  %v5874_v36 = vld [vmem:[#allocation4 + $0x12c] ss:$16 sps:$4 sm:$0xff]   ;;  %v5878_v16 = vld [vmem:[#allocation4 + $0x148] ss:$16 sps:$4 sm:$0xff]  }
 0xd2d   :  { %v4851_v9 = vmul.f32 -1.442695, %v3384_v59  ;;  %v4852_v23 = vmul.f32 -1.442695, %v3385_v50  ;;  %3747 = vmatpush1.bf16.msra.mxu0 %v5863_v17  ;;  %v5877_v59 = vld [vmem:[#allocation4 + $0x144] ss:$16 sps:$4 sm:$0xff]  }
 0xd2e   :  { %v4853_v33 = vmul.f32 -1.442695, %v3386_v22  ;;  %v3382_v8 = vpop.permute.xlu1 %3381  ;;  %3748 = vmatprep.subr.bf16.mxu0 %v5871_v6  ;;  %v5875_v50 = vld [vmem:[#allocation4 + $0x140] ss:$16 sps:$4 sm:$0xff]  }
 0xd2f   :  { %6063 = vpow2.f32 %v4851_v9  ;;  %v3387_v19 = vadd.f32 %v6058_v54, %v3382_v8  ;;  %v3388_v56 = vadd.f32 %v6060_v60, %v3382_v8  ;;  %v3389_v38 = vadd.f32 %v6062_v42, %v3382_v8  ;;  %v5911_v17 = vld [vmem:[#allocation2 + $0x280] sm:$0xff]  }
 0xd30   :  { %6065 = vpow2.f32 %v4852_v23  ;;  %v5912_v55 = vld [vmem:[#allocation2 + $0x300] sm:$0xff]  }
 0xd31   :  { %6067 = vpow2.f32 %v4853_v33  ;;  %v4854_v45 = vmul.f32 -1.442695, %v3387_v19  ;;  %v4855_v18 = vmul.f32 -1.442695, %v3388_v56  ;;  %v4856_v15 = vmul.f32 -1.442695, %v3389_v38 }
 0xd33   :  { %6069 = vpow2.f32 %v4854_v45 }
 0xd34   :  { %6071 = vpow2.f32 %v4855_v18 }
 0xd35   :  { %6073 = vpow2.f32 %v4856_v15 }
 0xd39   :  { %v6064_v35 = vpop.eup %6063 }
 0xd3a   :  { %v6066_v63 = vpop.eup %6065  ;;  %v3408_v58 = vadd.f32 1.0, %v6064_v35 }
 0xd3b   :  { %v6068_v1 = vpop.eup %6067  ;;  %v3409_v5 = vadd.f32 1.0, %v6066_v63 }
 0xd3c   :  { %6075 = vrcp.f32 %v3408_v58  ;;  %v3410_v61 = vadd.f32 1.0, %v6068_v1 }
 0xd3d   :  { %v6070_v49 = vpop.eup %6069  ;;  %6077 = vrcp.f32 %v3409_v5 }
 0xd3e   :  { %v6072_v27 = vpop.eup %6071  ;;  %6079 = vrcp.f32 %v3410_v61  ;;  %v3411_v41 = vadd.f32 1.0, %v6070_v49 }
 0xd3f   :  { %v6074_v11 = vpop.eup %6073  ;;  %v3412_v7 = vadd.f32 1.0, %v6072_v27 }
 0xd40   :  { %v3413_v43 = vadd.f32 1.0, %v6074_v11  ;;  %6081 = vrcp.f32 %v3411_v41 }
 0xd41   :  { %6083 = vrcp.f32 %v3412_v7 }
 0xd42   :  { %6085 = vrcp.f32 %v3413_v43  ;;  %v5883_v43 = vld [vmem:[#allocation4 + $0x164] ss:$16 sps:$4 sm:$0xff]  }
 0xd46   :  { %v6076_v34 = vpop.eup %6075 }
 0xd47   :  { %v6078_v2 = vpop.eup %6077  ;;  %v3426_v25 = vmul.f32 %v6076_v34, %v7208_v12  ;;  %v5886_v34 = vld [vmem:[#allocation4 + $0x16c] ss:$16 sps:$4 sm:$0xff]  }
 0xd48   :  { %v6080_v44 = vpop.eup %6079  ;;  %v3427_v57 = vmul.f32 %v6078_v2, %v7215_v51  ;;  %v5881_v2 = vld [vmem:[#allocation4 + $0x160] ss:$16 sps:$4 sm:$0xff]  }
 0xd49   :  { %v3432_v10 = vadd.f32 %v3426_v25, %v7208_v12  ;;  %v3428_v14 = vmul.f32 %v6080_v44, %v7201_v32  ;;  %v5884_v25 = vld [vmem:[#allocation4 + $0x168] ss:$16 sps:$4 sm:$0xff]   ;;  %v5889_v44 = vld [vmem:[#allocation4 + $0x184] ss:$16 sps:$4 sm:$0xff]  }
 0xd4a   :  { %v6082_v39 = vpop.eup %6081  ;;  %v3433_v24 = vadd.f32 %v3427_v57, %v7215_v51  ;;  %v5892_v57 = vld [vmem:[#allocation4 + $0x18c] ss:$16 sps:$4 sm:$0xff]  }
 0xd4b   :  { %v6084_v30 = vpop.eup %6083  ;;  %3440 = vadd.xlane.f32.xlu1 %v3432_v10  ;;  %v3429_v13 = vmul.f32 %v6082_v39, %v7195_v52  ;;  %v3434_v29 = vadd.f32 %v3428_v14, %v7201_v32  ;;  %v5869_v32 = vld [vmem:[#allocation4 + $0x120] ss:$16 sps:$4 sm:$0xff]   ;;  %v5890_v39 = vld [vmem:[#allocation4 + $0x188] ss:$16 sps:$4 sm:$0xff]   ;;  %v5898_v14 = vld [vmem:[#allocation4 + $0x1ac] ss:$16 sps:$4 sm:$0xff]  }
 0xd4c   :  { %v6086_v4 = vpop.eup %6085  ;;  %3442 = vadd.xlane.f32.xlu0 %v3433_v24  ;;  %v3430_v3 = vmul.f32 %v6084_v30, %v7198_v48  ;;  %3749 = vmatpush1.bf16.msra.mxu0 %v5869_v32  ;;  %v5893_v30 = vld [vmem:[#allocation4 + $0x1a0] ss:$16 sps:$4 sm:$0xff]  }
 0xd4d   :  { %v3435_v21 = vadd.f32 %v3429_v13, %v7195_v52  ;;  %v3431_v62 = vmul.f32 %v6086_v4, %v7206_v31  ;;  %v5868_v52 = vld [vmem:[#allocation4 + $0x10c] ss:$16 sps:$4 sm:$0xff]   ;;  %3750 = vmatprep.subr.bf16.mxu0 %v5877_v59  ;;  %v5896_v13 = vld [vmem:[#allocation4 + $0x1a8] ss:$16 sps:$4 sm:$0xff]   ;;  %v5901_v4 = vld [vmem:[#allocation4 + $0x1c4] ss:$16 sps:$4 sm:$0xff]  }
 0xd4e   :  { %v3436_v51 = vadd.f32 %v3430_v3, %v7198_v48  ;;  %3809 = vmatprep.subr.bf16.mxu1 %v5868_v52  ;;  %v5880_v48 = vld [vmem:[#allocation4 + $0x14c] ss:$16 sps:$4 sm:$0xff]   ;;  %v5899_v3 = vld [vmem:[#allocation4 + $0x1c0] ss:$16 sps:$4 sm:$0xff]  }
 0xd4f   :  { %3446 = vadd.xlane.f32.xlu1 %v3435_v21  ;;  %v3437_v12 = vadd.f32 %v3431_v62, %v7206_v31  ;;  %3810 = vmatpush1.bf16.msra.mxu1 %v5866_v53  ;;  %v5872_v31 = vld [vmem:[#allocation4 + $0x128] ss:$16 sps:$4 sm:$0xff]  }
 0xd50   :  { %3444 = vadd.xlane.f32.xlu0 %v3434_v29  ;;  %3811 = vmatprep.subr.bf16.mxu1 %v5874_v36  ;;  %v5902_v62 = vld [vmem:[#allocation4 + $0x1c8] ss:$16 sps:$4 sm:$0xff]  }
 0xd51   :  { %v3450_v40 = vsel %vm99_vm4, %v3437_v12, 0.0  ;;  %3751 = vmatpush1.bf16.msra.mxu0 %v5875_v50 }
 0xd52   :  { %3752 = vmatprep.subr.bf16.mxu0 %v5883_v43 }
 0xd53   :  { %3448 = vadd.xlane.f32.xlu1 %v3436_v51  ;;  %3812 = vmatpush1.bf16.msra.mxu1 %v5872_v31 }
 0xd54   :  { %3451 = vadd.xlane.f32.xlu0 %v3450_v40  ;;  %3813 = vmatprep.subr.bf16.mxu1 %v5880_v48  ;;  %v5908_v40 = vld [vmem:[#allocation4 + $0x1e8] ss:$16 sps:$4 sm:$0xff]  }
 0xd55   :  { %3753 = vmatpush1.bf16.msra.mxu0 %v5881_v2 }
 0xd56   :  { %3754 = vmatprep.subr.bf16.mxu0 %v5889_v44  ;;  %v5914_v44 = vld [vmem:[#allocation2 + $0x2c0] sm:$0xff]  }
 0xd57   :  { %3814 = vmatpush1.bf16.msra.mxu1 %v5878_v16 }
 0xd58   :  { %3815 = vmatprep.subr.bf16.mxu1 %v5886_v34 }
 0xd5b   :  { %3816 = vmatpush1.bf16.msra.mxu1 %v5884_v25  ;;  %v5913_v25 = vld [vmem:[#allocation2 + $0x240] sm:$0xff]  }
 0xd5c   :  { %3817 = vmatprep.subr.bf16.mxu1 %v5892_v57 }
 0xd5f   :  { %3818 = vmatpush1.bf16.msra.mxu1 %v5890_v39  ;;  %v5915_v39 = vld [vmem:[#allocation2 + $0x288] sm:$0xff]  }
 0xd60   :  { %3819 = vmatprep.subr.bf16.mxu1 %v5898_v14 }
 0xd63   :  { %3820 = vmatpush1.bf16.msra.mxu1 %v5896_v13 }
 0xdd8   :  { %v3441_v54 = vpop.xlane.xlu1 %3440 }
 0xdd9   :  { %v3453_v22 = vmul.f32 0.0078125, %v3441_v54  ;;  %v3443_v60 = vpop.xlane.xlu0 %3442 }
 0xdda   :  { %v3454_v9 = vmul.f32 0.0078125, %v3443_v60 }
 0xddb   :  { %v7273_v23 = vsub.f32 %v3432_v10, %v3453_v22  ;;  %v5887_v10 = vld [vmem:[#allocation4 + $0x180] ss:$16 sps:$4 sm:$0xff]  }
 0xddc   :  { %v7275_v42 = vsub.f32 %v3433_v24, %v3454_v9  ;;  %v3447_v33 = vpop.xlane.xlu1 %3446  ;;  %v5895_v24 = vld [vmem:[#allocation4 + $0x1a4] ss:$16 sps:$4 sm:$0xff]   ;;  %3755 = vmatpush1.bf16.msra.mxu0 %v5887_v10 }
 0xddd   :  { %v3456_v8 = vmul.f32 0.0078125, %v3447_v33  ;;  %v3445_v19 = vpop.xlane.xlu0 %3444  ;;  %v3465_v56 = vmul.f32 %v7273_v23, %v7273_v23  ;;  %3756 = vmatprep.subr.bf16.mxu0 %v5895_v24  ;;  %v5916_v24 = vld [vmem:[#allocation2 + $0x308] sm:$0xff]  }
 0xdde   :  { %v3455_v38 = vmul.f32 0.0078125, %v3445_v19  ;;  %v3466_v45 = vmul.f32 %v7275_v42, %v7275_v42 }
 0xddf   :  { %v7281_v18 = vsub.f32 %v3435_v21, %v3456_v8  ;;  %3471 = vadd.xlane.f32.xlu0 %v3465_v56  ;;  %v5904_v21 = vld [vmem:[#allocation4 + $0x1cc] ss:$16 sps:$4 sm:$0xff]  }
 0xde0   :  { %v7283_v15 = vsub.f32 %v3434_v29, %v3455_v38  ;;  %3473 = vadd.xlane.f32.xlu1 %v3466_v45  ;;  %v3449_v35 = vpop.xlane.xlu1 %3448  ;;  %3757 = vmatpush1.bf16.msra.mxu0 %v5893_v30  ;;  %v5907_v29 = vld [vmem:[#allocation4 + $0x1e4] ss:$16 sps:$4 sm:$0xff]   ;;  %v4857_v45 = vld [vmem:[%s7465_s3 + $0x14] ss:$0 sm:$0xff] }
 0xde1   :  { %v3457_v63 = vmul.f32 0.0078125, %v3449_v35  ;;  %v3452_v58 = vpop.xlane.xlu0 %3451  ;;  %v3468_v1 = vmul.f32 %v7281_v18, %v7281_v18  ;;  %3758 = vmatprep.subr.bf16.mxu0 %v5901_v4  ;;  %3821 = vmatprep.subr.bf16.mxu1 %v5904_v21  ;;  %v5917_v4 = vld [vmem:[#allocation2 + $0x248] sm:$0xff]  }
 0xde2   :  { %v3458_v5 = vmul.f32 0.0078125, %v3452_v58  ;;  %v3467_v61 = vmul.f32 %v7283_v15, %v7283_v15  ;;  %3822 = vmatpush1.bf16.msra.mxu1 %v5902_v62  ;;  %v5918_v21 = vld [vmem:[#allocation2 + $0x2c8] sm:$0xff]   ;;  %v5920_v62 = vld [vmem:[#allocation2 + $0x310] sm:$0xff]  }
 0xde3   :  { %v7289_v49 = vsub.f32 %v3436_v51, %v3457_v63  ;;  %v5905_v51 = vld [vmem:[#allocation4 + $0x1e0] ss:$16 sps:$4 sm:$0xff]  }
 0xde4   :  { %v7291_v27 = vsub.f32 %v3437_v12, %v3458_v5  ;;  %3477 = vadd.xlane.f32.xlu1 %v3468_v1  ;;  %3475 = vadd.xlane.f32.xlu0 %v3467_v61  ;;  %v5910_v12 = vld [vmem:[#allocation4 + $0x1ec] ss:$16 sps:$4 sm:$0xff]   ;;  %v4858_v1 = vld [vmem:[%s7465_s3 + $0x15] ss:$0 sm:$0xff] }
 0xde5   :  { %v3469_v41 = vmul.f32 %v7289_v49, %v7289_v49  ;;  %3759 = vmatpush1.bf16.msra.mxu0 %v5899_v3  ;;  %3823 = vmatprep.subr.bf16.mxu1 %v5910_v12  ;;  %v5919_v3 = vld [vmem:[#allocation2 + $0x290] sm:$0xff]  }
 0xde6   :  { %v3470_v11 = vmul.f32 %v7291_v27, %v7291_v27  ;;  %3760 = vmatprep.subr.bf16.mxu0 %v5907_v29  ;;  %3824 = vmatpush1.bf16.msra.mxu1 %v5908_v40  ;;  %v5921_v40 = vld [vmem:[#allocation2 + $0x250] sm:$0xff]  }
 0xde7   :  { %5179 = vmatprep.subr.bf16.mxu1 %v5912_v55 }
 0xde8   :  { %3479 = vadd.xlane.f32.xlu0 %v3469_v41  ;;  %v3481_v7 = vsel %vm99_vm4, %v3470_v11, 0.0 }
 0xde9   :  { %3482 = vadd.xlane.f32.xlu1 %v3481_v7  ;;  %3761 = vmatpush1.bf16.msra.mxu0 %v5905_v51 }
 0xdea   :  { %5145 = vmatprep.subr.bf16.mxu0 %v5911_v17  ;;  %v5922_v17 = vld [vmem:[#allocation2 + $0x2d0] sm:$0xff]  }
 0xe6c   :  { %v3472_v53 = vpop.xlane.xlu0 %3471 }
 0xe6d   :  { %v3474_v52 = vpop.xlane.xlu1 %3473  ;;  %v3484_v6 = vmul.f32 0.0078125, %v3472_v53 }
 0xe6e   :  { %v3485_v36 = vmul.f32 0.0078125, %v3474_v52  ;;  %v5925_v52 = vld [vmem:[#allocation2 + $0x258] sm:$0xff]  }
 0xe6f   :  { %v3490_v32 = vadd.f32 1e-05, %v3484_v6  ;;  %v5926_v6 = vld [vmem:[#allocation2 + $0x2d8] sm:$0xff]  }
 0xe70   :  { %v3491_v31 = vadd.f32 1e-05, %v3485_v36  ;;  %v5927_v36 = vld [vmem:[#allocation2 + $0x2a0] sm:$0xff]  }
 0xe71   :  { %6087 = vrsqrt.f32 %v3490_v32  ;;  %v3478_v59 = vpop.xlane.xlu1 %3477  ;;  %v3476_v48 = vpop.xlane.xlu0 %3475  ;;  %v5928_v32 = vld [vmem:[#allocation2 + $0x320] sm:$0xff]  }
 0xe72   :  { %6089 = vrsqrt.f32 %v3491_v31  ;;  %v3487_v50 = vmul.f32 0.0078125, %v3478_v59  ;;  %v3486_v16 = vmul.f32 0.0078125, %v3476_v48  ;;  %v5929_v59 = vld [vmem:[#allocation2 + $0x260] sm:$0xff]  }
 0xe73   :  { %v5930_v48 = vld [vmem:[#allocation2 + $0x2e0] sm:$0xff]  }
 0xe74   :  { %v3493_v54 = vadd.f32 1e-05, %v3487_v50  ;;  %v3492_v22 = vadd.f32 1e-05, %v3486_v16  ;;  %v5932_v50 = vld [vmem:[#allocation2 + $0x328] sm:$0xff]  }
 0xe75   :  { %v3480_v60 = vpop.xlane.xlu0 %3479  ;;  %v5933_v16 = vld [vmem:[#allocation2 + $0x268] sm:$0xff]  }
 0xe76   :  { %6091 = vrsqrt.f32 %v3493_v54  ;;  %v3488_v9 = vmul.f32 0.0078125, %v3480_v60  ;;  %v3483_v33 = vpop.xlane.xlu1 %3482  ;;  %v5934_v54 = vld [vmem:[#allocation2 + $0x2e8] sm:$0xff]   ;;  %v5936_v60 = vld [vmem:[#allocation2 + $0x330] sm:$0xff]  }
 0xe77   :  { %6093 = vrsqrt.f32 %v3492_v22  ;;  %v3489_v8 = vmul.f32 0.0078125, %v3483_v33  ;;  %v5935_v22 = vld [vmem:[#allocation2 + $0x2b0] sm:$0xff]  }
 0xe78   :  { %v3494_v19 = vadd.f32 1e-05, %v3488_v9  ;;  %v5937_v9 = vld [vmem:[#allocation2 + $0x270] sm:$0xff]  }
 0xe79   :  { %v3495_v56 = vadd.f32 1e-05, %v3489_v8  ;;  %v5938_v33 = vld [vmem:[#allocation2 + $0x2f0] sm:$0xff]   ;;  %v5939_v8 = vld [vmem:[#allocation2 + $0x2b8] sm:$0xff]  }
 0xe7a   :  { %6095 = vrsqrt.f32 %v3494_v19  ;;  %v5940_v19 = vld [vmem:[#allocation2 + $0x338] sm:$0xff]  }
 0xe7b   :  { %v6088_v38 = vpop.eup %6087  ;;  %6097 = vrsqrt.f32 %v3495_v56  ;;  %v5941_v56 = vld [vmem:[#allocation2 + $0x278] sm:$0xff]  }
 0xe7c   :  { %v6090_v35 = vpop.eup %6089  ;;  %v3502_v63 = vmul.f32 %v6088_v38, %v7273_v23  ;;  %v5942_v38 = vld [vmem:[#allocation2 + $0x2f8] sm:$0xff]  }
 0xe7d   :  { %v3503_v58 = vmul.f32 %v6090_v35, %v7275_v42 }
 0xe7e   :  { %v3512_v5 = vmul.f32 %v4857_v45, %v3502_v63 }
 0xe7f   :  { %v3513_v61 = vmul.f32 %v4857_v45, %v3503_v58 }
 0xe80   :  { %v6092_v41 = vpop.eup %6091  ;;  %v7306_v11 = vadd.f32 %v4858_v1, %v3512_v5 }
 0xe81   :  { %v6094_v7 = vpop.eup %6093  ;;  %v7308_v43 = vadd.f32 %v4858_v1, %v3513_v61  ;;  %v3505_v34 = vmul.f32 %v6092_v41, %v7281_v18 }
 0xe82   :  { %v3504_v2 = vmul.f32 %v6094_v7, %v7283_v15 }
 0xe83   :  { %v3562_v23 = vpack.c.bf16 %v7308_v43, %v7306_v11  ;;  %v3515_v42 = vmul.f32 %v4857_v45, %v3505_v34 }
 0xe84   :  { %v6096_v57 = vpop.eup %6095  ;;  %v3514_v10 = vmul.f32 %v4857_v45, %v3504_v2 }
 0xe85   :  { %v6098_v14 = vpop.eup %6097  ;;  %3779 = vmatmul.mubr.bf16.vlgmr.msra.gmra.mrb[72].mxu0 %v3562_v23  ;;  %3842 = vmatmul.mubr.bf16.vlgmr.msra.gmra.mrb[56].mxu1 %v3562_v23  ;;  %v7316_v18 = vadd.f32 %v4858_v1, %v3515_v42  ;;  %v3506_v30 = vmul.f32 %v6096_v57, %v7289_v49  ;;  %v5923_v49 = vld [vmem:[#allocation2 + $0x298] sm:$0xff]  }
 0xe86   :  { %3788 = vmatprep.mubr.bf16.mxu0 %v6189_v47  ;;  %3851 = vmatprep.mubr.bf16.mxu1 %v6189_v47  ;;  %v7318_v15 = vadd.f32 %v4858_v1, %v3514_v10  ;;  %v3507_v13 = vmul.f32 %v6098_v14, %v7291_v27  ;;  %v5924_v27 = vld [vmem:[#allocation2 + $0x318] sm:$0xff]  }
 0xe87   :  { %5146 = vmatpush3.bf16.msra.mxu0 %v5913_v25  ;;  %5180 = vmatpush3.bf16.msra.mxu1 %v5914_v44  ;;  %v3516_v12 = vmul.f32 %v4857_v45, %v3506_v30 }
 0xe88   :  { %5147 = vmatprep.subr.bf16.mxu0 %v5915_v39  ;;  %5181 = vmatprep.subr.bf16.mxu1 %v5916_v24  ;;  %v3563_v29 = vpack.c.bf16 %v7316_v18, %v7318_v15  ;;  %v3517_v51 = vmul.f32 %v4857_v45, %v3507_v13  ;;  %v4859_v45 = vld [vmem:[%s7466_s4 + $0x1] ss:$2 sm:$0xf] }
 0xe89   :  { %v7326_v55 = vadd.f32 %v4858_v1, %v3516_v12  ;;  %v7338_v35 = vrot.slane %v4859_v45, %v7007_v20  ;;  %v7342_v63 = vrot.slane %v4859_v45, %v2178_v28  ;;  %v7345_v58 = vrot.slane %v4859_v45, %v7010_v46 }
 0xe8a   :  { %v7328_v53 = vadd.f32 %v4858_v1, %v3517_v51  ;;  %v7349_v1 = vrot.slane %v4859_v45, %v2182_v26 }
 0xe8b   :  { %5148 = vmatpush3.bf16.msra.mxu0 %v5917_v4  ;;  %5182 = vmatpush3.bf16.msra.mxu1 %v5918_v21 }
 0xe8c   :  { %5149 = vmatprep.subr.bf16.mxu0 %v5919_v3  ;;  %5183 = vmatprep.subr.bf16.mxu1 %v5920_v62  ;;  %v3564_v31 = vpack.c.bf16 %v7328_v53, %v7326_v55 }
 0xe8d   :  { %3789 = vmatmul.mubr.bf16.gmra.mrb[76].mxu0 %v3563_v29  ;;  %3852 = vmatmul.mubr.bf16.gmra.mrb[60].mxu1 %v3563_v29 }
 0xe8e   :  { %3798 = vmatprep.mubr.bf16.mxu0 %v6189_v47  ;;  %3861 = vmatprep.mubr.bf16.mxu1 %v6189_v47  ;;  %v5931_v47 = vld [vmem:[#allocation2 + $0x2a8] sm:$0xff]  }
 0xe8f   :  { %5150 = vmatpush3.bf16.msra.mxu0 %v5921_v40  ;;  %5184 = vmatpush3.bf16.msra.mxu1 %v5922_v17 }
 0xe90   :  { %5151 = vmatprep.subr.bf16.mxu0 %v5923_v49  ;;  %5185 = vmatprep.subr.bf16.mxu1 %v5924_v27 }
 0xe93   :  { %5152 = vmatpush3.bf16.msra.mxu0 %v5925_v52  ;;  %5186 = vmatpush3.bf16.msra.mxu1 %v5926_v6 }
 0xe94   :  { %5153 = vmatprep.subr.bf16.mxu0 %v5927_v36  ;;  %5187 = vmatprep.subr.bf16.mxu1 %v5928_v32 }
 0xe95   :  { %3799 = vmatmul.mubr.bf16.gmra.mrb[80].mxu0 %v3564_v31  ;;  %3862 = vmatmul.mubr.bf16.gmra.mrb[64].mxu1 %v3564_v31 }
 0xe97   :  { %5154 = vmatpush3.bf16.msra.mxu0 %v5929_v59  ;;  %5188 = vmatpush3.bf16.msra.mxu1 %v5930_v48 }
 0xe98   :  { %5155 = vmatprep.subr.bf16.mxu0 %v5931_v47  ;;  %5189 = vmatprep.subr.bf16.mxu1 %v5932_v50 }
 0xe9b   :  { %5156 = vmatpush3.bf16.msra.mxu0 %v5933_v16  ;;  %5190 = vmatpush3.bf16.msra.mxu1 %v5934_v54 }
 0xe9c   :  { %5157 = vmatprep.subr.bf16.mxu0 %v5935_v22  ;;  %5191 = vmatprep.subr.bf16.mxu1 %v5936_v60 }
 0xe9f   :  { %5158 = vmatpush3.bf16.msra.mxu0 %v5937_v9  ;;  %5192 = vmatpush3.bf16.msra.mxu1 %v5938_v33 }
 0xea0   :  { %5159 = vmatprep.subr.bf16.mxu0 %v5939_v8  ;;  %5193 = vmatprep.subr.bf16.mxu1 %v5940_v19 }
 0xea3   :  { %5160 = vmatpush3.bf16.msra.mxu0 %v5941_v56  ;;  %5194 = vmatpush3.bf16.msra.mxu1 %v5942_v38 }
 0xea4   :  { %5381 = vmatprep.subr.bf16.mxu0 %v6175_v0  ;;  %5401 = vmatprep.subr.bf16.mxu1 %v6175_v0 }
 0xf58   :  { %v3780_v5 = vpop.f32.mrb[72].mxu0  ;;  %v3843_v61 = vpop.f32.mrb[56].mxu1 }
 0xf59   :  { %v3781_v41 = vadd.f32 %v3780_v5, %v7338_v35  ;;  %v3844_v7 = vadd.f32 %v3843_v61, %v7342_v63  ;;  %v3782_v34 = vpop.f32.mrb[73].mxu0  ;;  %v3845_v20 = vpop.f32.mrb[57].mxu1 }
 0xf5a   :  { %v3783_v2 = vadd.f32 %v3782_v34, %v7345_v58  ;;  %v3846_v28 = vadd.f32 %v3845_v20, %v7349_v1  ;;  %v3784_v23 = vpop.f32.mrb[74].mxu0  ;;  %v3847_v42 = vpop.f32.mrb[58].mxu1 }
 0xf5b   :  { %v3785_v46 = vadd.f32 %v3784_v23, %v7338_v35  ;;  %v3848_v37 = vadd.f32 %v3847_v42, %v7342_v63  ;;  %v3786_v26 = vpop.f32.mrb[75].mxu0  ;;  %v3849_v25 = vpop.f32.mrb[59].mxu1  ;;  %v3872_v10 = vmax.f32 %v3781_v41, 0.0  ;;  %v3874_v39 = vmax.f32 %v3844_v7, 0.0 }
 0xf5c   :  { %v3787_v44 = vadd.f32 %v3786_v26, %v7345_v58  ;;  %v3850_v57 = vadd.f32 %v3849_v25, %v7349_v1  ;;  %v3873_v30 = vmax.f32 %v3783_v2, 0.0  ;;  %v3875_v13 = vmax.f32 %v3846_v28, 0.0 }
 0xf5d   :  { %v3876_v24 = vmax.f32 %v3785_v46, 0.0  ;;  %v3878_v14 = vmax.f32 %v3848_v37, 0.0 }
 0xf5e   :  { %v3877_v4 = vmax.f32 %v3787_v44, 0.0  ;;  %v3879_v21 = vmax.f32 %v3850_v57, 0.0 }
 0xf5f   :  { %v3896_v3 = vpack.c.bf16 %v3876_v24, %v3872_v10  ;;  %v3898_v62 = vpack.c.bf16 %v3878_v14, %v3874_v39 }
 0xf60   :  { %v3897_v29 = vpack.c.bf16 %v3877_v4, %v3873_v30  ;;  %v3899_v12 = vpack.c.bf16 %v3879_v21, %v3875_v13  ;;  %v3790_v51 = vpop.f32.mrb[76].mxu0  ;;  %v3853_v40 = vpop.f32.mrb[60].mxu1 }
 0xf61   :  { %v3791_v17 = vadd.f32 %v3790_v51, %v7338_v35  ;;  %v3854_v49 = vadd.f32 %v3853_v40, %v7342_v63  ;;  %v3792_v27 = vpop.f32.mrb[77].mxu0  ;;  %v3855_v52 = vpop.f32.mrb[61].mxu1  ;;  %v4892_v40 = vld [vmem:[%s7465_s3 + $0x16] ss:$0 sm:$0xff] }
 0xf62   :  { %v3793_v6 = vadd.f32 %v3792_v27, %v7345_v58  ;;  %v3856_v36 = vadd.f32 %v3855_v52, %v7349_v1  ;;  %v3794_v32 = vpop.f32.mrb[78].mxu0  ;;  %v3857_v31 = vpop.f32.mrb[62].mxu1  ;;  %4201 = vmatprep.mubr.bf16.mxu0 %v3897_v29  ;;  %4258 = vmatprep.mubr.bf16.mxu1 %v3899_v12 }
 0xf63   :  { %v3795_v59 = vadd.f32 %v3794_v32, %v7338_v35  ;;  %v3858_v48 = vadd.f32 %v3857_v31, %v7342_v63  ;;  %v3796_v47 = vpop.f32.mrb[79].mxu0  ;;  %v3859_v50 = vpop.f32.mrb[63].mxu1  ;;  %4202 = vmatmul.mubr.bf16.vlgmr.msra.gmra.mrb[84].mxu0 %v3896_v3  ;;  %4259 = vmatmul.mubr.bf16.vlgmr.msra.gmra.mrb[68].mxu1 %v3898_v62  ;;  %v3880_v22 = vmax.f32 %v3791_v17, 0.0  ;;  %v3882_v60 = vmax.f32 %v3854_v49, 0.0 }
 0xf64   :  { %v3797_v16 = vadd.f32 %v3796_v47, %v7345_v58  ;;  %v3860_v54 = vadd.f32 %v3859_v50, %v7349_v1  ;;  %v3881_v8 = vmax.f32 %v3793_v6, 0.0  ;;  %v3883_v19 = vmax.f32 %v3856_v36, 0.0 }
 0xf65   :  { %v3884_v9 = vmax.f32 %v3795_v59, 0.0  ;;  %v3886_v33 = vmax.f32 %v3858_v48, 0.0 }
 0xf66   :  { %v3885_v56 = vmax.f32 %v3797_v16, 0.0  ;;  %v3887_v38 = vmax.f32 %v3860_v54, 0.0 }
 0xf67   :  { %v3900_v45 = vpack.c.bf16 %v3884_v9, %v3880_v22  ;;  %v3902_v5 = vpack.c.bf16 %v3886_v33, %v3882_v60 }
 0xf68   :  { %v3901_v61 = vpack.c.bf16 %v3885_v56, %v3881_v8  ;;  %v3903_v41 = vpack.c.bf16 %v3887_v38, %v3883_v19  ;;  %v3800_v7 = vpop.f32.mrb[80].mxu0  ;;  %v3863_v34 = vpop.f32.mrb[64].mxu1 }
 0xf69   :  { %v3801_v20 = vadd.f32 %v3800_v7, %v7338_v35  ;;  %v3864_v2 = vadd.f32 %v3863_v34, %v7342_v63  ;;  %v3802_v28 = vpop.f32.mrb[81].mxu0  ;;  %v3865_v23 = vpop.f32.mrb[65].mxu1 }
 0xf6a   :  { %v3803_v42 = vadd.f32 %v3802_v28, %v7345_v58  ;;  %v3866_v46 = vadd.f32 %v3865_v23, %v7349_v1  ;;  %v3804_v37 = vpop.f32.mrb[82].mxu0  ;;  %v3867_v26 = vpop.f32.mrb[66].mxu1  ;;  %4209 = vmatprep.mubr.bf16.mxu0 %v3901_v61  ;;  %4266 = vmatprep.mubr.bf16.mxu1 %v3903_v41 }
 0xf6b   :  { %v3805_v25 = vadd.f32 %v3804_v37, %v7338_v35  ;;  %v3868_v44 = vadd.f32 %v3867_v26, %v7342_v63  ;;  %v3806_v57 = vpop.f32.mrb[83].mxu0  ;;  %v3869_v10 = vpop.f32.mrb[67].mxu1  ;;  %4210 = vmatmul.mubr.bf16.gmra.mrb[88].mxu0 %v3900_v45  ;;  %4267 = vmatmul.mubr.bf16.gmra.mrb[72].mxu1 %v3902_v5  ;;  %v3888_v14 = vmax.f32 %v3801_v20, 0.0  ;;  %v3890_v30 = vmax.f32 %v3864_v2, 0.0 }
 0xf6c   :  { %v3807_v39 = vadd.f32 %v3806_v57, %v7345_v58  ;;  %v3870_v24 = vadd.f32 %v3869_v10, %v7349_v1  ;;  %v3889_v21 = vmax.f32 %v3803_v42, 0.0  ;;  %v3891_v3 = vmax.f32 %v3866_v46, 0.0 }
 0xf6d   :  { %v3892_v13 = vmax.f32 %v3805_v25, 0.0  ;;  %v3894_v4 = vmax.f32 %v3868_v44, 0.0 }
 0xf6e   :  { %v3893_v62 = vmax.f32 %v3807_v39, 0.0  ;;  %v3895_v29 = vmax.f32 %v3870_v24, 0.0 }
 0xf6f   :  { %v3904_v12 = vpack.c.bf16 %v3892_v13, %v3888_v14  ;;  %v3906_v35 = vpack.c.bf16 %v3894_v4, %v3890_v30 }
 0xf70   :  { %v3905_v51 = vpack.c.bf16 %v3893_v62, %v3889_v21  ;;  %v3907_v63 = vpack.c.bf16 %v3895_v29, %v3891_v3 }
 0xf72   :  { %4217 = vmatprep.mubr.bf16.mxu0 %v3905_v51  ;;  %4274 = vmatprep.mubr.bf16.mxu1 %v3907_v63 }
 0xf73   :  { %4218 = vmatmul.mubr.bf16.gmra.mrb[92].mxu0 %v3904_v12  ;;  %4275 = vmatmul.mubr.bf16.gmra.mrb[76].mxu1 %v3906_v35 }
 0xf74   :  { %5397 = vmatprep.mubr.msk.bf16.mxu0 %vm6186_vm8, %v6175_v0  ;;  %5417 = vmatprep.mubr.msk.bf16.mxu1 %vm6186_vm8, %v6175_v0 }
0x1036   :  { %v5161_v58 = vpop.f32.mrb[84].mxu0  ;;  %v5195_v1 = vpop.f32.mrb[68].mxu1 }
0x1037   :  { %v5162_v17 = vpop.f32.mrb[85].mxu0  ;;  %v5196_v49 = vpop.f32.mrb[69].mxu1 }
0x1038   :  { %v5163_v27 = vadd.f32 %v5162_v17, %v5161_v58  ;;  %v5197_v52 = vadd.f32 %v5196_v49, %v5195_v1  ;;  %v5164_v6 = vpop.f32.mrb[86].mxu0  ;;  %v5198_v36 = vpop.f32.mrb[70].mxu1 }
0x1039   :  { %v5165_v32 = vpop.f32.mrb[87].mxu0  ;;  %v5199_v31 = vpop.f32.mrb[71].mxu1 }
0x103a   :  { %v4204_v59 = vadd.f32 %v5163_v27, %v4892_v40  ;;  %v5166_v48 = vadd.f32 %v5165_v32, %v5164_v6  ;;  %v5200_v47 = vadd.f32 %v5199_v31, %v5198_v36 }
0x103c   :  { %v4261_v50 = vadd.f32 %v5197_v52, %v4204_v59  ;;  %v4207_v16 = vadd.f32 %v5166_v48, %v4892_v40 }
0x103e   :  { %v4264_v54 = vadd.f32 %v5200_v47, %v4207_v16  ;;  %v5167_v22 = vpop.f32.mrb[88].mxu0  ;;  %v5201_v60 = vpop.f32.mrb[72].mxu1  ;;  %v4283_v12 = vadd.f32 %v4261_v50, %v7306_v11 }
0x103f   :  { %v5168_v9 = vpop.f32.mrb[89].mxu0  ;;  %v5202_v33 = vpop.f32.mrb[73].mxu1 }
0x1040   :  { %v5169_v8 = vadd.f32 %v5168_v9, %v5167_v22  ;;  %v5203_v19 = vadd.f32 %v5202_v33, %v5201_v60  ;;  %v5170_v56 = vpop.f32.mrb[90].mxu0  ;;  %v5204_v38 = vpop.f32.mrb[74].mxu1  ;;  %v5943_v60 = vld [vmem:[#allocation2 + $0x440] sm:$0xff]   ;;  %v5944_v9 = vld [vmem:[#allocation2 + $0x448] sm:$0xff]   ;;  %v5945_v33 = vld [vmem:[#allocation2 + $0x450] sm:$0xff]  }
0x1041   :  { %v5171_v45 = vpop.f32.mrb[91].mxu0  ;;  %v5205_v5 = vpop.f32.mrb[75].mxu1  ;;  %5382 = vmatpush3.bf16.msra.mxu0 %v5943_v60 }
0x1042   :  { %v4212_v61 = vadd.f32 %v5169_v8, %v4892_v40  ;;  %v5172_v41 = vadd.f32 %v5171_v45, %v5170_v56  ;;  %v5206_v7 = vadd.f32 %v5205_v5, %v5204_v38  ;;  %5383 = vmatprep.subr.bf16.mxu0 %v6175_v0  ;;  %v5946_v8 = vld [vmem:[#allocation2 + $0x458] sm:$0xff]   ;;  %v5948_v56 = vld [vmem:[#allocation2 + $0x468] sm:$0xff]   ;;  %v5949_v38 = vld [vmem:[#allocation2 + $0x470] sm:$0xff]  }
0x1043   :  { %v5951_v45 = vld [vmem:[#allocation2 + $0x480] sm:$0xff]   ;;  %v5952_v5 = vld [vmem:[#allocation2 + $0x488] sm:$0xff]  }
0x1044   :  { %v4269_v34 = vadd.f32 %v5203_v19, %v4212_v61  ;;  %v4215_v20 = vadd.f32 %v5172_v41, %v4892_v40  ;;  %v5947_v19 = vld [vmem:[#allocation2 + $0x460] sm:$0xff]   ;;  %5402 = vmatpush3.bf16.msra.mxu1 %v5951_v45  ;;  %v5950_v61 = vld [vmem:[#allocation2 + $0x478] sm:$0xff]   ;;  %v5953_v41 = vld [vmem:[#allocation2 + $0x490] sm:$0xff]  }
0x1045   :  { %5384 = vmatpush3.bf16.msra.mxu0 %v5944_v9  ;;  %5403 = vmatprep.subr.bf16.mxu1 %v6175_v0 }
0x1046   :  { %v4272_v2 = vadd.f32 %v5206_v7, %v4215_v20  ;;  %v5173_v28 = vpop.f32.mrb[92].mxu0  ;;  %v5207_v23 = vpop.f32.mrb[76].mxu1  ;;  %v4285_v42 = vadd.f32 %v4269_v34, %v7318_v15  ;;  %5385 = vmatprep.subr.bf16.mxu0 %v6175_v0  ;;  %v5954_v7 = vld [vmem:[#allocation2 + $0x498] sm:$0xff]   ;;  %v5955_v34 = vld [vmem:[#allocation2 + $0x4a0] sm:$0xff]   ;;  %v5956_v20 = vld [vmem:[#allocation2 + $0x4a8] sm:$0xff]  }
0x1047   :  { %v5174_v46 = vpop.f32.mrb[93].mxu0  ;;  %v5208_v37 = vpop.f32.mrb[77].mxu1 }
0x1048   :  { %v5175_v26 = vadd.f32 %v5174_v46, %v5173_v28  ;;  %v5209_v25 = vadd.f32 %v5208_v37, %v5207_v23  ;;  %v5176_v44 = vpop.f32.mrb[94].mxu0  ;;  %v5210_v57 = vpop.f32.mrb[78].mxu1  ;;  %4295 = vadd.xlane.f32.xlu0 %v4285_v42  ;;  %v4286_v10 = vadd.f32 %v4272_v2, %v7316_v18  ;;  %v4284_v18 = vadd.f32 %v4264_v54, %v7308_v43 }
0x1049   :  { %v5177_v39 = vpop.f32.mrb[95].mxu0  ;;  %v5211_v24 = vpop.f32.mrb[79].mxu1  ;;  %5386 = vmatpush3.bf16.msra.mxu0 %v5945_v33  ;;  %5404 = vmatpush3.bf16.msra.mxu1 %v5952_v5 }
0x104a   :  { %v4220_v14 = vadd.f32 %v5175_v26, %v4892_v40  ;;  %v5178_v30 = vadd.f32 %v5177_v39, %v5176_v44  ;;  %v5212_v13 = vadd.f32 %v5211_v24, %v5210_v57  ;;  %4297 = vadd.xlane.f32.xlu1 %v4286_v10  ;;  %5387 = vmatprep.subr.bf16.mxu0 %v6175_v0 }
0x104b   :  { %5405 = vmatprep.subr.bf16.mxu1 %v6175_v0 }
0x104c   :  { %v4277_v4 = vadd.f32 %v5209_v25, %v4220_v14  ;;  %v4223_v21 = vadd.f32 %v5178_v30, %v4892_v40 }
0x104d   :  { %5388 = vmatpush3.bf16.msra.mxu0 %v5946_v8  ;;  %5406 = vmatpush3.bf16.msra.mxu1 %v5953_v41 }
0x104e   :  { %v4280_v3 = vadd.f32 %v5212_v13, %v4223_v21  ;;  %v4287_v15 = vadd.f32 %v4277_v4, %v7326_v55  ;;  %5389 = vmatprep.subr.bf16.mxu0 %v6175_v0  ;;  %5407 = vmatprep.subr.bf16.mxu1 %v6175_v0 }
0x1050   :  { %4299 = vadd.xlane.f32.xlu0 %v4287_v15  ;;  %v4288_v62 = vadd.f32 %v4280_v3, %v7328_v53 }
0x1051   :  { %5390 = vmatpush3.bf16.msra.mxu0 %v5947_v19  ;;  %5408 = vmatpush3.bf16.msra.mxu1 %v5954_v7 }
0x1052   :  { %v4301_v29 = vsel %vm99_vm4, %v4288_v62, 0.0  ;;  %5391 = vmatprep.subr.bf16.mxu0 %v6175_v0  ;;  %5409 = vmatprep.subr.bf16.mxu1 %v6175_v0 }
0x1053   :  { %4302 = vadd.xlane.f32.xlu1 %v4301_v29 }
0x1054   :  { %4291 = vadd.xlane.f32.xlu0 %v4283_v12 }
0x1055   :  { %5392 = vmatpush3.bf16.msra.mxu0 %v5948_v56  ;;  %5410 = vmatpush3.bf16.msra.mxu1 %v5955_v34 }
0x1056   :  { %5393 = vmatprep.subr.bf16.mxu0 %v6175_v0  ;;  %5411 = vmatprep.subr.bf16.mxu1 %v6175_v0 }
0x1057   :  { %4293 = vadd.xlane.f32.xlu1 %v4284_v18 }
0x1059   :  { %5394 = vmatpush3.bf16.msra.mxu0 %v5949_v38  ;;  %5412 = vmatpush3.bf16.msra.mxu1 %v5956_v20 }
0x105a   :  { %5395 = vmatprep.subr.bf16.mxu0 %v6175_v0  ;;  %5413 = vmatprep.subr.bf16.mxu1 %v6175_v0 }
0x105d   :  { %5396 = vmatpush3.bf16.msra.mxu0 %v5950_v61 }
0x10d5   :  { %v4296_v35 = vpop.xlane.xlu0 %4295 }
0x10d6   :  { %v4306_v51 = vmul.f32 0.0078125, %v4296_v35 }
0x10d7   :  { %v4298_v63 = vpop.xlane.xlu1 %4297 }
0x10d8   :  { %v7389_v58 = vsub.f32 %v4285_v42, %v4306_v51  ;;  %v4307_v1 = vmul.f32 0.0078125, %v4298_v63 }
0x10da   :  { %v7391_v40 = vsub.f32 %v4286_v10, %v4307_v1  ;;  %v4318_v55 = vmul.f32 %v7389_v58, %v7389_v58  ;;  %v4926_v1 = vld [vmem:[%s7465_s3 + $0x18] ss:$0 sm:$0xff] }
0x10dc   :  { %4326 = vadd.xlane.f32.xlu0 %v4318_v55  ;;  %v4319_v11 = vmul.f32 %v7391_v40, %v7391_v40 }
0x10dd   :  { %v4300_v53 = vpop.xlane.xlu0 %4299 }
0x10de   :  { %v4308_v17 = vmul.f32 0.0078125, %v4300_v53  ;;  %4328 = vadd.xlane.f32.xlu1 %v4319_v11 }
0x10e0   :  { %v7397_v43 = vsub.f32 %v4287_v15, %v4308_v17  ;;  %v4303_v49 = vpop.xlane.xlu1 %4302 }
0x10e1   :  { %v4309_v27 = vmul.f32 0.0078125, %v4303_v49  ;;  %v4292_v52 = vpop.xlane.xlu0 %4291 }
0x10e2   :  { %v4304_v6 = vmul.f32 0.0078125, %v4292_v52  ;;  %v4320_v36 = vmul.f32 %v7397_v43, %v7397_v43 }
0x10e3   :  { %v7401_v32 = vsub.f32 %v4288_v62, %v4309_v27 }
0x10e4   :  { %v7403_v31 = vsub.f32 %v4283_v12, %v4304_v6  ;;  %v4294_v59 = vpop.xlane.xlu1 %4293  ;;  %4330 = vadd.xlane.f32.xlu0 %v4320_v36  ;;  %v4925_v12 = vld [vmem:[%s7465_s3 + $0x17] ss:$0 sm:$0xff] }
0x10e5   :  { %v4305_v48 = vmul.f32 0.0078125, %v4294_v59  ;;  %v4321_v47 = vmul.f32 %v7401_v32, %v7401_v32 }
0x10e6   :  { %v4316_v50 = vmul.f32 %v7403_v31, %v7403_v31 }
0x10e7   :  { %v7409_v16 = vsub.f32 %v4284_v18, %v4305_v48  ;;  %v4332_v54 = vsel %vm99_vm4, %v4321_v47, 0.0 }
0x10e8   :  { %4333 = vadd.xlane.f32.xlu1 %v4332_v54  ;;  %4322 = vadd.xlane.f32.xlu0 %v4316_v50 }
0x10e9   :  { %v4317_v22 = vmul.f32 %v7409_v16, %v7409_v16 }
0x10ec   :  { %4324 = vadd.xlane.f32.xlu1 %v4317_v22 }
0x1169   :  { %v4327_v2 = vpop.xlane.xlu0 %4326 }
0x116a   :  { %v4337_v28 = vmul.f32 0.0078125, %v4327_v2 }
0x116b   :  { %v4329_v23 = vpop.xlane.xlu1 %4328 }
0x116c   :  { %v4338_v42 = vmul.f32 0.0078125, %v4329_v23  ;;  %v4343_v46 = vadd.f32 1e-05, %v4337_v28 }
0x116e   :  { %v4344_v37 = vadd.f32 1e-05, %v4338_v42 }
0x1170   :  { %6099 = vrsqrt.f32 %v4344_v37 }
0x1171   :  { %6101 = vrsqrt.f32 %v4343_v46  ;;  %v4331_v26 = vpop.xlane.xlu0 %4330 }
0x1172   :  { %v4339_v25 = vmul.f32 0.0078125, %v4331_v26 }
0x1174   :  { %v4345_v44 = vadd.f32 1e-05, %v4339_v25 }
0x1175   :  { %v4334_v57 = vpop.xlane.xlu1 %4333  ;;  %v4323_v10 = vpop.xlane.xlu0 %4322 }
0x1176   :  { %6103 = vrsqrt.f32 %v4345_v44  ;;  %v4340_v39 = vmul.f32 0.0078125, %v4334_v57  ;;  %v4335_v24 = vmul.f32 0.0078125, %v4323_v10  ;;  %v5957_v10 = vld [vmem:[#allocation2 + $0x4b0] sm:$0xff]  }
0x1177   :  { %5414 = vmatpush3.bf16.msra.mxu1 %v5957_v10 }
0x1178   :  { %v4346_v14 = vadd.f32 1e-05, %v4340_v39  ;;  %v4341_v30 = vadd.f32 1e-05, %v4335_v24  ;;  %v5958_v39 = vld [vmem:[#allocation2 + $0x4b8] sm:$0xff]   ;;  %5415 = vmatprep.subr.bf16.mxu1 %v6175_v0 }
0x1179   :  { %v4325_v13 = vpop.xlane.xlu1 %4324  ;;  %v4927_v24 = vld [vmem:[%s7465_s3 + $0x19] ss:$0 sm:$0xff] }
0x117a   :  { %v6100_v4 = vpop.eup %6099  ;;  %6105 = vrsqrt.f32 %v4346_v14  ;;  %v4336_v21 = vmul.f32 0.0078125, %v4325_v13 }
0x117b   :  { %v6102_v3 = vpop.eup %6101  ;;  %6107 = vrsqrt.f32 %v4341_v30  ;;  %v4356_v15 = vmul.f32 %v6100_v4, %v7391_v40  ;;  %5416 = vmatpush3.bf16.msra.mxu1 %v5958_v39 }
0x117c   :  { %v4342_v62 = vadd.f32 1e-05, %v4336_v21  ;;  %v4355_v29 = vmul.f32 %v6102_v3, %v7389_v58 }
0x117d   :  { %v4366_v35 = vmul.f32 %v4925_v12, %v4356_v15 }
0x117e   :  { %6109 = vrsqrt.f32 %v4342_v62  ;;  %v4365_v63 = vmul.f32 %v4925_v12, %v4355_v29  ;;  %v4936_v62 = vld [vmem:[%s7465_s3 + $0x1a] ss:$0 sm:$0xff] }
0x117f   :  { %v4376_v40 = vadd.f32 %v4926_v1, %v4366_v35 }
0x1180   :  { %v6104_v18 = vpop.eup %6103  ;;  %v4375_v49 = vadd.f32 %v4926_v1, %v4365_v63 }
0x1181   :  { %v4357_v51 = vmul.f32 %v6104_v18, %v7397_v43  ;;  %v4394_v59 = vrot.slane %v4376_v40, 7  ;;  %v4945_v18 = vld [vmem:[%s7465_s3 + $0x1b] ss:$0 sm:$0xff] }
0x1182   :  { %v4393_v50 = vrot.slane %v4375_v49, 7  ;;  %v4380_v45 = vsel %vm86_vm2, %v4375_v49, 0.0 }
0x1183   :  { %v4367_v55 = vmul.f32 %v4925_v12, %v4357_v51 }
0x1184   :  { %v6106_v11 = vpop.eup %6105  ;;  %v4395_v9 = vsel %vm71_vm6, %v4393_v50, %v4394_v59 }
0x1185   :  { %v6108_v53 = vpop.eup %6107  ;;  %v4377_v17 = vadd.f32 %v4926_v1, %v4367_v55  ;;  %v4358_v58 = vmul.f32 %v6106_v11, %v7401_v32  ;;  %v4946_v11 = vld [vmem:[%s7465_s3 + $0x1c] ss:$0 sm:$0xff] }
0x1186   :  { %v4353_v27 = vmul.f32 %v6108_v53, %v7403_v31 }
0x1187   :  { %v4396_v52 = vrot.slane %v4377_v17, 7  ;;  %v4368_v6 = vmul.f32 %v4925_v12, %v4358_v58 }
0x1188   :  { %v6110_v36 = vpop.eup %6109  ;;  %v4363_v48 = vmul.f32 %v4925_v12, %v4353_v27 }
0x1189   :  { %v4378_v43 = vadd.f32 %v4926_v1, %v4368_v6  ;;  %v4354_v47 = vmul.f32 %v6110_v36, %v7409_v16  ;;  %v4397_v54 = vsel %vm71_vm6, %v4394_v59, %v4396_v52 }
0x118a   :  { %v4403_v33 = vadd.f32 %v4397_v54, %v4395_v9  ;;  %v4373_v8 = vadd.f32 %v4926_v1, %v4363_v48 }
0x118b   :  { %v4398_v22 = vrot.slane %v4378_v43, 7  ;;  %v4364_v60 = vmul.f32 %v4925_v12, %v4354_v47 }
0x118d   :  { %v4399_v32 = vsel %vm71_vm6, %v4396_v52, %v4398_v22  ;;  %v4374_v31 = vadd.f32 %v4926_v1, %v4364_v60 }
0x118e   :  { %v4404_v19 = vsel %vm86_vm2, %v4399_v32, 0.0  ;;  %vm4657_vm2 = vcmask 1024  }
0x118f   :  { %v4379_v56 = vadd.f32 %v4374_v31, %v4373_v8  ;;  %v4405_v38 = vadd.f32 %v4404_v19, %v4403_v33 }
0x1191   :  { %v4381_v5 = vadd.f32 %v4380_v45, %v4379_v56  ;;  %v4406_v16 = vrot.slane %v4405_v38, 4 }
0x1193   :  { %v4382_v61 = vrot.slane %v4381_v5, 4  ;;  %v4407_v41 = vadd.f32 %v4406_v16, %v4405_v38 }
0x1195   :  { %v4383_v7 = vadd.f32 %v4382_v61, %v4381_v5  ;;  %v4408_v34 = vrot.slane %v4407_v41, 2 }
0x1197   :  { %v4384_v20 = vrot.slane %v4383_v7, 2  ;;  %v4409_v2 = vadd.f32 %v4408_v34, %v4407_v41 }
0x1199   :  { %v4385_v28 = vadd.f32 %v4384_v20, %v4383_v7  ;;  %v4410_v23 = vrot.slane %v4409_v2, 1 }
0x119b   :  { %v4386_v42 = vrot.slane %v4385_v28, 1  ;;  %v4411_v46 = vadd.f32 %v4410_v23, %v4409_v2 }
0x119d   :  { %v4387_v37 = vadd.f32 %v4386_v42, %v4385_v28  ;;  %v4412_v25 = vmul.f32 0.04347826, %v4411_v46 }
0x119f   :  { %v4388_v26 = vmul.f32 0.04347826, %v4387_v37 }
0x11a1   :  { %v4413_v44 = vsel %vm71_vm6, %v4388_v26, %v4412_v25 }
0x11a2   :  { %v4414_v57 = vpack.c.bf16 %v4413_v44, %v4413_v44 }
0x11a4   :  { %5398 = vmatmul.mubr.bf16.vlgmr.msra.gmra.mrb[96].mxu0 %v4414_v57 }
0x1277   :  { %v4518_v14 = vpop.f32.mrb[96].mxu0 }
0x1278   :  { %v4519_v30 = vadd.f32 %v4927_v24, %v4518_v14  ;;  %v5399_v13 = vpop.f32.mrb[97].mxu0 }
0x1279   :  { %v4521_v4 = vpop.f32.mrb[98].mxu0 }
0x127a   :  { %v4524_v21 = vmax.f32 %v4519_v30, 0.0  ;;  %v5400_v3 = vpop.f32.mrb[99].mxu0 }
0x127c   :  { %v4525_v15 = vpack.c.bf16 %v4524_v21, %v4524_v21 }
0x127e   :  { %5418 = vmatmul.mubr.bf16.vlgmr.msra.gmra.mrb[80].mxu1 %v4525_v15 }
0x1351   :  { %v4629_v29 = vpop.f32.mrb[80].mxu1 }
0x1352   :  { %v4630_v12 = vadd.f32 %v4936_v62, %v4629_v29  ;;  %v5419_v0 = vpop.f32.mrb[81].mxu1 }
0x1353   :  { %v4632_v35 = vpop.f32.mrb[82].mxu1 }
0x1354   :  { %v4635_v51 = vmax.f32 %v4630_v12, 0.0  ;;  %v5420_v63 = vpop.f32.mrb[83].mxu1 }
0x1356   :  { %v4641_v1 = vmul.f32 %v4945_v18, %v4635_v51 }
0x1358   :  { %v4642_v55 = vsel %vm62_vm1, %v4641_v1, 0.0 }
0x1359   :  { %4643 = vadd.xlane.f32.xlu0 %v4642_v55 }
0x13e6   :  { %v4644_v40 = vpop.xlane.xlu0 %4643 }
0x13e7   :  { %v4650_v53 = vadd.f32 %v4946_v11, %v4644_v40 }
0x13e9   :  { %v4947_v17 = vmul.f32 -1.442695, %v4650_v53 }
0x13eb   :  { %6111 = vpow2.f32 %v4947_v17 }
0x13f5   :  { %v6112_v58 = vpop.eup %6111 }
0x13f6   :  { %v4654_v49 = vadd.f32 1.0, %v6112_v58 }
0x13f8   :  { %6113 = vrcp.f32 %v4654_v49 }
0x1402   :  { %v6114_v27 = vpop.eup %6113 }
0x1403   :  { %4658 = vst.msk [vmem:[%s7467_s5] sm:$0x3] %vm4657_vm2, %v6114_v27 }
0x1404   :  { %4663 = vsyncpa [#allocation3], 1 }
0x1405   :  { %4664 = vsyncpa [#allocation5], 1 }

</bundles_post_ra>
